<compile_context>
chip_gen: v7x
topology: tpu7x:2x2x1
jax: 0.10.0
libtpu: 0.0.40
codegen_flags: <defaults>
</compile_context>

<pallas_src>
import jax
import jax.numpy as jnp
from jax.experimental import pallas as pl
from jax.experimental.pallas import tpu as pltpu

EPS = 1e-5  # nn.BatchNorm2d default eps


# ------------------------------- helpers ------------------------------------

def _round_up(x, m):
    return ((x + m - 1) // m) * m


def _pick_row_tile(H, W, target_rows=512):
    """Largest divisor th of H with th*W <= target_rows (fallback th=1)."""
    best = 1
    for th in range(1, H + 1):
        if H % th == 0 and th * W <= target_rows:
            best = th
    return best


def _pick_m_tile(M, target=512):
    """Largest multiple of 8 dividing M, capped to keep >= 2 grid steps."""
    cap = min(target, M // 2) if M >= 16 else M
    best = None
    for tm in range(8, cap + 1, 8):
        if M % tm == 0:
            best = tm
    return best if best is not None else M


# ----------------------------- Pallas kernels -------------------------------

def _make_conv_kernel(*, th, H, W, Cinp, Coutp, apply_prologue, compute_dtype):
    """Fused (optional BN+ReLU prologue) -> 3x3 SAME conv -> partial BN stats."""

    def kernel(x_ref, w_ref, scale_ref, shift_ref, y_ref, stats_ref):
        # x_ref: (H+2, W+2, Cinp) spatially zero-padded image (batch dim squeezed)
        # w_ref: (3, 3, Cinp, Coutp)
        # scale_ref/shift_ref: (1, Cinp) input-channel affine (prev layer's BN)
        # y_ref: (th, W, Coutp) conv output tile
        # stats_ref: (2, Coutp) -> row0 = sum, row1 = sum of squares (this tile)
        i = pl.program_id(1)
        row0 = i * th
        if th % 8 == 0:
            row0 = pl.multiple_of(row0, 8)

        xt = x_ref[pl.ds(row0, th + 2), :, :]  # (th+2, W+2, Cinp)

        if apply_prologue:
            # Previous layer's BN+ReLU, fused into this conv's input load.
            sc = scale_ref[...].reshape(1, 1, Cinp)
            sh = shift_ref[...].reshape(1, 1, Cinp)
            t = xt.astype(jnp.float32) * sc + sh
            t = jnp.maximum(t, 0.0)
            # Keep the SAME-conv zero border exactly zero (affine would turn the
            # zero padding into relu(shift)).
            pr = jax.lax.broadcasted_iota(jnp.int32, (th + 2, W + 2, 1), 0) + row0
            pc = jax.lax.broadcasted_iota(jnp.int32, (th + 2, W + 2, 1), 1)
            valid = (pr >= 1) & (pr <= H) & (pc >= 1) & (pc <= W)
            xt = jnp.where(valid, t, 0.0).astype(compute_dtype)

        # Implicit im2col: 9 accumulating MXU matmuls, f32 accumulator.
        acc = jnp.zeros((th * W, Coutp), jnp.float32)
        for ky in range(3):
            for kx in range(3):
                patch = xt[ky:ky + th, kx:kx + W, :].reshape(th * W, Cinp)
                acc = acc + jnp.dot(patch, w_ref[ky, kx],
                                    preferred_element_type=jnp.float32)

        # Partial per-channel statistics for this tile (finished in JAX).
        ssum = jnp.sum(acc, axis=0, keepdims=True)         # (1, Coutp)
        ssq = jnp.sum(acc * acc, axis=0, keepdims=True)    # (1, Coutp)
        stats_ref[...] = jnp.concatenate([ssum, ssq], axis=0)

        y_ref[...] = acc.reshape(th, W, Coutp).astype(y_ref.dtype)

    return kernel


def _bn_relu_kernel(y_ref, scale_ref, shift_ref, o_ref):
    # y_ref: (tm, Cp) lane-dense; scale/shift: (1, Cp)
    y = y_ref[...].astype(jnp.float32)
    o_ref[...] = jnp.maximum(y * scale_ref[...] + shift_ref[...], 0.0)


# ----------------------------- Pallas wrappers ------------------------------

def _conv_layer(x_padded, w4, scale_in, shift_in, *, H, W, th, apply_prologue,
                compute_dtype, store_dtype):
    """x_padded: (N, H+2, W+2, Cinp); w4: (3, 3, Cinp, Coutp)."""
    N = x_padded.shape[0]
    Cinp = x_padded.shape[-1]
    Coutp = w4.shape[-1]
    HT = H // th

    kernel = _make_conv_kernel(th=th, H=H, W=W, Cinp=Cinp, Coutp=Coutp,
                               apply_prologue=apply_prologue,
                               compute_dtype=compute_dtype)

    y, stats = pl.pallas_call(
        kernel,
        out_shape=(
            jax.ShapeDtypeStruct((N, H, W, Coutp), store_dtype),
            jax.ShapeDtypeStruct((N, HT, 2, Coutp), jnp.float32),
        ),
        grid_spec=pltpu.PrefetchScalarGridSpec(
            num_scalar_prefetch=0,
            grid=(N, HT),
            in_specs=[
                # Full padded image per batch element stays resident across the
                # row-tile axis (same block index -> no re-DMA).
                pl.BlockSpec((None, H + 2, W + 2, Cinp), lambda b, i: (b, 0, 0, 0)),
                pl.BlockSpec((3, 3, Cinp, Coutp), lambda b, i: (0, 0, 0, 0)),
                pl.BlockSpec((1, Cinp), lambda b, i: (0, 0)),
                pl.BlockSpec((1, Cinp), lambda b, i: (0, 0)),
            ],
            out_specs=[
                pl.BlockSpec((None, th, W, Coutp), lambda b, i: (b, i, 0, 0)),
                pl.BlockSpec((None, None, 2, Coutp), lambda b, i: (b, i, 0, 0)),
            ],
        ),
        compiler_params=pltpu.CompilerParams(
            dimension_semantics=("parallel", "parallel")),
    )(x_padded, w4, scale_in, shift_in)
    return y, stats


def _bn_relu_call(y2d, scale, shift, *, tm):
    M, C = y2d.shape
    return pl.pallas_call(
        _bn_relu_kernel,
        out_shape=jax.ShapeDtypeStruct((M, C), jnp.float32),
        grid_spec=pltpu.PrefetchScalarGridSpec(
            num_scalar_prefetch=0,
            grid=(M // tm,),
            in_specs=[
                pl.BlockSpec((tm, C), lambda i: (i, 0)),
                pl.BlockSpec((1, C), lambda i: (0, 0)),
                pl.BlockSpec((1, C), lambda i: (0, 0)),
            ],
            out_specs=pl.BlockSpec((tm, C), lambda i: (i, 0)),
        ),
        compiler_params=pltpu.CompilerParams(dimension_semantics=("parallel",)),
    )(y2d, scale, shift)


# ------------------------------ JAX glue -------------------------------------

def _prep_weight(w_oihw, Cinp, Coutp, dtype):
    """(Cout, Cin, 3, 3) -> (3, 3, Cinp, Coutp), zero-padded, cast."""
    Cout, Cin = w_oihw.shape[0], w_oihw.shape[1]
    w = jnp.transpose(w_oihw.astype(jnp.float32), (2, 3, 1, 0))
    w = jnp.pad(w, ((0, 0), (0, 0), (0, Cinp - Cin), (0, Coutp - Cout)))
    return w.astype(dtype)


def _bn_affine(stats, bias, gamma, beta, batchnorm, count, Cout, Coutp):
    """Fold training-mode BN (or bias-only) into per-channel (scale, shift)."""
    if batchnorm:
        # Conv bias is skipped entirely: it cancels under mean subtraction.
        s = jnp.sum(stats[:, :, 0, :], axis=(0, 1))
        ss = jnp.sum(stats[:, :, 1, :], axis=(0, 1))
        mean = s / count
        var = jnp.maximum(ss / count - mean * mean, 0.0)     # biased, like PyTorch
        gp = jnp.pad(gamma.astype(jnp.float32), (0, Coutp - Cout))
        bp = jnp.pad(beta.astype(jnp.float32), (0, Coutp - Cout))
        scale = gp * jax.lax.rsqrt(var + EPS)
        shift = bp - mean * scale
    else:
        scale = jnp.ones((Coutp,), jnp.float32)
        shift = jnp.pad(bias.astype(jnp.float32), (0, Coutp - Cout))
    return scale.reshape(1, Coutp), shift.reshape(1, Coutp)


def convolution_block(x_nchw, params, batchnorm=True, compute_dtype=jnp.bfloat16):
    """Pallas implementation of ConvolutionBlock.forward (last_active = ReLU)."""
    w1, b1, g1, be1, w2, b2, g2, be2 = params
    N, Cin, H, W = x_nchw.shape
    Cout = w1.shape[0]
    Cinp = _round_up(Cin, 128)
    Coutp = _round_up(Cout, 128)
    th = _pick_row_tile(H, W)
    M = N * H * W

    # NCHW -> NHWC, pad channels to 128-multiple, pad spatial halo (+1), cast.
    x = jnp.transpose(x_nchw, (0, 2, 3, 1)).astype(jnp.float32)
    x = jnp.pad(x, ((0, 0), (1, 1), (1, 1), (0, Cinp - Cin))).astype(compute_dtype)

    w1p = _prep_weight(w1, Cinp, Coutp, compute_dtype)
    w2p = _prep_weight(w2, Coutp, Coutp, compute_dtype)

    # ---- layer 1: conv (no prologue), partial BN1 stats emitted by the kernel
    dummy = jnp.zeros((1, Cinp), jnp.float32)
    y1, st1 = _conv_layer(x, w1p, dummy, dummy, H=H, W=W, th=th,
                          apply_prologue=False,
                          compute_dtype=compute_dtype, store_dtype=compute_dtype)
    scale1, shift1 = _bn_affine(st1, b1, g1, be1, batchnorm, M, Cout, Coutp)

    # ---- layer 2: BN1+ReLU1 fused as the prologue of conv2 (no extra HBM pass)
    y1p = jnp.pad(y1, ((0, 0), (1, 1), (1, 1), (0, 0)))
    y2, st2 = _conv_layer(y1p, w2p, scale1, shift1, H=H, W=W, th=th,
                          apply_prologue=True,
                          compute_dtype=compute_dtype, store_dtype=compute_dtype)
    scale2, shift2 = _bn_affine(st2, b2, g2, be2, batchnorm, M, Cout, Coutp)

    # ---- final BN2 + ReLU2: single lane-dense elementwise pass
    tm = _pick_m_tile(M)
    out = _bn_relu_call(y2.reshape(M, Coutp), scale2, shift2, tm=tm)
    out = out.reshape(N, H, W, Coutp)[..., :Cout]
    return jnp.transpose(out, (0, 3, 1, 2))        # NHWC -> NCHW


# ----------------------------- pure-JAX reference ----------------------------

def reference_block(x_nchw, params, batchnorm=True):
    w1, b1, g1, be1, w2, b2, g2, be2 = params
    x = jnp.transpose(x_nchw, (0, 2, 3, 1)).astype(jnp.float32)

    def conv(x, w, b):
        w_hwio = jnp.transpose(w, (2, 3, 1, 0))
        y = jax.lax.conv_general_dilated(
            x, w_hwio, window_strides=(1, 1), padding="SAME",
            dimension_numbers=("NHWC", "HWIO", "NHWC"))
        return y + b

    def bn_relu(y, gamma, beta):
        if batchnorm:
            mean = jnp.mean(y, axis=(0, 1, 2))
            var = jnp.var(y, axis=(0, 1, 2))
            y = (y - mean) / jnp.sqrt(var + EPS) * gamma + beta
        return jnp.maximum(y, 0.0)

    y = bn_relu(conv(x, w1, b1), g1, be1)
    y = bn_relu(conv(y, w2, b2), g2, be2)
    return jnp.transpose(y, (0, 3, 1, 2))


# ----------------------------------- main -------------------------------------

if __name__ == "__main__":
    in_filters, out_filters = 4, 8
    N, H, W = 2, 16, 16
    key = jax.random.PRNGKey(0)
    ks = jax.random.split(key, 9)

    x = jax.random.normal(ks[0], (N, in_filters, H, W), jnp.float32)

    # synthetic deterministic params; shapes follow nn.Conv2d / nn.BatchNorm2d
    w1 = jax.random.normal(ks[1], (out_filters, in_filters, 3, 3), jnp.float32) * 0.1
    b1 = jax.random.normal(ks[2], (out_filters,), jnp.float32) * 0.1
    g1 = 1.0 + 0.1 * jax.random.normal(ks[3], (out_filters,), jnp.float32)
    be1 = 0.1 * jax.random.normal(ks[4], (out_filters,), jnp.float32)
    w2 = jax.random.normal(ks[5], (out_filters, out_filters, 3, 3), jnp.float32) * 0.1
    b2 = jax.random.normal(ks[6], (out_filters,), jnp.float32) * 0.1
    g2 = 1.0 + 0.1 * jax.random.normal(ks[7], (out_filters,), jnp.float32)
    be2 = 0.1 * jax.random.normal(ks[8], (out_filters,), jnp.float32)

    params = (w1, b1, g1, be1, w2, b2, g2, be2)

    ref = jax.block_until_ready(reference_block(x, params, batchnorm=True))

    # Full-precision path (f32 MXU operands): tight correctness check.
    fwd_f32 = jax.jit(lambda xx, pp: convolution_block(
        xx, pp, batchnorm=True, compute_dtype=jnp.float32))
    out_f32 = jax.block_until_ready(fwd_f32(x, params))
    assert out_f32.shape == (N, out_filters, H, W), out_f32.shape
    err_f32 = float(jnp.max(jnp.abs(out_f32 - ref)))
    assert jnp.allclose(out_f32, ref, atol=1e-4, rtol=1e-4), err_f32

    # Performance path (bf16 MXU operands, f32 accumulation / BN math).
    fwd_bf16 = jax.jit(lambda xx, pp: convolution_block(
        xx, pp, batchnorm=True, compute_dtype=jnp.bfloat16))
    out_bf16 = jax.block_until_ready(fwd_bf16(x, params))
    assert out_bf16.shape == (N, out_filters, H, W), out_bf16.shape
    err_bf16 = float(jnp.max(jnp.abs(out_bf16 - ref)))
    assert jnp.allclose(out_bf16, ref, atol=1e-1, rtol=1e-1), err_bf16

    print("KERNEL_OK")
</pallas_src>

<mosaic_0001>
module attributes {stable_mosaic.version = 11 : i64} {
  func.func @kernel(%arg0: i32, %arg1: i32, %arg2: memref<1x18x18x128xf32, #tpu.memory_space<vmem>>, %arg3: memref<3x3x128x128xf32, #tpu.memory_space<vmem>>, %arg4: memref<1x128xf32, #tpu.memory_space<vmem>>, %arg5: memref<1x128xf32, #tpu.memory_space<vmem>>, %arg6: memref<1x16x16x128xf32, #tpu.memory_space<vmem>>, %arg7: memref<1x1x2x128xf32, #tpu.memory_space<vmem>>) attributes {dimension_semantics = [#tpu.dimension_semantics<parallel>, #tpu.dimension_semantics<parallel>], iteration_bounds = array<i64: 2, 1>, scalar_prefetch = 0 : i64, scratch_operands = 0 : i64, tpu.core_type = #tpu.core_type<tc>, window_params = [{transform_indices = @transform_0, window_bounds = array<i64: 1, 18, 18, 128>}, {pipeline_mode = #tpu.pipeline_mode<synchronous>, transform_indices = @transform_1, window_bounds = array<i64: 3, 3, 128, 128>}, {pipeline_mode = #tpu.pipeline_mode<synchronous>, transform_indices = @transform_2, window_bounds = array<i64: 1, 128>}, {pipeline_mode = #tpu.pipeline_mode<synchronous>, transform_indices = @transform_3, window_bounds = array<i64: 1, 128>}, {transform_indices = @transform_4, window_bounds = array<i64: 1, 16, 16, 128>}, {transform_indices = @transform_5, window_bounds = array<i64: 1, 1, 2, 128>}]} {
    %c16_i32 = arith.constant 16 : i32
    %0 = arith.muli %arg1, %c16_i32 : i32
    %1 = tpu.assume_multiple %0, 8 : i32
    %c0 = arith.constant 0 : index
    %2 = arith.index_cast %1 : i32 to index
    %c0_0 = arith.constant 0 : index
    %c0_1 = arith.constant 0 : index
    %3 = vector.load %arg2[%c0, %2, %c0_0, %c0_1] : memref<1x18x18x128xf32, #tpu.memory_space<vmem>>, vector<1x18x18x128xf32>
    %4 = vector.shape_cast %3 : vector<1x18x18x128xf32> to vector<18x18x128xf32>
    %cst = arith.constant 0.000000e+00 : f32
    %5 = vector.broadcast %cst : f32 to vector<256x128xf32>
    %6 = vector.extract_strided_slice %4 {offsets = [0, 0, 0], sizes = [16, 16, 128], strides = [1, 1, 1]} : vector<18x18x128xf32> to vector<16x16x128xf32>
    %7 = vector.shape_cast %6 : vector<16x16x128xf32> to vector<256x128xf32>
    %c0_2 = arith.constant 0 : index
    %c0_3 = arith.constant 0 : index
    %c0_4 = arith.constant 0 : index
    %c0_5 = arith.constant 0 : index
    %8 = vector.load %arg3[%c0_2, %c0_3, %c0_4, %c0_5] : memref<3x3x128x128xf32, #tpu.memory_space<vmem>>, vector<1x1x128x128xf32>
    %9 = vector.shape_cast %8 : vector<1x1x128x128xf32> to vector<128x128xf32>
    %cst_6 = arith.constant dense<0.000000e+00> : vector<256x128xf32>
    %10 = tpu.matmul %7, %9, %cst_6 {dimension_numbers = #tpu.dot_dimension_numbers<[1], [0], [0], [1], [0, 0, 1, 1], [], []>} : vector<256x128xf32>, vector<128x128xf32>, vector<256x128xf32> -> vector<256x128xf32>
    %11 = arith.addf %5, %10 : vector<256x128xf32>
    %12 = vector.extract_strided_slice %4 {offsets = [0, 1, 0], sizes = [16, 16, 128], strides = [1, 1, 1]} : vector<18x18x128xf32> to vector<16x16x128xf32>
    %13 = vector.shape_cast %12 : vector<16x16x128xf32> to vector<256x128xf32>
    %c0_7 = arith.constant 0 : index
    %c1 = arith.constant 1 : index
    %c0_8 = arith.constant 0 : index
    %c0_9 = arith.constant 0 : index
    %14 = vector.load %arg3[%c0_7, %c1, %c0_8, %c0_9] : memref<3x3x128x128xf32, #tpu.memory_space<vmem>>, vector<1x1x128x128xf32>
    %15 = vector.shape_cast %14 : vector<1x1x128x128xf32> to vector<128x128xf32>
    %cst_10 = arith.constant dense<0.000000e+00> : vector<256x128xf32>
    %16 = tpu.matmul %13, %15, %cst_10 {dimension_numbers = #tpu.dot_dimension_numbers<[1], [0], [0], [1], [0, 0, 1, 1], [], []>} : vector<256x128xf32>, vector<128x128xf32>, vector<256x128xf32> -> vector<256x128xf32>
    %17 = arith.addf %11, %16 : vector<256x128xf32>
    %18 = vector.extract_strided_slice %4 {offsets = [0, 2, 0], sizes = [16, 16, 128], strides = [1, 1, 1]} : vector<18x18x128xf32> to vector<16x16x128xf32>
    %19 = vector.shape_cast %18 : vector<16x16x128xf32> to vector<256x128xf32>
    %c0_11 = arith.constant 0 : index
    %c2 = arith.constant 2 : index
    %c0_12 = arith.constant 0 : index
    %c0_13 = arith.constant 0 : index
    %20 = vector.load %arg3[%c0_11, %c2, %c0_12, %c0_13] : memref<3x3x128x128xf32, #tpu.memory_space<vmem>>, vector<1x1x128x128xf32>
    %21 = vector.shape_cast %20 : vector<1x1x128x128xf32> to vector<128x128xf32>
    %cst_14 = arith.constant dense<0.000000e+00> : vector<256x128xf32>
    %22 = tpu.matmul %19, %21, %cst_14 {dimension_numbers = #tpu.dot_dimension_numbers<[1], [0], [0], [1], [0, 0, 1, 1], [], []>} : vector<256x128xf32>, vector<128x128xf32>, vector<256x128xf32> -> vector<256x128xf32>
    %23 = arith.addf %17, %22 : vector<256x128xf32>
    %24 = vector.extract_strided_slice %4 {offsets = [1, 0, 0], sizes = [16, 16, 128], strides = [1, 1, 1]} : vector<18x18x128xf32> to vector<16x16x128xf32>
    %25 = vector.shape_cast %24 : vector<16x16x128xf32> to vector<256x128xf32>
    %c1_15 = arith.constant 1 : index
    %c0_16 = arith.constant 0 : index
    %c0_17 = arith.constant 0 : index
    %c0_18 = arith.constant 0 : index
    %26 = vector.load %arg3[%c1_15, %c0_16, %c0_17, %c0_18] : memref<3x3x128x128xf32, #tpu.memory_space<vmem>>, vector<1x1x128x128xf32>
    %27 = vector.shape_cast %26 : vector<1x1x128x128xf32> to vector<128x128xf32>
    %cst_19 = arith.constant dense<0.000000e+00> : vector<256x128xf32>
    %28 = tpu.matmul %25, %27, %cst_19 {dimension_numbers = #tpu.dot_dimension_numbers<[1], [0], [0], [1], [0, 0, 1, 1], [], []>} : vector<256x128xf32>, vector<128x128xf32>, vector<256x128xf32> -> vector<256x128xf32>
    %29 = arith.addf %23, %28 : vector<256x128xf32>
    %30 = vector.extract_strided_slice %4 {offsets = [1, 1, 0], sizes = [16, 16, 128], strides = [1, 1, 1]} : vector<18x18x128xf32> to vector<16x16x128xf32>
    %31 = vector.shape_cast %30 : vector<16x16x128xf32> to vector<256x128xf32>
    %c1_20 = arith.constant 1 : index
    %c1_21 = arith.constant 1 : index
    %c0_22 = arith.constant 0 : index
    %c0_23 = arith.constant 0 : index
    %32 = vector.load %arg3[%c1_20, %c1_21, %c0_22, %c0_23] : memref<3x3x128x128xf32, #tpu.memory_space<vmem>>, vector<1x1x128x128xf32>
    %33 = vector.shape_cast %32 : vector<1x1x128x128xf32> to vector<128x128xf32>
    %cst_24 = arith.constant dense<0.000000e+00> : vector<256x128xf32>
    %34 = tpu.matmul %31, %33, %cst_24 {dimension_numbers = #tpu.dot_dimension_numbers<[1], [0], [0], [1], [0, 0, 1, 1], [], []>} : vector<256x128xf32>, vector<128x128xf32>, vector<256x128xf32> -> vector<256x128xf32>
    %35 = arith.addf %29, %34 : vector<256x128xf32>
    %36 = vector.extract_strided_slice %4 {offsets = [1, 2, 0], sizes = [16, 16, 128], strides = [1, 1, 1]} : vector<18x18x128xf32> to vector<16x16x128xf32>
    %37 = vector.shape_cast %36 : vector<16x16x128xf32> to vector<256x128xf32>
    %c1_25 = arith.constant 1 : index
    %c2_26 = arith.constant 2 : index
    %c0_27 = arith.constant 0 : index
    %c0_28 = arith.constant 0 : index
    %38 = vector.load %arg3[%c1_25, %c2_26, %c0_27, %c0_28] : memref<3x3x128x128xf32, #tpu.memory_space<vmem>>, vector<1x1x128x128xf32>
    %39 = vector.shape_cast %38 : vector<1x1x128x128xf32> to vector<128x128xf32>
    %cst_29 = arith.constant dense<0.000000e+00> : vector<256x128xf32>
    %40 = tpu.matmul %37, %39, %cst_29 {dimension_numbers = #tpu.dot_dimension_numbers<[1], [0], [0], [1], [0, 0, 1, 1], [], []>} : vector<256x128xf32>, vector<128x128xf32>, vector<256x128xf32> -> vector<256x128xf32>
    %41 = arith.addf %35, %40 : vector<256x128xf32>
    %42 = vector.extract_strided_slice %4 {offsets = [2, 0, 0], sizes = [16, 16, 128], strides = [1, 1, 1]} : vector<18x18x128xf32> to vector<16x16x128xf32>
    %43 = vector.shape_cast %42 : vector<16x16x128xf32> to vector<256x128xf32>
    %c2_30 = arith.constant 2 : index
    %c0_31 = arith.constant 0 : index
    %c0_32 = arith.constant 0 : index
    %c0_33 = arith.constant 0 : index
    %44 = vector.load %arg3[%c2_30, %c0_31, %c0_32, %c0_33] : memref<3x3x128x128xf32, #tpu.memory_space<vmem>>, vector<1x1x128x128xf32>
    %45 = vector.shape_cast %44 : vector<1x1x128x128xf32> to vector<128x128xf32>
    %cst_34 = arith.constant dense<0.000000e+00> : vector<256x128xf32>
    %46 = tpu.matmul %43, %45, %cst_34 {dimension_numbers = #tpu.dot_dimension_numbers<[1], [0], [0], [1], [0, 0, 1, 1], [], []>} : vector<256x128xf32>, vector<128x128xf32>, vector<256x128xf32> -> vector<256x128xf32>
    %47 = arith.addf %41, %46 : vector<256x128xf32>
    %48 = vector.extract_strided_slice %4 {offsets = [2, 1, 0], sizes = [16, 16, 128], strides = [1, 1, 1]} : vector<18x18x128xf32> to vector<16x16x128xf32>
    %49 = vector.shape_cast %48 : vector<16x16x128xf32> to vector<256x128xf32>
    %c2_35 = arith.constant 2 : index
    %c1_36 = arith.constant 1 : index
    %c0_37 = arith.constant 0 : index
    %c0_38 = arith.constant 0 : index
    %50 = vector.load %arg3[%c2_35, %c1_36, %c0_37, %c0_38] : memref<3x3x128x128xf32, #tpu.memory_space<vmem>>, vector<1x1x128x128xf32>
    %51 = vector.shape_cast %50 : vector<1x1x128x128xf32> to vector<128x128xf32>
    %cst_39 = arith.constant dense<0.000000e+00> : vector<256x128xf32>
    %52 = tpu.matmul %49, %51, %cst_39 {dimension_numbers = #tpu.dot_dimension_numbers<[1], [0], [0], [1], [0, 0, 1, 1], [], []>} : vector<256x128xf32>, vector<128x128xf32>, vector<256x128xf32> -> vector<256x128xf32>
    %53 = arith.addf %47, %52 : vector<256x128xf32>
    %54 = vector.extract_strided_slice %4 {offsets = [2, 2, 0], sizes = [16, 16, 128], strides = [1, 1, 1]} : vector<18x18x128xf32> to vector<16x16x128xf32>
    %55 = vector.shape_cast %54 : vector<16x16x128xf32> to vector<256x128xf32>
    %c2_40 = arith.constant 2 : index
    %c2_41 = arith.constant 2 : index
    %c0_42 = arith.constant 0 : index
    %c0_43 = arith.constant 0 : index
    %56 = vector.load %arg3[%c2_40, %c2_41, %c0_42, %c0_43] : memref<3x3x128x128xf32, #tpu.memory_space<vmem>>, vector<1x1x128x128xf32>
    %57 = vector.shape_cast %56 : vector<1x1x128x128xf32> to vector<128x128xf32>
    %cst_44 = arith.constant dense<0.000000e+00> : vector<256x128xf32>
    %58 = tpu.matmul %55, %57, %cst_44 {dimension_numbers = #tpu.dot_dimension_numbers<[1], [0], [0], [1], [0, 0, 1, 1], [], []>} : vector<256x128xf32>, vector<128x128xf32>, vector<256x128xf32> -> vector<256x128xf32>
    %59 = arith.addf %53, %58 : vector<256x128xf32>
    %cst_45 = arith.constant dense<0.000000e+00> : vector<128xf32>
    %60 = vector.multi_reduction <add>, %59, %cst_45 [0] : vector<256x128xf32> to vector<128xf32>
    %61 = vector.shape_cast %60 : vector<128xf32> to vector<1x128xf32>
    %62 = arith.mulf %59, %59 : vector<256x128xf32>
    %cst_46 = arith.constant dense<0.000000e+00> : vector<128xf32>
    %63 = vector.multi_reduction <add>, %62, %cst_46 [0] : vector<256x128xf32> to vector<128xf32>
    %64 = vector.shape_cast %63 : vector<128xf32> to vector<1x128xf32>
    %65 = tpu.concatenate %61, %64 in 0 : vector<1x128xf32>, vector<1x128xf32> -> vector<2x128xf32>
    %c0_47 = arith.constant 0 : index
    %c0_48 = arith.constant 0 : index
    %c0_49 = arith.constant 0 : index
    %c0_50 = arith.constant 0 : index
    %66 = vector.load %arg7[%c0_47, %c0_48, %c0_49, %c0_50] : memref<1x1x2x128xf32, #tpu.memory_space<vmem>>, vector<1x1x2x128xf32>
    %67 = vector.shape_cast %66 : vector<1x1x2x128xf32> to vector<2x128xf32>
    %68 = vector.shape_cast %65 : vector<2x128xf32> to vector<1x1x2x128xf32>
    tpu.vector_store %arg7[%c0_47, %c0_48, %c0_49, %c0_50], %68 {strides = array<i32>} : memref<1x1x2x128xf32, #tpu.memory_space<vmem>>, vector<1x1x2x128xf32>,
    %69 = vector.shape_cast %59 : vector<256x128xf32> to vector<16x16x128xf32>
    %c0_51 = arith.constant 0 : index
    %c0_52 = arith.constant 0 : index
    %c0_53 = arith.constant 0 : index
    %c0_54 = arith.constant 0 : index
    %70 = vector.load %arg6[%c0_51, %c0_52, %c0_53, %c0_54] : memref<1x16x16x128xf32, #tpu.memory_space<vmem>>, vector<1x16x16x128xf32>
    %71 = vector.shape_cast %70 : vector<1x16x16x128xf32> to vector<16x16x128xf32>
    %72 = vector.shape_cast %69 : vector<16x16x128xf32> to vector<1x16x16x128xf32>
    tpu.vector_store %arg6[%c0_51, %c0_52, %c0_53, %c0_54], %72 {strides = array<i32>} : memref<1x16x16x128xf32, #tpu.memory_space<vmem>>, vector<1x16x16x128xf32>,
    return
  }
  func.func @transform_0(%arg0: i32, %arg1: i32) -> (i32, i32, i32, i32) {
    %c0_i32 = arith.constant 0 : i32
    %c0_i32_0 = arith.constant 0 : i32
    %c0_i32_1 = arith.constant 0 : i32
    %c0_i32_2 = arith.constant 0 : i32
    return %arg0, %c0_i32, %c0_i32_0, %c0_i32_1 : i32, i32, i32, i32
  }
  func.func @transform_1(%arg0: i32, %arg1: i32) -> (i32, i32, i32, i32) {
    %c0_i32 = arith.constant 0 : i32
    %c0_i32_0 = arith.constant 0 : i32
    %c0_i32_1 = arith.constant 0 : i32
    %c0_i32_2 = arith.constant 0 : i32
    %c0_i32_3 = arith.constant 0 : i32
    return %c0_i32, %c0_i32_0, %c0_i32_1, %c0_i32_2 : i32, i32, i32, i32
  }
  func.func @transform_2(%arg0: i32, %arg1: i32) -> (i32, i32) {
    %c0_i32 = arith.constant 0 : i32
    %c0_i32_0 = arith.constant 0 : i32
    %c0_i32_1 = arith.constant 0 : i32
    return %c0_i32, %c0_i32_0 : i32, i32
  }
  func.func @transform_3(%arg0: i32, %arg1: i32) -> (i32, i32) {
    %c0_i32 = arith.constant 0 : i32
    %c0_i32_0 = arith.constant 0 : i32
    %c0_i32_1 = arith.constant 0 : i32
    return %c0_i32, %c0_i32_0 : i32, i32
  }
  func.func @transform_4(%arg0: i32, %arg1: i32) -> (i32, i32, i32, i32) {
    %c0_i32 = arith.constant 0 : i32
    %c0_i32_0 = arith.constant 0 : i32
    %c0_i32_1 = arith.constant 0 : i32
    return %arg0, %arg1, %c0_i32, %c0_i32_0 : i32, i32, i32, i32
  }
  func.func @transform_5(%arg0: i32, %arg1: i32) -> (i32, i32, i32, i32) {
    %c0_i32 = arith.constant 0 : i32
    %c0_i32_0 = arith.constant 0 : i32
    %c0_i32_1 = arith.constant 0 : i32
    return %arg0, %arg1, %c0_i32, %c0_i32_0 : i32, i32, i32, i32
  }
}

module attributes {stable_mosaic.version = 11 : i64} {
  func.func @_bn_relu_kernel(%arg0: i32, %arg1: memref<256x128xf32, #tpu.memory_space<vmem>>, %arg2: memref<1x128xf32, #tpu.memory_space<vmem>>, %arg3: memref<1x128xf32, #tpu.memory_space<vmem>>, %arg4: memref<256x128xf32, #tpu.memory_space<vmem>>) attributes {dimension_semantics = [#tpu.dimension_semantics<parallel>], iteration_bounds = array<i64: 2>, scalar_prefetch = 0 : i64, scratch_operands = 0 : i64, tpu.core_type = #tpu.core_type<tc>, window_params = [{transform_indices = @transform_0, window_bounds = array<i64: 256, 128>}, {pipeline_mode = #tpu.pipeline_mode<synchronous>, transform_indices = @transform_1, window_bounds = array<i64: 1, 128>}, {pipeline_mode = #tpu.pipeline_mode<synchronous>, transform_indices = @transform_2, window_bounds = array<i64: 1, 128>}, {transform_indices = @transform_3, window_bounds = array<i64: 256, 128>}]} {
    %c0 = arith.constant 0 : index
    %c0_0 = arith.constant 0 : index
    %0 = vector.load %arg1[%c0, %c0_0] : memref<256x128xf32, #tpu.memory_space<vmem>>, vector<256x128xf32>
    %c0_1 = arith.constant 0 : index
    %c0_2 = arith.constant 0 : index
    %1 = vector.load %arg2[%c0_1, %c0_2] : memref<1x128xf32, #tpu.memory_space<vmem>>, vector<1x128xf32>
    %2 = vector.broadcast %1 : vector<1x128xf32> to vector<256x128xf32>
    %3 = arith.mulf %0, %2 : vector<256x128xf32>
    %c0_3 = arith.constant 0 : index
    %c0_4 = arith.constant 0 : index
    %4 = vector.load %arg3[%c0_3, %c0_4] : memref<1x128xf32, #tpu.memory_space<vmem>>, vector<1x128xf32>
    %5 = vector.broadcast %4 : vector<1x128xf32> to vector<256x128xf32>
    %6 = arith.addf %3, %5 : vector<256x128xf32>
    %cst = arith.constant 0.000000e+00 : f32
    %7 = vector.broadcast %cst : f32 to vector<256x128xf32>
    %8 = arith.maximumf %6, %7 : vector<256x128xf32>
    %c0_5 = arith.constant 0 : index
    %c0_6 = arith.constant 0 : index
    %9 = vector.load %arg4[%c0_5, %c0_6] : memref<256x128xf32, #tpu.memory_space<vmem>>, vector<256x128xf32>
    tpu.vector_store %arg4[%c0_5, %c0_6], %8 {strides = array<i32>} : memref<256x128xf32, #tpu.memory_space<vmem>>, vector<256x128xf32>,
    return
  }
  func.func @transform_0(%arg0: i32) -> (i32, i32) {
    %c0_i32 = arith.constant 0 : i32
    %c0_i32_0 = arith.constant 0 : i32
    return %arg0, %c0_i32 : i32, i32
  }
  func.func @transform_1(%arg0: i32) -> (i32, i32) {
    %c0_i32 = arith.constant 0 : i32
    %c0_i32_0 = arith.constant 0 : i32
    %c0_i32_1 = arith.constant 0 : i32
    return %c0_i32, %c0_i32_0 : i32, i32
  }
  func.func @transform_2(%arg0: i32) -> (i32, i32) {
    %c0_i32 = arith.constant 0 : i32
    %c0_i32_0 = arith.constant 0 : i32
    %c0_i32_1 = arith.constant 0 : i32
    return %c0_i32, %c0_i32_0 : i32, i32
  }
  func.func @transform_3(%arg0: i32) -> (i32, i32) {
    %c0_i32 = arith.constant 0 : i32
    %c0_i32_0 = arith.constant 0 : i32
    return %arg0, %c0_i32 : i32, i32
  }
}

module attributes {stable_mosaic.version = 11 : i64} {
  func.func @kernel(%arg0: i32, %arg1: i32, %arg2: memref<1x18x18x128xf32, #tpu.memory_space<vmem>>, %arg3: memref<3x3x128x128xf32, #tpu.memory_space<vmem>>, %arg4: memref<1x128xf32, #tpu.memory_space<vmem>>, %arg5: memref<1x128xf32, #tpu.memory_space<vmem>>, %arg6: memref<1x16x16x128xf32, #tpu.memory_space<vmem>>, %arg7: memref<1x1x2x128xf32, #tpu.memory_space<vmem>>) attributes {dimension_semantics = [#tpu.dimension_semantics<parallel>, #tpu.dimension_semantics<parallel>], iteration_bounds = array<i64: 2, 1>, scalar_prefetch = 0 : i64, scratch_operands = 0 : i64, tpu.core_type = #tpu.core_type<tc>, window_params = [{transform_indices = @transform_0, window_bounds = array<i64: 1, 18, 18, 128>}, {pipeline_mode = #tpu.pipeline_mode<synchronous>, transform_indices = @transform_1, window_bounds = array<i64: 3, 3, 128, 128>}, {pipeline_mode = #tpu.pipeline_mode<synchronous>, transform_indices = @transform_2, window_bounds = array<i64: 1, 128>}, {pipeline_mode = #tpu.pipeline_mode<synchronous>, transform_indices = @transform_3, window_bounds = array<i64: 1, 128>}, {transform_indices = @transform_4, window_bounds = array<i64: 1, 16, 16, 128>}, {transform_indices = @transform_5, window_bounds = array<i64: 1, 1, 2, 128>}]} {
    %c16_i32 = arith.constant 16 : i32
    %0 = arith.muli %arg1, %c16_i32 : i32
    %1 = tpu.assume_multiple %0, 8 : i32
    %c0 = arith.constant 0 : index
    %2 = arith.index_cast %1 : i32 to index
    %c0_0 = arith.constant 0 : index
    %c0_1 = arith.constant 0 : index
    %3 = vector.load %arg2[%c0, %2, %c0_0, %c0_1] : memref<1x18x18x128xf32, #tpu.memory_space<vmem>>, vector<1x18x18x128xf32>
    %4 = vector.shape_cast %3 : vector<1x18x18x128xf32> to vector<18x18x128xf32>
    %c0_2 = arith.constant 0 : index
    %c0_3 = arith.constant 0 : index
    %5 = vector.load %arg4[%c0_2, %c0_3] : memref<1x128xf32, #tpu.memory_space<vmem>>, vector<1x128xf32>
    %6 = vector.shape_cast %5 : vector<1x128xf32> to vector<1x1x128xf32>
    %c0_4 = arith.constant 0 : index
    %c0_5 = arith.constant 0 : index
    %7 = vector.load %arg5[%c0_4, %c0_5] : memref<1x128xf32, #tpu.memory_space<vmem>>, vector<1x128xf32>
    %8 = vector.shape_cast %7 : vector<1x128xf32> to vector<1x1x128xf32>
    %9 = vector.broadcast %6 : vector<1x1x128xf32> to vector<18x18x128xf32>
    %10 = arith.mulf %4, %9 : vector<18x18x128xf32>
    %11 = vector.broadcast %8 : vector<1x1x128xf32> to vector<18x18x128xf32>
    %12 = arith.addf %10, %11 : vector<18x18x128xf32>
    %cst = arith.constant 0.000000e+00 : f32
    %13 = vector.broadcast %cst : f32 to vector<18x18x128xf32>
    %14 = arith.maximumf %12, %13 : vector<18x18x128xf32>
    %15 = tpu.iota {dimensions = array<i32: 0>} : vector<18x18x1xi32>
    %16 = vector.broadcast %1 : i32 to vector<18x18x1xi32>
    %17 = arith.addi %15, %16 : vector<18x18x1xi32>
    %18 = tpu.iota {dimensions = array<i32: 1>} : vector<18x18x1xi32>
    %c1_i32 = arith.constant 1 : i32
    %19 = vector.broadcast %c1_i32 : i32 to vector<18x18x1xi32>
    %20 = arith.cmpi sge, %17, %19 : vector<18x18x1xi32>
    %c16_i32_6 = arith.constant 16 : i32
    %21 = vector.broadcast %c16_i32_6 : i32 to vector<18x18x1xi32>
    %22 = arith.cmpi sle, %17, %21 : vector<18x18x1xi32>
    %23 = arith.andi %20, %22 : vector<18x18x1xi1>
    %c1_i32_7 = arith.constant 1 : i32
    %24 = vector.broadcast %c1_i32_7 : i32 to vector<18x18x1xi32>
    %25 = arith.cmpi sge, %18, %24 : vector<18x18x1xi32>
    %26 = arith.andi %23, %25 : vector<18x18x1xi1>
    %c16_i32_8 = arith.constant 16 : i32
    %27 = vector.broadcast %c16_i32_8 : i32 to vector<18x18x1xi32>
    %28 = arith.cmpi sle, %18, %27 : vector<18x18x1xi32>
    %29 = arith.andi %26, %28 : vector<18x18x1xi1>
    %cst_9 = arith.constant 0.000000e+00 : f32
    %30 = vector.shape_cast %29 : vector<18x18x1xi1> to vector<18x18x1xi1>
    %31 = vector.broadcast %30 : vector<18x18x1xi1> to vector<18x18x128xi1>
    %32 = vector.broadcast %cst_9 : f32 to vector<18x18x128xf32>
    %33 = arith.select %31, %14, %32 : vector<18x18x128xi1>, vector<18x18x128xf32>
    %cst_10 = arith.constant 0.000000e+00 : f32
    %34 = vector.broadcast %cst_10 : f32 to vector<256x128xf32>
    %35 = vector.extract_strided_slice %33 {offsets = [0, 0, 0], sizes = [16, 16, 128], strides = [1, 1, 1]} : vector<18x18x128xf32> to vector<16x16x128xf32>
    %36 = vector.shape_cast %35 : vector<16x16x128xf32> to vector<256x128xf32>
    %c0_11 = arith.constant 0 : index
    %c0_12 = arith.constant 0 : index
    %c0_13 = arith.constant 0 : index
    %c0_14 = arith.constant 0 : index
    %37 = vector.load %arg3[%c0_11, %c0_12, %c0_13, %c0_14] : memref<3x3x128x128xf32, #tpu.memory_space<vmem>>, vector<1x1x128x128xf32>
    %38 = vector.shape_cast %37 : vector<1x1x128x128xf32> to vector<128x128xf32>
    %cst_15 = arith.constant dense<0.000000e+00> : vector<256x128xf32>
    %39 = tpu.matmul %36, %38, %cst_15 {dimension_numbers = #tpu.dot_dimension_numbers<[1], [0], [0], [1], [0, 0, 1, 1], [], []>} : vector<256x128xf32>, vector<128x128xf32>, vector<256x128xf32> -> vector<256x128xf32>
    %40 = arith.addf %34, %39 : vector<256x128xf32>
    %41 = vector.extract_strided_slice %33 {offsets = [0, 1, 0], sizes = [16, 16, 128], strides = [1, 1, 1]} : vector<18x18x128xf32> to vector<16x16x128xf32>
    %42 = vector.shape_cast %41 : vector<16x16x128xf32> to vector<256x128xf32>
    %c0_16 = arith.constant 0 : index
    %c1 = arith.constant 1 : index
    %c0_17 = arith.constant 0 : index
    %c0_18 = arith.constant 0 : index
    %43 = vector.load %arg3[%c0_16, %c1, %c0_17, %c0_18] : memref<3x3x128x128xf32, #tpu.memory_space<vmem>>, vector<1x1x128x128xf32>
    %44 = vector.shape_cast %43 : vector<1x1x128x128xf32> to vector<128x128xf32>
    %cst_19 = arith.constant dense<0.000000e+00> : vector<256x128xf32>
    %45 = tpu.matmul %42, %44, %cst_19 {dimension_numbers = #tpu.dot_dimension_numbers<[1], [0], [0], [1], [0, 0, 1, 1], [], []>} : vector<256x128xf32>, vector<128x128xf32>, vector<256x128xf32> -> vector<256x128xf32>
    %46 = arith.addf %40, %45 : vector<256x128xf32>
    %47 = vector.extract_strided_slice %33 {offsets = [0, 2, 0], sizes = [16, 16, 128], strides = [1, 1, 1]} : vector<18x18x128xf32> to vector<16x16x128xf32>
    %48 = vector.shape_cast %47 : vector<16x16x128xf32> to vector<256x128xf32>
    %c0_20 = arith.constant 0 : index
    %c2 = arith.constant 2 : index
    %c0_21 = arith.constant 0 : index
    %c0_22 = arith.constant 0 : index
    %49 = vector.load %arg3[%c0_20, %c2, %c0_21, %c0_22] : memref<3x3x128x128xf32, #tpu.memory_space<vmem>>, vector<1x1x128x128xf32>
    %50 = vector.shape_cast %49 : vector<1x1x128x128xf32> to vector<128x128xf32>
    %cst_23 = arith.constant dense<0.000000e+00> : vector<256x128xf32>
    %51 = tpu.matmul %48, %50, %cst_23 {dimension_numbers = #tpu.dot_dimension_numbers<[1], [0], [0], [1], [0, 0, 1, 1], [], []>} : vector<256x128xf32>, vector<128x128xf32>, vector<256x128xf32> -> vector<256x128xf32>
    %52 = arith.addf %46, %51 : vector<256x128xf32>
    %53 = vector.extract_strided_slice %33 {offsets = [1, 0, 0], sizes = [16, 16, 128], strides = [1, 1, 1]} : vector<18x18x128xf32> to vector<16x16x128xf32>
    %54 = vector.shape_cast %53 : vector<16x16x128xf32> to vector<256x128xf32>
    %c1_24 = arith.constant 1 : index
    %c0_25 = arith.constant 0 : index
    %c0_26 = arith.constant 0 : index
    %c0_27 = arith.constant 0 : index
    %55 = vector.load %arg3[%c1_24, %c0_25, %c0_26, %c0_27] : memref<3x3x128x128xf32, #tpu.memory_space<vmem>>, vector<1x1x128x128xf32>
    %56 = vector.shape_cast %55 : vector<1x1x128x128xf32> to vector<128x128xf32>
    %cst_28 = arith.constant dense<0.000000e+00> : vector<256x128xf32>
    %57 = tpu.matmul %54, %56, %cst_28 {dimension_numbers = #tpu.dot_dimension_numbers<[1], [0], [0], [1], [0, 0, 1, 1], [], []>} : vector<256x128xf32>, vector<128x128xf32>, vector<256x128xf32> -> vector<256x128xf32>
    %58 = arith.addf %52, %57 : vector<256x128xf32>
    %59 = vector.extract_strided_slice %33 {offsets = [1, 1, 0], sizes = [16, 16, 128], strides = [1, 1, 1]} : vector<18x18x128xf32> to vector<16x16x128xf32>
    %60 = vector.shape_cast %59 : vector<16x16x128xf32> to vector<256x128xf32>
    %c1_29 = arith.constant 1 : index
    %c1_30 = arith.constant 1 : index
    %c0_31 = arith.constant 0 : index
    %c0_32 = arith.constant 0 : index
    %61 = vector.load %arg3[%c1_29, %c1_30, %c0_31, %c0_32] : memref<3x3x128x128xf32, #tpu.memory_space<vmem>>, vector<1x1x128x128xf32>
    %62 = vector.shape_cast %61 : vector<1x1x128x128xf32> to vector<128x128xf32>
    %cst_33 = arith.constant dense<0.000000e+00> : vector<256x128xf32>
    %63 = tpu.matmul %60, %62, %cst_33 {dimension_numbers = #tpu.dot_dimension_numbers<[1], [0], [0], [1], [0, 0, 1, 1], [], []>} : vector<256x128xf32>, vector<128x128xf32>, vector<256x128xf32> -> vector<256x128xf32>
    %64 = arith.addf %58, %63 : vector<256x128xf32>
    %65 = vector.extract_strided_slice %33 {offsets = [1, 2, 0], sizes = [16, 16, 128], strides = [1, 1, 1]} : vector<18x18x128xf32> to vector<16x16x128xf32>
    %66 = vector.shape_cast %65 : vector<16x16x128xf32> to vector<256x128xf32>
    %c1_34 = arith.constant 1 : index
    %c2_35 = arith.constant 2 : index
    %c0_36 = arith.constant 0 : index
    %c0_37 = arith.constant 0 : index
    %67 = vector.load %arg3[%c1_34, %c2_35, %c0_36, %c0_37] : memref<3x3x128x128xf32, #tpu.memory_space<vmem>>, vector<1x1x128x128xf32>
    %68 = vector.shape_cast %67 : vector<1x1x128x128xf32> to vector<128x128xf32>
    %cst_38 = arith.constant dense<0.000000e+00> : vector<256x128xf32>
    %69 = tpu.matmul %66, %68, %cst_38 {dimension_numbers = #tpu.dot_dimension_numbers<[1], [0], [0], [1], [0, 0, 1, 1], [], []>} : vector<256x128xf32>, vector<128x128xf32>, vector<256x128xf32> -> vector<256x128xf32>
    %70 = arith.addf %64, %69 : vector<256x128xf32>
    %71 = vector.extract_strided_slice %33 {offsets = [2, 0, 0], sizes = [16, 16, 128], strides = [1, 1, 1]} : vector<18x18x128xf32> to vector<16x16x128xf32>
    %72 = vector.shape_cast %71 : vector<16x16x128xf32> to vector<256x128xf32>
    %c2_39 = arith.constant 2 : index
    %c0_40 = arith.constant 0 : index
    %c0_41 = arith.constant 0 : index
    %c0_42 = arith.constant 0 : index
    %73 = vector.load %arg3[%c2_39, %c0_40, %c0_41, %c0_42] : memref<3x3x128x128xf32, #tpu.memory_space<vmem>>, vector<1x1x128x128xf32>
    %74 = vector.shape_cast %73 : vector<1x1x128x128xf32> to vector<128x128xf32>
    %cst_43 = arith.constant dense<0.000000e+00> : vector<256x128xf32>
    %75 = tpu.matmul %72, %74, %cst_43 {dimension_numbers = #tpu.dot_dimension_numbers<[1], [0], [0], [1], [0, 0, 1, 1], [], []>} : vector<256x128xf32>, vector<128x128xf32>, vector<256x128xf32> -> vector<256x128xf32>
    %76 = arith.addf %70, %75 : vector<256x128xf32>
    %77 = vector.extract_strided_slice %33 {offsets = [2, 1, 0], sizes = [16, 16, 128], strides = [1, 1, 1]} : vector<18x18x128xf32> to vector<16x16x128xf32>
    %78 = vector.shape_cast %77 : vector<16x16x128xf32> to vector<256x128xf32>
    %c2_44 = arith.constant 2 : index
    %c1_45 = arith.constant 1 : index
    %c0_46 = arith.constant 0 : index
    %c0_47 = arith.constant 0 : index
    %79 = vector.load %arg3[%c2_44, %c1_45, %c0_46, %c0_47] : memref<3x3x128x128xf32, #tpu.memory_space<vmem>>, vector<1x1x128x128xf32>
    %80 = vector.shape_cast %79 : vector<1x1x128x128xf32> to vector<128x128xf32>
    %cst_48 = arith.constant dense<0.000000e+00> : vector<256x128xf32>
    %81 = tpu.matmul %78, %80, %cst_48 {dimension_numbers = #tpu.dot_dimension_numbers<[1], [0], [0], [1], [0, 0, 1, 1], [], []>} : vector<256x128xf32>, vector<128x128xf32>, vector<256x128xf32> -> vector<256x128xf32>
    %82 = arith.addf %76, %81 : vector<256x128xf32>
    %83 = vector.extract_strided_slice %33 {offsets = [2, 2, 0], sizes = [16, 16, 128], strides = [1, 1, 1]} : vector<18x18x128xf32> to vector<16x16x128xf32>
    %84 = vector.shape_cast %83 : vector<16x16x128xf32> to vector<256x128xf32>
    %c2_49 = arith.constant 2 : index
    %c2_50 = arith.constant 2 : index
    %c0_51 = arith.constant 0 : index
    %c0_52 = arith.constant 0 : index
    %85 = vector.load %arg3[%c2_49, %c2_50, %c0_51, %c0_52] : memref<3x3x128x128xf32, #tpu.memory_space<vmem>>, vector<1x1x128x128xf32>
    %86 = vector.shape_cast %85 : vector<1x1x128x128xf32> to vector<128x128xf32>
    %cst_53 = arith.constant dense<0.000000e+00> : vector<256x128xf32>
    %87 = tpu.matmul %84, %86, %cst_53 {dimension_numbers = #tpu.dot_dimension_numbers<[1], [0], [0], [1], [0, 0, 1, 1], [], []>} : vector<256x128xf32>, vector<128x128xf32>, vector<256x128xf32> -> vector<256x128xf32>
    %88 = arith.addf %82, %87 : vector<256x128xf32>
    %cst_54 = arith.constant dense<0.000000e+00> : vector<128xf32>
    %89 = vector.multi_reduction <add>, %88, %cst_54 [0] : vector<256x128xf32> to vector<128xf32>
    %90 = vector.shape_cast %89 : vector<128xf32> to vector<1x128xf32>
    %91 = arith.mulf %88, %88 : vector<256x128xf32>
    %cst_55 = arith.constant dense<0.000000e+00> : vector<128xf32>
    %92 = vector.multi_reduction <add>, %91, %cst_55 [0] : vector<256x128xf32> to vector<128xf32>
    %93 = vector.shape_cast %92 : vector<128xf32> to vector<1x128xf32>
    %94 = tpu.concatenate %90, %93 in 0 : vector<1x128xf32>, vector<1x128xf32> -> vector<2x128xf32>
    %c0_56 = arith.constant 0 : index
    %c0_57 = arith.constant 0 : index
    %c0_58 = arith.constant 0 : index
    %c0_59 = arith.constant 0 : index
    %95 = vector.load %arg7[%c0_56, %c0_57, %c0_58, %c0_59] : memref<1x1x2x128xf32, #tpu.memory_space<vmem>>, vector<1x1x2x128xf32>
    %96 = vector.shape_cast %95 : vector<1x1x2x128xf32> to vector<2x128xf32>
    %97 = vector.shape_cast %94 : vector<2x128xf32> to vector<1x1x2x128xf32>
    tpu.vector_store %arg7[%c0_56, %c0_57, %c0_58, %c0_59], %97 {strides = array<i32>} : memref<1x1x2x128xf32, #tpu.memory_space<vmem>>, vector<1x1x2x128xf32>,
    %98 = vector.shape_cast %88 : vector<256x128xf32> to vector<16x16x128xf32>
    %c0_60 = arith.constant 0 : index
    %c0_61 = arith.constant 0 : index
    %c0_62 = arith.constant 0 : index
    %c0_63 = arith.constant 0 : index
    %99 = vector.load %arg6[%c0_60, %c0_61, %c0_62, %c0_63] : memref<1x16x16x128xf32, #tpu.memory_space<vmem>>, vector<1x16x16x128xf32>
    %100 = vector.shape_cast %99 : vector<1x16x16x128xf32> to vector<16x16x128xf32>
    %101 = vector.shape_cast %98 : vector<16x16x128xf32> to vector<1x16x16x128xf32>
    tpu.vector_store %arg6[%c0_60, %c0_61, %c0_62, %c0_63], %101 {strides = array<i32>} : memref<1x16x16x128xf32, #tpu.memory_space<vmem>>, vector<1x16x16x128xf32>,
    return
  }
  func.func @transform_0(%arg0: i32, %arg1: i32) -> (i32, i32, i32, i32) {
    %c0_i32 = arith.constant 0 : i32
    %c0_i32_0 = arith.constant 0 : i32
    %c0_i32_1 = arith.constant 0 : i32
    %c0_i32_2 = arith.constant 0 : i32
    return %arg0, %c0_i32, %c0_i32_0, %c0_i32_1 : i32, i32, i32, i32
  }
  func.func @transform_1(%arg0: i32, %arg1: i32) -> (i32, i32, i32, i32) {
    %c0_i32 = arith.constant 0 : i32
    %c0_i32_0 = arith.constant 0 : i32
    %c0_i32_1 = arith.constant 0 : i32
    %c0_i32_2 = arith.constant 0 : i32
    %c0_i32_3 = arith.constant 0 : i32
    return %c0_i32, %c0_i32_0, %c0_i32_1, %c0_i32_2 : i32, i32, i32, i32
  }
  func.func @transform_2(%arg0: i32, %arg1: i32) -> (i32, i32) {
    %c0_i32 = arith.constant 0 : i32
    %c0_i32_0 = arith.constant 0 : i32
    %c0_i32_1 = arith.constant 0 : i32
    return %c0_i32, %c0_i32_0 : i32, i32
  }
  func.func @transform_3(%arg0: i32, %arg1: i32) -> (i32, i32) {
    %c0_i32 = arith.constant 0 : i32
    %c0_i32_0 = arith.constant 0 : i32
    %c0_i32_1 = arith.constant 0 : i32
    return %c0_i32, %c0_i32_0 : i32, i32
  }
  func.func @transform_4(%arg0: i32, %arg1: i32) -> (i32, i32, i32, i32) {
    %c0_i32 = arith.constant 0 : i32
    %c0_i32_0 = arith.constant 0 : i32
    %c0_i32_1 = arith.constant 0 : i32
    return %arg0, %arg1, %c0_i32, %c0_i32_0 : i32, i32, i32, i32
  }
  func.func @transform_5(%arg0: i32, %arg1: i32) -> (i32, i32, i32, i32) {
    %c0_i32 = arith.constant 0 : i32
    %c0_i32_0 = arith.constant 0 : i32
    %c0_i32_1 = arith.constant 0 : i32
    return %arg0, %arg1, %c0_i32, %c0_i32_0 : i32, i32, i32, i32
  }
}

</mosaic_0001>

<bundles_post_ra>
// kernel: _lambda_.5
= control target key start
LH: loop header
LB: loop body
LE: loop exit
PB: predicated region body
PF: predicated region fallthrough
CT: control target
= control target key end

     0   :  { %s453_s12 = smov 0   ;;  %s612_s0 = inlined_call_operand.vmem [shape: f32[512,128], index: 0, kind: input, shape index: {}]   ;;  %s613_s1 = inlined_call_operand.vmem [shape: f32[1,128], index: 1, kind: input, shape index: {}]   ;;  %s614_s2 = inlined_call_operand.vmem [shape: f32[1,128], index: 2, kind: input, shape index: {}]   ;;  %s615_s3 = inlined_call_operand.vmem [shape: f32[512,128], index: 3, kind: output, shape index: {}]  }
   0x1 LB: > { %s404_s13 = sadd.s32 4294967295, %s431_s12   ;;  %p408_p0 = scmp.ge.s32.totalorder %s431_s12, 1  ;;  %s431_s12 = sphi %s453_s12, %s13_s12  }
   0x2   : > { %p138_p1 = scmp.lt.s32.totalorder %s431_s12, 3 }
   0x4   : > { %p139_p2 = pnand %p408_p0, %p138_p1 }
   0x5   : > { %s409_s14 = sshll.u32 (!%p139_p2), %s404_s13, 5  ;;  %v464_v0 = vld [vmem:[%s613_s1] ss:$0 sm:$0xff] (!%p139_p2) }
   0x6   : > { %142 = sbr.rel (%p139_p2) target bundleno = 46 (0x2e), region = 32  ;;  %p163_p3 = scmp.lt.s32.totalorder (!%p139_p2), %s409_s14, 63  ;;  %v474_v1 = vld [vmem:[%s614_s2] ss:$0 sm:$0xff] (!%p139_p2) }
   0xd   : > { %s617_s14 = smov (!%p163_p3, %s409_s14), 63 }
   0xe   : > { %s410_s15 = sshll.u32 %s617_s14, 3 }
   0xf   : > { %s469_s20 = scalar_lea.vmem %s612_s0, %s410_s15  ;;  %s497_s25 = scalar_lea.vmem %s615_s3, %s410_s15 }
  0x10   : > { %v174_v2 = vld [vmem:[%s469_s20] sm:$0xff]  ;;  %v175_v3 = vld [vmem:[%s469_s20 + $0x8] sm:$0xff]  ;;  %v176_v4 = vld [vmem:[%s469_s20 + $0x10] sm:$0xff] }
  0x11   : > { %v213_v5 = vmul.f32 %v464_v0, %v174_v2  ;;  %v214_v6 = vmul.f32 %v464_v0, %v175_v3  ;;  %v215_v7 = vmul.f32 %v464_v0, %v176_v4  ;;  %v177_v8 = vld [vmem:[%s469_s20 + $0x18] sm:$0xff]  ;;  %v178_v9 = vld [vmem:[%s469_s20 + $0x20] sm:$0xff]  ;;  %v179_v10 = vld [vmem:[%s469_s20 + $0x28] sm:$0xff] }
  0x12   : > { %v216_v11 = vmul.f32 %v464_v0, %v177_v8  ;;  %v217_v12 = vmul.f32 %v464_v0, %v178_v9  ;;  %v218_v13 = vmul.f32 %v464_v0, %v179_v10  ;;  %v180_v14 = vld [vmem:[%s469_s20 + $0x30] sm:$0xff]  ;;  %v181_v15 = vld [vmem:[%s469_s20 + $0x38] sm:$0xff]  ;;  %v182_v24 = vld [vmem:[%s469_s20 + $0x40] sm:$0xff] }
  0x13   : > { %v252_v16 = vadd.f32 %v474_v1, %v213_v5  ;;  %v253_v17 = vadd.f32 %v474_v1, %v214_v6  ;;  %v254_v18 = vadd.f32 %v474_v1, %v215_v7  ;;  %v219_v19 = vmul.f32 %v464_v0, %v180_v14  ;;  %v183_v25 = vld [vmem:[%s469_s20 + $0x48] sm:$0xff]  ;;  %v184_v26 = vld [vmem:[%s469_s20 + $0x50] sm:$0xff]  ;;  %v185_v31 = vld [vmem:[%s469_s20 + $0x58] sm:$0xff] }
  0x14   : > { %v255_v20 = vadd.f32 %v474_v1, %v216_v11  ;;  %v256_v21 = vadd.f32 %v474_v1, %v217_v12  ;;  %v257_v22 = vadd.f32 %v474_v1, %v218_v13  ;;  %v220_v23 = vmul.f32 %v464_v0, %v181_v15  ;;  %v186_v32 = vld [vmem:[%s469_s20 + $0x60] sm:$0xff]  ;;  %v187_v33 = vld [vmem:[%s469_s20 + $0x68] sm:$0xff]  ;;  %v188_v38 = vld [vmem:[%s469_s20 + $0x70] sm:$0xff] }
  0x15   : > { %v284_v27 = vmax.f32 %v252_v16, 0.0  ;;  %v285_v28 = vmax.f32 %v253_v17, 0.0  ;;  %v286_v29 = vmax.f32 %v254_v18, 0.0  ;;  %v258_v30 = vadd.f32 %v474_v1, %v219_v19  ;;  %v189_v43 = vld [vmem:[%s469_s20 + $0x78] sm:$0xff]  ;;  %v190_v56 = vld [vmem:[%s469_s20 + $0x80] sm:$0xff]  ;;  %v191_v57 = vld [vmem:[%s469_s20 + $0x88] sm:$0xff] }
  0x16   : > { %v287_v34 = vmax.f32 %v255_v20, 0.0  ;;  %v288_v35 = vmax.f32 %v256_v21, 0.0  ;;  %v289_v36 = vmax.f32 %v257_v22, 0.0  ;;  %v259_v37 = vadd.f32 %v474_v1, %v220_v23  ;;  %v192_v58 = vld [vmem:[%s469_s20 + $0x90] sm:$0xff]  ;;  %v193_v63 = vld [vmem:[%s469_s20 + $0x98] sm:$0xff]  ;;  %v194_v2 = vld [vmem:[%s469_s20 + $0xa0] sm:$0xff] }
  0x17   : > { %316 = vst [vmem:[%s497_s25] sm:$0xff] %v284_v27  ;;  %317 = vst [vmem:[%s497_s25 + $0x8] sm:$0xff] %v285_v28  ;;  %v290_v39 = vmax.f32 %v258_v30, 0.0  ;;  %v221_v40 = vmul.f32 %v464_v0, %v182_v24  ;;  %v222_v41 = vmul.f32 %v464_v0, %v183_v25  ;;  %v223_v42 = vmul.f32 %v464_v0, %v184_v26  ;;  %v195_v3 = vld [vmem:[%s469_s20 + $0xa8] sm:$0xff]  ;;  %v196_v8 = vld [vmem:[%s469_s20 + $0xb0] sm:$0xff] }
  0x18   : > { %318 = vst [vmem:[%s497_s25 + $0x10] sm:$0xff] %v286_v29  ;;  %319 = vst [vmem:[%s497_s25 + $0x18] sm:$0xff] %v287_v34  ;;  %v291_v44 = vmax.f32 %v259_v37, 0.0  ;;  %v224_v45 = vmul.f32 %v464_v0, %v185_v31  ;;  %v225_v46 = vmul.f32 %v464_v0, %v186_v32  ;;  %v226_v47 = vmul.f32 %v464_v0, %v187_v33  ;;  %v197_v13 = vld [vmem:[%s469_s20 + $0xb8] sm:$0xff]  ;;  %v198_v26 = vld [vmem:[%s469_s20 + $0xc0] sm:$0xff] }
  0x19   : > { %320 = vst [vmem:[%s497_s25 + $0x20] sm:$0xff] %v288_v35  ;;  %321 = vst [vmem:[%s497_s25 + $0x28] sm:$0xff] %v289_v36  ;;  %v260_v48 = vadd.f32 %v474_v1, %v221_v40  ;;  %v261_v49 = vadd.f32 %v474_v1, %v222_v41  ;;  %v262_v50 = vadd.f32 %v474_v1, %v223_v42  ;;  %v199_v27 = vld [vmem:[%s469_s20 + $0xc8] sm:$0xff]  ;;  %v200_v28 = vld [vmem:[%s469_s20 + $0xd0] sm:$0xff] }
  0x1a   : > { %322 = vst [vmem:[%s497_s25 + $0x30] sm:$0xff] %v290_v39  ;;  %v227_v51 = vmul.f32 %v464_v0, %v188_v38  ;;  %323 = vst [vmem:[%s497_s25 + $0x38] sm:$0xff] %v291_v44  ;;  %v263_v52 = vadd.f32 %v474_v1, %v224_v45  ;;  %v264_v53 = vadd.f32 %v474_v1, %v225_v46  ;;  %v201_v33 = vld [vmem:[%s469_s20 + $0xd8] sm:$0xff]  ;;  %v202_v34 = vld [vmem:[%s469_s20 + $0xe0] sm:$0xff] }
  0x1b   : > { %v265_v54 = vadd.f32 %v474_v1, %v226_v47  ;;  %v228_v55 = vmul.f32 %v464_v0, %v189_v43  ;;  %v292_v59 = vmax.f32 %v260_v48, 0.0  ;;  %v293_v60 = vmax.f32 %v261_v49, 0.0  ;;  %v203_v35 = vld [vmem:[%s469_s20 + $0xe8] sm:$0xff]  ;;  %v204_v40 = vld [vmem:[%s469_s20 + $0xf0] sm:$0xff]  ;;  %v205_v45 = vld [vmem:[%s469_s20 + $0xf8] sm:$0xff] }
  0x1c   : > { %v294_v61 = vmax.f32 %v262_v50, 0.0  ;;  %v266_v62 = vadd.f32 %v474_v1, %v227_v51  ;;  %v295_v4 = vmax.f32 %v263_v52, 0.0  ;;  %v296_v5 = vmax.f32 %v264_v53, 0.0 }
  0x1d   : > { %v297_v6 = vmax.f32 %v265_v54, 0.0  ;;  %v267_v7 = vadd.f32 %v474_v1, %v228_v55  ;;  %324 = vst [vmem:[%s497_s25 + $0x40] sm:$0xff] %v292_v59  ;;  %325 = vst [vmem:[%s497_s25 + $0x48] sm:$0xff] %v293_v60  ;;  %v229_v10 = vmul.f32 %v464_v0, %v190_v56  ;;  %v230_v11 = vmul.f32 %v464_v0, %v191_v57 }
  0x1e   : > { %326 = vst [vmem:[%s497_s25 + $0x50] sm:$0xff] %v294_v61  ;;  %v298_v9 = vmax.f32 %v266_v62, 0.0  ;;  %v231_v12 = vmul.f32 %v464_v0, %v192_v58  ;;  %327 = vst [vmem:[%s497_s25 + $0x58] sm:$0xff] %v295_v4  ;;  %v232_v15 = vmul.f32 %v464_v0, %v193_v63  ;;  %v233_v16 = vmul.f32 %v464_v0, %v194_v2 }
  0x1f   : > { %328 = vst [vmem:[%s497_s25 + $0x60] sm:$0xff] %v296_v5  ;;  %329 = vst [vmem:[%s497_s25 + $0x68] sm:$0xff] %v297_v6  ;;  %v299_v14 = vmax.f32 %v267_v7, 0.0  ;;  %v234_v17 = vmul.f32 %v464_v0, %v195_v3  ;;  %v268_v18 = vadd.f32 %v474_v1, %v229_v10  ;;  %v269_v19 = vadd.f32 %v474_v1, %v230_v11 }
  0x20   : > { %330 = vst [vmem:[%s497_s25 + $0x70] sm:$0xff] %v298_v9  ;;  %v270_v20 = vadd.f32 %v474_v1, %v231_v12  ;;  %v235_v21 = vmul.f32 %v464_v0, %v196_v8  ;;  %v271_v22 = vadd.f32 %v474_v1, %v232_v15  ;;  %v272_v23 = vadd.f32 %v474_v1, %v233_v16 }
  0x21   : > { %331 = vst [vmem:[%s497_s25 + $0x78] sm:$0xff] %v299_v14  ;;  %v273_v24 = vadd.f32 %v474_v1, %v234_v17  ;;  %v236_v25 = vmul.f32 %v464_v0, %v197_v13  ;;  %v300_v29 = vmax.f32 %v268_v18, 0.0  ;;  %v301_v30 = vmax.f32 %v269_v19, 0.0 }
  0x22   : > { %v302_v31 = vmax.f32 %v270_v20, 0.0  ;;  %v274_v32 = vadd.f32 %v474_v1, %v235_v21  ;;  %v303_v36 = vmax.f32 %v271_v22, 0.0  ;;  %v304_v37 = vmax.f32 %v272_v23, 0.0 }
  0x23   : > { %v305_v38 = vmax.f32 %v273_v24, 0.0  ;;  %v275_v39 = vadd.f32 %v474_v1, %v236_v25  ;;  %332 = vst [vmem:[%s497_s25 + $0x80] sm:$0xff] %v300_v29  ;;  %333 = vst [vmem:[%s497_s25 + $0x88] sm:$0xff] %v301_v30  ;;  %v237_v42 = vmul.f32 %v464_v0, %v198_v26  ;;  %v238_v43 = vmul.f32 %v464_v0, %v199_v27 }
  0x24   : > { %334 = vst [vmem:[%s497_s25 + $0x90] sm:$0xff] %v302_v31  ;;  %v306_v41 = vmax.f32 %v274_v32, 0.0  ;;  %v239_v44 = vmul.f32 %v464_v0, %v200_v28  ;;  %335 = vst [vmem:[%s497_s25 + $0x98] sm:$0xff] %v303_v36  ;;  %v240_v47 = vmul.f32 %v464_v0, %v201_v33  ;;  %v241_v48 = vmul.f32 %v464_v0, %v202_v34 }
  0x25   : > { %336 = vst [vmem:[%s497_s25 + $0xa0] sm:$0xff] %v304_v37  ;;  %337 = vst [vmem:[%s497_s25 + $0xa8] sm:$0xff] %v305_v38  ;;  %v307_v46 = vmax.f32 %v275_v39, 0.0  ;;  %v242_v49 = vmul.f32 %v464_v0, %v203_v35  ;;  %v276_v50 = vadd.f32 %v474_v1, %v237_v42  ;;  %v277_v51 = vadd.f32 %v474_v1, %v238_v43 }
  0x26   : > { %338 = vst [vmem:[%s497_s25 + $0xb0] sm:$0xff] %v306_v41  ;;  %v278_v52 = vadd.f32 %v474_v1, %v239_v44  ;;  %v243_v53 = vmul.f32 %v464_v0, %v204_v40  ;;  %v279_v54 = vadd.f32 %v474_v1, %v240_v47  ;;  %v280_v55 = vadd.f32 %v474_v1, %v241_v48 }
  0x27   : > { %339 = vst [vmem:[%s497_s25 + $0xb8] sm:$0xff] %v307_v46  ;;  %v281_v56 = vadd.f32 %v474_v1, %v242_v49  ;;  %v244_v57 = vmul.f32 %v464_v0, %v205_v45  ;;  %v308_v58 = vmax.f32 %v276_v50, 0.0  ;;  %v309_v59 = vmax.f32 %v277_v51, 0.0 }
  0x28   : > { %v310_v60 = vmax.f32 %v278_v52, 0.0  ;;  %v282_v61 = vadd.f32 %v474_v1, %v243_v53  ;;  %v311_v62 = vmax.f32 %v279_v54, 0.0  ;;  %v312_v63 = vmax.f32 %v280_v55, 0.0 }
  0x29   : > { %v313_v2 = vmax.f32 %v281_v56, 0.0  ;;  %v283_v3 = vadd.f32 %v474_v1, %v244_v57  ;;  %340 = vst [vmem:[%s497_s25 + $0xc0] sm:$0xff] %v308_v58  ;;  %341 = vst [vmem:[%s497_s25 + $0xc8] sm:$0xff] %v309_v59 }
  0x2a   : > { %342 = vst [vmem:[%s497_s25 + $0xd0] sm:$0xff] %v310_v60  ;;  %v314_v4 = vmax.f32 %v282_v61, 0.0  ;;  %343 = vst [vmem:[%s497_s25 + $0xd8] sm:$0xff] %v311_v62 }
  0x2b   : > { %344 = vst [vmem:[%s497_s25 + $0xe0] sm:$0xff] %v312_v63  ;;  %345 = vst [vmem:[%s497_s25 + $0xe8] sm:$0xff] %v313_v2  ;;  %v315_v0 = vmax.f32 %v283_v3, 0.0 }
  0x2c   : > { %346 = vst [vmem:[%s497_s25 + $0xf0] sm:$0xff] %v314_v4 }
  0x2d   : > { %347 = vst [vmem:[%s497_s25 + $0xf8] sm:$0xff] %v315_v0 }
  0x2e PF: > { %s13_s12 = sadd.s32 1, %s431_s12  }
  0x2f   : > { %p10_p4 = scmp.ge.s32.totalorder %s13_s12, 4  }
  0x31   :  { %12 = sbr.rel (!%p10_p4) target bundleno = 1 (0x1), region = 62 }

// kernel: _lambda_.3
= control target key start
LH: loop header
LB: loop body
LE: loop exit
PB: predicated region body
PF: predicated region fallthrough
CT: control target
= control target key end

     0   :  { %s5264_s18 = smov 0   ;;  %s5266_s19 = smov 0   ;;  %s6606_s0 = inlined_call_operand.vmem [shape: f32[2,18,18,128], index: 0, kind: input, shape index: {}]   ;;  %s6607_s1 = inlined_call_operand.vmem [shape: f32[3,3,128,128], index: 1, kind: input, shape index: {}]   ;;  %s6608_s2 = inlined_call_operand.vmem [shape: f32[1,128], index: 2, kind: input, shape index: {}, may-alias: {2,3}]   ;;  %s6609_s3 = inlined_call_operand.vmem [shape: f32[1,128], index: 3, kind: input, shape index: {}, may-alias: {2,3}]   ;;  %s6610_s4 = inlined_call_operand.vmem [shape: f32[2,16,16,128], index: 4, kind: output, shape index: {0}]   ;;  %s6611_s5 = inlined_call_operand.vmem [shape: f32[2,1,2,128], index: 5, kind: output, shape index: {1}]  }
   0x1   :  { %s5268_s20 = smov 0  }
   0x2 LB: > { %s28_s2 = sadd.s32 1, %s5228_s19  ;;  %p3310_p0 = scmp.ge.s32.totalorder %s5232_s20, 1  ;;  %s5232_s20 = sphi %s5268_s20, %s16_s20   ;;  %s5228_s19 = sphi %s5266_s19, %s6794_s19   ;;  %s5224_s18 = sphi %s5264_s18, %s6793_s18  }
   0x3   : > { %p30_p1 = scmp.ge.s32.totalorder %s28_s2, 2  ;;  %p206_p2 = scmp.lt.s32.totalorder %s5232_s20, 3 }
   0x5   : > { %s6796_s2 = smov (%p30_p1, %s28_s2), 0  ;;  %p207_p3 = pnand %p3310_p0, %p206_p2 }
   0x7   : > { %210 = sbr.rel (%p207_p3) target bundleno = 569 (0x239), region = 36 }
   0xe   : > { %v3315_v0 = vld [vmem:[%s6607_s1 + $0x80] sm:$0xff]  ;;  %v3316_v1 = vld [vmem:[%s6607_s1 + $0x88] sm:$0xff]  ;;  %p246_p4 = scmp.lt.s32.totalorder %s5224_s18, 1  ;;  %v3317_v5 = vld [vmem:[%s6607_s1 + $0x90] sm:$0xff]  ;;  %vm390_vm0 = vcmask 1046528   ;;  %vm970_vm1 = vcmask 1045504  }
   0xf   : > { %v3363_v2 = vld [vmem:[%s6607_s1 + $0x200] sm:$0xff]  ;;  %v4598_v3 = vpack.c.bf16 %v3316_v1, %v3315_v0  ;;  %v3364_v4 = vld [vmem:[%s6607_s1 + $0x208] sm:$0xff]  ;;  %v3318_v6 = vld [vmem:[%s6607_s1 + $0x98] sm:$0xff]  ;;  %vm3141_vm2 = vcmask 1040384  }
  0x10   : > { %v5300_v7 = vpack.c.bf16 %v3364_v4, %v3363_v2  ;;  %v4602_v8 = vpack.c.bf16 %v3318_v6, %v3317_v5  ;;  %v3365_v9 = vld [vmem:[%s6607_s1 + $0x210] sm:$0xff]  ;;  %v3366_v10 = vld [vmem:[%s6607_s1 + $0x218] sm:$0xff]  ;;  %v3319_v11 = vld [vmem:[%s6607_s1 + $0xa0] sm:$0xff]  ;;  %s6798_s18 = smov (!%p246_p4, %s5224_s18), 1 }
  0x11   : > { %4599 = vmatprep.subr.bf16.mxu1 %v4598_v3  ;;  %v5313_v12 = vpack.c.bf16 %v3366_v10, %v3365_v9  ;;  %v3320_v13 = vld [vmem:[%s6607_s1 + $0xa8] sm:$0xff]  ;;  %v3367_v14 = vld [vmem:[%s6607_s1 + $0x220] sm:$0xff]  ;;  %s5158_s21 = smul.u32 432, %s6798_s18  ;;  %v3321_v18 = vld [vmem:[%s6607_s1 + $0xb0] sm:$0xff]  ;;  %s3314_s27 = sshll.u32 %s6798_s18, 1 }
  0x12   : > { %6694 = vst [vmem:[#allocation2_spill] sm:$0xff] %v5300_v7  ;;  %v3368_v15 = vld [vmem:[%s6607_s1 + $0x228] sm:$0xff]  ;;  %4727 = vmatprep.subr.bf16.mxu0 %v5300_v7  ;;  %4601 = vmatpush3.bf16.msra.mxu1 %v4598_v3  ;;  %v4606_v16 = vpack.c.bf16 %v3320_v13, %v3319_v11  ;;  %v3322_v19 = vld [vmem:[%s6607_s1 + $0xb8] sm:$0xff]  ;;  %v3369_v20 = vld [vmem:[%s6607_s1 + $0x230] sm:$0xff]  ;;  %s268_s30 = scalar_lea.vmem %s6611_s5, %s3314_s27 }
  0x13   : > { %6695 = vst [vmem:[#allocation3_spill] sm:$0xff] %v5313_v12  ;;  %4729 = vmatpush3.bf16.msra.mxu0 %v5300_v7  ;;  %4603 = vmatprep.subr.bf16.mxu1 %v4602_v8  ;;  %v5328_v17 = vpack.c.bf16 %v3368_v15, %v3367_v14  ;;  %v3370_v21 = vld [vmem:[%s6607_s1 + $0x238] sm:$0xff]  ;;  %s5345_s7 = scalar_lea.vmem %s6606_s0, %s5158_s21  ;;  %v4610_v22 = vpack.c.bf16 %v3322_v19, %v3321_v18  ;;  %v3323_v23 = vld [vmem:[%s6607_s1 + $0xc0] sm:$0xff]  ;;  %v3324_v24 = vld [vmem:[%s6607_s1 + $0xc8] sm:$0xff] }
  0x14   : > { %4731 = vmatprep.subr.bf16.mxu0 %v5313_v12  ;;  %v5355_v25 = vpack.c.bf16 %v3370_v21, %v3369_v20  ;;  %v3371_v26 = vld [vmem:[%s6607_s1 + $0x240] sm:$0xff]  ;;  %v3372_v27 = vld [vmem:[%s6607_s1 + $0x248] sm:$0xff]  ;;  %v5371_v31 = vld [vmem:[%s5345_s7 + $0x18] sm:$0xff]  ;;  %v4614_v36 = vpack.c.bf16 %v3324_v24, %v3323_v23 }
  0x15   : > { %6696 = vst [vmem:[#allocation4_spill] sm:$0xff] %v5328_v17  ;;  %v5364_v28 = vld [vmem:[%s5345_s7] sm:$0xff]  ;;  %v5367_v29 = vld [vmem:[%s5345_s7 + $0x8] sm:$0xff]  ;;  %v396_v34 = vrot.slane %v5371_v31, 1  ;;  %v5381_v37 = vpack.c.bf16 %v3372_v27, %v3371_v26  ;;  %v3325_v38 = vld [vmem:[%s6607_s1 + $0xd0] sm:$0xff] }
  0x16   : > { %4605 = vmatpush3.bf16.msra.mxu1 %v4602_v8  ;;  %6697 = vst [vmem:[#allocation5_spill] sm:$0xff] %v5355_v25  ;;  %v391_v30 = vrot.slane %v5364_v28, 1  ;;  %v5374_v32 = vld [vmem:[%s5345_s7 + $0x20] sm:$0xff]  ;;  %v392_v33 = vrot.slane %v5367_v29, 1  ;;  %v3326_v39 = vld [vmem:[%s6607_s1 + $0xd8] sm:$0xff]  ;;  %v3373_v42 = vld [vmem:[%s6607_s1 + $0x250] sm:$0xff] }
  0x17   : > { %4733 = vmatpush3.bf16.msra.mxu0 %v5313_v12  ;;  %4607 = vmatprep.subr.bf16.mxu1 %v4606_v16  ;;  %v397_v35 = vrot.slane %v5374_v32, 1  ;;  %6698 = vst [vmem:[#allocation6_spill] sm:$0xff] %v5381_v37  ;;  %v3374_v43 = vld [vmem:[%s6607_s1 + $0x258] sm:$0xff]  ;;  %v4618_v44 = vpack.c.bf16 %v3326_v39, %v3325_v38  ;;  %v3327_v46 = vld [vmem:[%s6607_s1 + $0xe0] sm:$0xff]  ;;  %v3328_v47 = vld [vmem:[%s6607_s1 + $0xe8] sm:$0xff] }
  0x18   : > { %4735 = vmatprep.subr.bf16.mxu0 %v5328_v17  ;;  %v393_v40 = vsel %vm390_vm0, %v391_v30, %v392_v33  ;;  %v5406_v45 = vpack.c.bf16 %v3374_v43, %v3373_v42  ;;  %v3375_v48 = vld [vmem:[%s6607_s1 + $0x260] sm:$0xff]  ;;  %v3376_v49 = vld [vmem:[%s6607_s1 + $0x268] sm:$0xff]  ;;  %v4622_v50 = vpack.c.bf16 %v3328_v47, %v3327_v46  ;;  %v3329_v52 = vld [vmem:[%s6607_s1 + $0xf0] sm:$0xff] }
  0x19   : > { %v5395_v41 = vsel %vm390_vm0, %v396_v34, %v397_v35  ;;  %3910 = vmatprep.mubr.f32.mxu1 %v393_v40  ;;  %v5422_v51 = vpack.c.bf16 %v3376_v49, %v3375_v48  ;;  %v3330_v53 = vld [vmem:[%s6607_s1 + $0xf8] sm:$0xff]  ;;  %v3377_v54 = vld [vmem:[%s6607_s1 + $0x270] sm:$0xff]  ;;  %v326_v59 = vld [vmem:[%s6607_s1] sm:$0xff] }
  0x1a   : > { %4609 = vmatpush3.bf16.msra.mxu1 %v4606_v16  ;;  %4230 = vmatprep.mubr.f32.mxu0 %v5395_v41  ;;  %6699 = vst [vmem:[#allocation7_spill] sm:$0xff] %v5406_v45  ;;  %v3378_v55 = vld [vmem:[%s6607_s1 + $0x278] sm:$0xff]  ;;  %v4626_v56 = vpack.c.bf16 %v3330_v53, %v3329_v52  ;;  %v274_v57 = vld [vmem:[%s5345_s7 + $0x10] sm:$0x3]  ;;  %v327_v60 = vld [vmem:[%s6607_s1 + $0x8] sm:$0xff] }
  0x1b   : > { %4737 = vmatpush3.bf16.msra.mxu0 %v5328_v17  ;;  %4611 = vmatprep.subr.bf16.mxu1 %v4610_v22  ;;  %6700 = vst [vmem:[#allocation8_spill] sm:$0xff] %v5422_v51  ;;  %v5439_v58 = vpack.c.bf16 %v3378_v55, %v3377_v54  ;;  %v5448_v61 = vld [vmem:[%s5345_s7 + $0x28] sm:$0x3]  ;;  %v3379_v62 = vld [vmem:[%s6607_s1 + $0x280] sm:$0xff]  ;;  %v394_v0 = vrot.slane %v274_v57, 1  ;;  %v5457_v1 = vld [vmem:[%s5345_s7 + $0x30] sm:$0xff]  ;;  %v4630_v3 = vpack.c.bf16 %v327_v60, %v326_v59 }
  0x1c   : > { %4739 = vmatprep.subr.bf16.mxu0 %v5355_v25  ;;  %v3380_v63 = vld [vmem:[%s6607_s1 + $0x288] sm:$0xff]  ;;  %v5460_v2 = vld [vmem:[%s5345_s7 + $0x38] sm:$0xff]  ;;  %v399_v4 = vrot.slane %v5448_v61, 1  ;;  %v5466_v6 = vld [vmem:[%s5345_s7 + $0x40] sm:$0x3]  ;;  %v401_v9 = vrot.slane %v5457_v1, 1 }
  0x1d   : > { %6701 = vst [vmem:[#allocation9_spill] sm:$0xff] %v5439_v58  ;;  %v4758_v5 = vpack.c.bf16 %v3380_v63, %v3379_v62  ;;  %v3381_v8 = vld [vmem:[%s6607_s1 + $0x290] sm:$0xff]  ;;  %v402_v10 = vrot.slane %v5460_v2, 1  ;;  %v3382_v11 = vld [vmem:[%s6607_s1 + $0x298] sm:$0xff]  ;;  %v5477_v13 = vld [vmem:[%s5345_s7 + $0x48] sm:$0xff]  ;;  %v395_v15 = vsel %vm390_vm0, %v392_v33, %v394_v0  ;;  %v404_v20 = vrot.slane %v5466_v6, 1 }
  0x1e   : > { %4613 = vmatpush3.bf16.msra.mxu1 %v4610_v22  ;;  %v5480_v14 = vld [vmem:[%s5345_s7 + $0x50] sm:$0xff]  ;;  %v329_v18 = vld [vmem:[%s6607_s1 + $0x18] sm:$0xff]  ;;  %v400_v19 = vsel %vm390_vm0, %v397_v35, %v399_v4  ;;  %v4762_v21 = vpack.c.bf16 %v3382_v11, %v3381_v8  ;;  %v406_v22 = vrot.slane %v5477_v13, 1  ;;  %v3383_v26 = vld [vmem:[%s6607_s1 + $0x2a0] sm:$0xff] }
  0x1f   : > { %4741 = vmatpush3.bf16.msra.mxu0 %v5355_v25  ;;  %4615 = vmatprep.subr.bf16.mxu1 %v4614_v36  ;;  %v328_v16 = vld [vmem:[%s6607_s1 + $0x10] sm:$0xff]  ;;  %v407_v23 = vrot.slane %v5480_v14, 1  ;;  %v5499_v24 = vld [vmem:[%s5345_s7 + $0x58] sm:$0x3]  ;;  %v5505_v27 = vsel %vm390_vm0, %v401_v9, %v402_v10  ;;  %v3384_v33 = vld [vmem:[%s6607_s1 + $0x2a8] sm:$0xff]  ;;  %v5524_v39 = vsel %vm390_vm0, %v402_v10, %v404_v20  ;;  %v981_v25 = vrot.slane %v5457_v1, 2 }
  0x20   : > { %4743 = vmatprep.subr.bf16.mxu0 %v5381_v37  ;;  %6702 = vst [vmem:[#allocation10_spill] sm:$0xff] %v5505_v27  ;;  %v4634_v30 = vpack.c.bf16 %v329_v18, %v328_v16  ;;  %v5511_v34 = vld [vmem:[%s5345_s7 + $0x60] sm:$0xff]  ;;  %v5514_v35 = vld [vmem:[%s5345_s7 + $0x68] sm:$0xff]  ;;  %6703 = vst [vmem:[#allocation11_spill] sm:$0xff] %v5524_v39  ;;  %v409_v40 = vrot.slane %v5499_v24, 1  ;;  %v4766_v43 = vpack.c.bf16 %v3384_v33, %v3383_v26 }
  0x21   : > { %v331_v38 = vld [vmem:[%s6607_s1 + $0x28] sm:$0xff]  ;;  %v5529_v42 = vsel %vm390_vm0, %v406_v22, %v407_v23  ;;  %v412_v46 = vrot.slane %v5514_v35, 1  ;;  %v5534_v47 = vld [vmem:[%s5345_s7 + $0x70] sm:$0x3]  ;;  %v3386_v48 = vld [vmem:[%s6607_s1 + $0x2b8] sm:$0xff] }
  0x22   : > { %4617 = vmatpush3.bf16.msra.mxu1 %v4614_v36  ;;  %v330_v36 = vld [vmem:[%s6607_s1 + $0x20] sm:$0xff]  ;;  %6704 = vst [vmem:[#allocation12_spill] sm:$0xff] %v5529_v42  ;;  %v5543_v49 = vld [vmem:[%s5345_s7 + $0x78] sm:$0xff]  ;;  %v332_v53 = vld [vmem:[%s6607_s1 + $0x30] sm:$0xff]  ;;  %v5558_v55 = vsel %vm390_vm0, %v407_v23, %v409_v40 }
  0x23   : > { %4745 = vmatpush3.bf16.msra.mxu0 %v5381_v37  ;;  %4619 = vmatprep.subr.bf16.mxu1 %v4618_v44  ;;  %v4638_v52 = vpack.c.bf16 %v331_v38, %v330_v36  ;;  %v333_v54 = vld [vmem:[%s6607_s1 + $0x38] sm:$0xff]  ;;  %6705 = vst [vmem:[#allocation13_spill] sm:$0xff] %v5558_v55  ;;  %v416_v60 = vrot.slane %v5543_v49, 1  ;;  %v5567_v63 = vld [vmem:[%s5345_s7 + $0x88] sm:$0x3]  ;;  %v3387_v0 = vld [vmem:[%s6607_s1 + $0x2c0] sm:$0xff] }
  0x24   : > { %4747 = vmatprep.subr.bf16.mxu0 %v5406_v45  ;;  %v5577_v4 = vld [vmem:[%s5345_s7 + $0x90] sm:$0xff]  ;;  %v4642_v8 = vpack.c.bf16 %v333_v54, %v332_v53  ;;  %v334_v9 = vld [vmem:[%s6607_s1 + $0x40] sm:$0xff]  ;;  %v335_v10 = vld [vmem:[%s6607_s1 + $0x48] sm:$0xff] }
  0x25   : > { %v3389_v22 = vld [vmem:[%s6607_s1 + $0x2d0] sm:$0xff]  ;;  %v3390_v23 = vld [vmem:[%s6607_s1 + $0x2d8] sm:$0xff]  ;;  %v5611_v26 = vld [vmem:[%s5345_s7 + $0xa8] sm:$0xff]  ;;  %v4646_v33 = vpack.c.bf16 %v335_v10, %v334_v9 }
  0x26   : > { %4621 = vmatpush3.bf16.msra.mxu1 %v4618_v44  ;;  %v411_v44 = vrot.slane %v5511_v34, 1  ;;  %v336_v36 = vld [vmem:[%s6607_s1 + $0x50] sm:$0xff]  ;;  %v337_v38 = vld [vmem:[%s6607_s1 + $0x58] sm:$0xff]  ;;  %v3391_v53 = vld [vmem:[%s6607_s1 + $0x2e0] sm:$0xff] }
  0x27   : > { %4749 = vmatpush3.bf16.msra.mxu0 %v5406_v45  ;;  %4623 = vmatprep.subr.bf16.mxu1 %v4622_v50  ;;  %v3392_v54 = vld [vmem:[%s6607_s1 + $0x2e8] sm:$0xff]  ;;  %v5736_v17 = vld [vmem:[%s5345_s7 + $0xf8] sm:$0xff] }
  0x28   : > { %4751 = vmatprep.subr.bf16.mxu0 %v5422_v51  ;;  %v5562_v57 = vsel %vm390_vm0, %v411_v44, %v412_v46  ;;  %v4782_v10 = vpack.c.bf16 %v3392_v54, %v3391_v53  ;;  %v976_v54 = vrot.slane %v5371_v31, 2 }
  0x29   : > { %6706 = vst [vmem:[#allocation14_spill] sm:$0xff] %v5562_v57 }
  0x2a   : > { %4625 = vmatpush3.bf16.msra.mxu1 %v4622_v50  ;;  %v5546_v50 = vld [vmem:[%s5345_s7 + $0x80] sm:$0xff] }
  0x2b   : > { %4753 = vmatpush3.bf16.msra.mxu0 %v5422_v51  ;;  %4627 = vmatprep.subr.bf16.mxu1 %v4626_v56  ;;  %v417_v62 = vrot.slane %v5546_v50, 1  ;;  %v5725_v51 = vld [vmem:[%s5345_s7 + $0xe8] sm:$0x3] }
  0x2c   : > { %4755 = vmatprep.subr.bf16.mxu0 %v5439_v58 }
  0x2d   : > { %v5596_v16 = vsel %vm390_vm0, %v416_v60, %v417_v62  ;;  %v4650_v60 = vpack.c.bf16 %v337_v38, %v336_v36  ;;  %v341_v36 = vld [vmem:[%s6607_s1 + $0x78] sm:$0xff] }
  0x2e   : > { %4629 = vmatpush3.bf16.msra.mxu1 %v4626_v56  ;;  %v414_v56 = vrot.slane %v5534_v47, 1  ;;  %6708 = vst [vmem:[#allocation16_spill] sm:$0xff] %v5596_v16 }
  0x2f   : > { %4757 = vmatpush3.bf16.msra.mxu0 %v5439_v58  ;;  %4631 = vmatprep.subr.bf16.mxu1 %v4630_v3  ;;  %v5700_v58 = vld [vmem:[%s5345_s7 + $0xe0] sm:$0xff] }
  0x30   : > { %4759 = vmatprep.subr.bf16.mxu0 %v4758_v5  ;;  %v5592_v11 = vsel %vm390_vm0, %v412_v46, %v414_v56  ;;  %v4778_v46 = vpack.c.bf16 %v3390_v23, %v3389_v22  ;;  %v5645_v56 = vld [vmem:[%s5345_s7 + $0xc0] sm:$0xff]  ;;  %v5669_v22 = vld [vmem:[%s5345_s7 + $0xd0] sm:$0x3] }
  0x31   : > { %3911 = vmatmul.mubr.f32.vlgmr.msra.gmra.mrb[0].mxu1 %v395_v15  ;;  %6707 = vst [vmem:[#allocation15_spill] sm:$0xff] %v5592_v11  ;;  %v419_v15 = vrot.slane %v5567_v63, 1 }
  0x32   : > { %4231 = vmatmul.mubr.f32.vlgmr.msra.gmra.mrb[0].mxu0 %v400_v19  ;;  %4633 = vmatpush3.bf16.msra.mxu1 %v4630_v3  ;;  %v3388_v3 = vld [vmem:[%s6607_s1 + $0x2c8] sm:$0xff] }
  0x33   : > { %4761 = vmatpush3.bf16.msra.mxu0 %v4758_v5  ;;  %3913 = vmatprep.mubr.f32.mxu1 %v5395_v41  ;;  %v3385_v41 = vld [vmem:[%s6607_s1 + $0x2b0] sm:$0xff]  ;;  %v5580_v5 = vld [vmem:[%s5345_s7 + $0x98] sm:$0xff]  ;;  %v4774_v18 = vpack.c.bf16 %v3388_v3, %v3387_v0  ;;  %v5626_v40 = vsel %vm390_vm0, %v417_v62, %v419_v15  ;;  %v338_v62 = vld [vmem:[%s6607_s1 + $0x60] sm:$0xff]  ;;  %v431_v15 = vrot.slane %v5645_v56, 1 }
  0x34   : > { %4233 = vmatprep.mubr.f32.mxu0 %v5505_v27  ;;  %4763 = vmatprep.subr.bf16.mxu0 %v4762_v21  ;;  %v4770_v59 = vpack.c.bf16 %v3386_v48, %v3385_v41  ;;  %v422_v20 = vrot.slane %v5580_v5, 1  ;;  %6709 = vst [vmem:[#allocation17_spill] sm:$0xff] %v5626_v40  ;;  %v426_v41 = vrot.slane %v5611_v26, 1  ;;  %v339_v0 = vld [vmem:[%s6607_s1 + $0x68] sm:$0xff] }
  0x35   : > { %3914 = vmatmul.mubr.f32.gmra.mrb[2].mxu1 %v400_v19  ;;  %4635 = vmatprep.subr.bf16.mxu1 %v4634_v30  ;;  %v421_v19 = vrot.slane %v5577_v4, 1  ;;  %v4654_v23 = vpack.c.bf16 %v339_v0, %v338_v62  ;;  %v977_v62 = vrot.slane %v5374_v32, 2  ;;  %v5697_v0 = vld [vmem:[%s5345_s7 + $0xd8] sm:$0xff] }
  0x36   : > { %4234 = vmatmul.mubr.f32.gmra.mrb[2].mxu0 %v5524_v39  ;;  %3916 = vmatprep.mubr.f32.mxu1 %v5505_v27  ;;  %v5873_v27 = vld [vmem:[%s5345_s7 + $0x148] sm:$0x3] }
  0x37   : > { %4765 = vmatpush3.bf16.msra.mxu0 %v4762_v21  ;;  %4236 = vmatprep.mubr.f32.mxu0 %v5529_v42  ;;  %v5601_v21 = vld [vmem:[%s5345_s7 + $0xa0] sm:$0x3]  ;;  %v5630_v44 = vsel %vm390_vm0, %v421_v19, %v422_v20  ;;  %v5728_v45 = vsel %vm970_vm1, %v976_v54, %v977_v62 }
  0x38   : > { %4767 = vmatprep.subr.bf16.mxu0 %v4766_v43  ;;  %4637 = vmatpush3.bf16.msra.mxu1 %v4634_v30  ;;  %v5614_v30 = vld [vmem:[%s5345_s7 + $0xb0] sm:$0xff]  ;;  %6710 = vst [vmem:[#allocation18_spill] sm:$0xff] %v5630_v44 }
  0x39   : > { %3917 = vmatmul.mubr.f32.gmra.mrb[4].mxu1 %v5524_v39  ;;  %4639 = vmatprep.subr.bf16.mxu1 %v4638_v52  ;;  %v427_v48 = vrot.slane %v5614_v30, 1  ;;  %v999_v39 = vrot.slane %v5567_v63, 2 }
  0x3a   : > { %4237 = vmatmul.mubr.f32.gmra.mrb[4].mxu0 %v5558_v55  ;;  %3919 = vmatprep.mubr.f32.mxu1 %v5529_v42 }
  0x3b   : > { %4769 = vmatpush3.bf16.msra.mxu0 %v4766_v43  ;;  %4239 = vmatprep.mubr.f32.mxu0 %v5562_v57  ;;  %v424_v43 = vrot.slane %v5601_v21, 1  ;;  %v5664_v9 = vsel %vm390_vm0, %v426_v41, %v427_v48 }
  0x3c   : > { %4771 = vmatprep.subr.bf16.mxu0 %v4770_v59  ;;  %4641 = vmatpush3.bf16.msra.mxu1 %v4638_v52  ;;  %v5635_v52 = vld [vmem:[%s5345_s7 + $0xb8] sm:$0x3]  ;;  %6712 = vst [vmem:[#allocation20_spill] sm:$0xff] %v5664_v9 }
  0x3d   : > { %3920 = vmatmul.mubr.f32.gmra.mrb[6].mxu1 %v5558_v55  ;;  %4643 = vmatprep.subr.bf16.mxu1 %v4642_v8  ;;  %v5660_v3 = vsel %vm390_vm0, %v422_v20, %v424_v43  ;;  %v3394_v20 = vld [vmem:[%s6607_s1 + $0x2f8] sm:$0xff]  ;;  %v434_v43 = vrot.slane %v5669_v22, 1  ;;  %v5836_v55 = vld [vmem:[%s5345_s7 + $0x130] sm:$0x3] }
  0x3e   : > { %4240 = vmatmul.mubr.f32.gmra.mrb[6].mxu0 %v5592_v11  ;;  %3922 = vmatprep.mubr.f32.mxu1 %v5562_v57  ;;  %6711 = vst [vmem:[#allocation19_spill] sm:$0xff] %v5660_v3 }
  0x3f   : > { %4773 = vmatpush3.bf16.msra.mxu0 %v4770_v59  ;;  %4242 = vmatprep.mubr.f32.mxu0 %v5596_v16  ;;  %v5648_v59 = vld [vmem:[%s5345_s7 + $0xc8] sm:$0xff] }
  0x40   : > { %4775 = vmatprep.subr.bf16.mxu0 %v4774_v18  ;;  %4645 = vmatpush3.bf16.msra.mxu1 %v4642_v8  ;;  %v429_v8 = vrot.slane %v5635_v52, 1  ;;  %v432_v19 = vrot.slane %v5648_v59, 1 }
  0x41   : > { %3923 = vmatmul.mubr.f32.gmra.mrb[8].mxu1 %v5592_v11  ;;  %4647 = vmatprep.subr.bf16.mxu1 %v4646_v33 }
  0x42   : > { %4243 = vmatmul.mubr.f32.gmra.mrb[8].mxu0 %v5626_v40  ;;  %3925 = vmatprep.mubr.f32.mxu1 %v5596_v16  ;;  %v5688_v38 = vsel %vm390_vm0, %v427_v48, %v429_v8  ;;  %v5692_v41 = vsel %vm390_vm0, %v431_v15, %v432_v19  ;;  %v3396_v48 = vld [vmem:[%s6607_s1 + $0x308] sm:$0xff] }
  0x43   : > { %4777 = vmatpush3.bf16.msra.mxu0 %v4774_v18  ;;  %4245 = vmatprep.mubr.f32.mxu0 %v5630_v44  ;;  %v3393_v18 = vld [vmem:[%s6607_s1 + $0x2f0] sm:$0xff]  ;;  %6713 = vst [vmem:[#allocation21_spill] sm:$0xff] %v5688_v38  ;;  %6714 = vst [vmem:[#allocation22_spill] sm:$0xff] %v5692_v41  ;;  %v3332_v15 = vld [vmem:[%s6607_s1 + $0x108] sm:$0xff] }
  0x44   : > { %4779 = vmatprep.subr.bf16.mxu0 %v4778_v46  ;;  %4649 = vmatpush3.bf16.msra.mxu1 %v4646_v33  ;;  %v340_v33 = vld [vmem:[%s6607_s1 + $0x70] sm:$0xff]  ;;  %v4786_v53 = vpack.c.bf16 %v3394_v20, %v3393_v18  ;;  %v979_v18 = vrot.slane %v5448_v61, 2  ;;  %v5720_v20 = vsel %vm390_vm0, %v432_v19, %v434_v43  ;;  %v982_v61 = vrot.slane %v5460_v2, 2  ;;  %v3398_v43 = vld [vmem:[%s6607_s1 + $0x318] sm:$0xff] }
  0x45   : > { %3926 = vmatmul.mubr.f32.gmra.mrb[10].mxu1 %v5626_v40  ;;  %4651 = vmatprep.subr.bf16.mxu1 %v4650_v60  ;;  %v4658_v8 = vpack.c.bf16 %v341_v36, %v340_v33  ;;  %6715 = vst [vmem:[#allocation23_spill] sm:$0xff] %v5720_v20  ;;  %v436_v33 = vrot.slane %v5697_v0, 1  ;;  %v437_v36 = vrot.slane %v5700_v58, 1  ;;  %v3397_v19 = vld [vmem:[%s6607_s1 + $0x310] sm:$0xff]  ;;  %v5799_v40 = vld [vmem:[%s5345_s7 + $0x118] sm:$0x3] }
  0x46   : > { %4246 = vmatmul.mubr.f32.gmra.mrb[10].mxu0 %v5660_v3  ;;  %3928 = vmatprep.mubr.f32.mxu1 %v5630_v44 }
  0x47   : > { %4781 = vmatpush3.bf16.msra.mxu0 %v4778_v46  ;;  %4248 = vmatprep.mubr.f32.mxu0 %v5664_v9  ;;  %v3395_v46 = vld [vmem:[%s6607_s1 + $0x300] sm:$0xff]  ;;  %v5756_v12 = vsel %vm390_vm0, %v436_v33, %v437_v36 }
  0x48   : > { %4783 = vmatprep.subr.bf16.mxu0 %v4782_v10  ;;  %4653 = vmatpush3.bf16.msra.mxu1 %v4650_v60  ;;  %v3331_v60 = vld [vmem:[%s6607_s1 + $0x100] sm:$0xff]  ;;  %v4790_v37 = vpack.c.bf16 %v3396_v48, %v3395_v46  ;;  %v984_v46 = vrot.slane %v5466_v6, 2  ;;  %v5753_v48 = vsel %vm970_vm1, %v977_v62, %v979_v18  ;;  %6716 = vst [vmem:[#allocation24_spill] sm:$0xff] %v5756_v12  ;;  %v986_v6 = vrot.slane %v5477_v13, 2  ;;  %v5769_v62 = vld [vmem:[%s5345_s7 + $0x108] sm:$0xff]  ;;  %v5772_v18 = vld [vmem:[%s5345_s7 + $0x110] sm:$0xff] }
  0x49   : > { %3929 = vmatmul.mubr.f32.gmra.mrb[12].mxu1 %v5660_v3  ;;  %4655 = vmatprep.subr.bf16.mxu1 %v4654_v23  ;;  %v5745_v54 = vpack.c.bf16 %v3332_v15, %v3331_v60  ;;  %v442_v15 = vrot.slane %v5736_v17, 1  ;;  %v3399_v33 = vld [vmem:[%s6607_s1 + $0x320] sm:$0xff]  ;;  %v989_v3 = vrot.slane %v5499_v24, 2  ;;  %v446_v44 = vrot.slane %v5769_v62, 1 }
  0x4a   : > { %4249 = vmatmul.mubr.f32.gmra.mrb[12].mxu0 %v5688_v38  ;;  %3931 = vmatprep.mubr.f32.mxu1 %v5664_v9  ;;  %v4794_v9 = vpack.c.bf16 %v3398_v43, %v3397_v19  ;;  %v5788_v19 = vsel %vm970_vm1, %v982_v61, %v984_v46  ;;  %v5810_v46 = vld [vmem:[%s5345_s7 + $0x128] sm:$0xff] }
  0x4b   : > { %4785 = vmatpush3.bf16.msra.mxu0 %v4782_v10  ;;  %4251 = vmatprep.mubr.f32.mxu0 %v5692_v41  ;;  %v5733_v10 = vld [vmem:[%s5345_s7 + $0xf0] sm:$0xff]  ;;  %6719 = vst [vmem:[#allocation27_spill] sm:$0xff] %v5788_v19 }
  0x4c   : > { %4787 = vmatprep.subr.bf16.mxu0 %v4786_v53  ;;  %4657 = vmatpush3.bf16.msra.mxu1 %v4654_v23  ;;  %v439_v23 = vrot.slane %v5725_v51, 1  ;;  %v441_v60 = vrot.slane %v5733_v10, 1 }
  0x4d   : > { %3932 = vmatmul.mubr.f32.gmra.mrb[14].mxu1 %v5688_v38  ;;  %4659 = vmatprep.subr.bf16.mxu1 %v4658_v8  ;;  %v5761_v38 = vld [vmem:[%s5345_s7 + $0x100] sm:$0x3] }
  0x4e   : > { %4252 = vmatmul.mubr.f32.gmra.mrb[14].mxu0 %v5720_v20  ;;  %3934 = vmatprep.mubr.f32.mxu1 %v5692_v41  ;;  %v5764_v41 = vsel %vm970_vm1, %v981_v25, %v982_v61  ;;  %v3400_v25 = vld [vmem:[%s6607_s1 + $0x328] sm:$0xff]  ;;  %v444_v43 = vrot.slane %v5761_v38, 1  ;;  %v991_v61 = vrot.slane %v5511_v34, 2 }
  0x4f   : > { %4789 = vmatpush3.bf16.msra.mxu0 %v4786_v53  ;;  %4310 = vmatprep.mubr.f32.mxu0 %v5728_v45  ;;  %6717 = vst [vmem:[#allocation25_spill] sm:$0xff] %v5764_v41  ;;  %v987_v53 = vrot.slane %v5480_v14, 2  ;;  %v4798_v24 = vpack.c.bf16 %v3400_v25, %v3399_v33  ;;  %v449_v33 = vrot.slane %v5799_v40, 1  ;;  %v994_v25 = vrot.slane %v5534_v47, 2 }
  0x50   : > { %4791 = vmatprep.subr.bf16.mxu0 %v4790_v37  ;;  %4661 = vmatpush3.bf16.msra.mxu1 %v4658_v8  ;;  %v5785_v8 = vsel %vm390_vm0, %v437_v36, %v439_v23  ;;  %v5807_v23 = vld [vmem:[%s5345_s7 + $0x120] sm:$0xff]  ;;  %v5822_v16 = vsel %vm390_vm0, %v442_v15, %v444_v43  ;;  %v996_v47 = vrot.slane %v5543_v49, 2  ;;  %v997_v43 = vrot.slane %v5546_v50, 2 }
  0x51   : > { %3935 = vmatmul.mubr.f32.gmra.mrb[16].mxu1 %v5720_v20  ;;  %4663 = vmatprep.subr.bf16.mxu1 %v5745_v54  ;;  %6718 = vst [vmem:[#allocation26_spill] sm:$0xff] %v5785_v8  ;;  %v5793_v20 = vsel %vm390_vm0, %v441_v60, %v442_v15  ;;  %v5802_v36 = vsel %vm970_vm1, %v986_v6, %v987_v53  ;;  %v3401_v60 = vld [vmem:[%s6607_s1 + $0x330] sm:$0xff]  ;;  %v3402_v6 = vld [vmem:[%s6607_s1 + $0x338] sm:$0xff]  ;;  %6722 = vst [vmem:[#allocation30_spill] sm:$0xff] %v5822_v16  ;;  %v451_v57 = vrot.slane %v5807_v23, 1 }
  0x52   : > { %4311 = vmatmul.mubr.f32.vlgmr.msra.gmra.mrb[0].mxu0 %v5753_v48  ;;  %3937 = vmatprep.mubr.f32.mxu1 %v5756_v12  ;;  %6720 = vst [vmem:[#allocation28_spill] sm:$0xff] %v5793_v20  ;;  %v447_v12 = vrot.slane %v5772_v18, 1  ;;  %6721 = vst [vmem:[#allocation29_spill] sm:$0xff] %v5802_v36 }
  0x53   : > { %4793 = vmatpush3.bf16.msra.mxu0 %v4790_v37  ;;  %4313 = vmatprep.mubr.f32.mxu0 %v5764_v41  ;;  %v992_v37 = vrot.slane %v5514_v35, 2 }
  0x54   : > { %4795 = vmatprep.subr.bf16.mxu0 %v4794_v9  ;;  %v5831_v11 = vsel %vm390_vm0, %v446_v44, %v447_v12  ;;  %v4802_v44 = vpack.c.bf16 %v3402_v6, %v3401_v60  ;;  %v5859_v42 = vsel %vm390_vm0, %v447_v12, %v449_v33  ;;  %v454_v6 = vrot.slane %v5836_v55, 1 }
  0x55   : > { %3938 = vmatmul.mubr.f32.gmra.mrb[18].mxu1 %v5785_v8  ;;  %v5828_v8 = vsel %vm970_vm1, %v987_v53, %v989_v3  ;;  %6724 = vst [vmem:[#allocation32_spill] sm:$0xff] %v5831_v11  ;;  %v5839_v15 = vsel %vm970_vm1, %v991_v61, %v992_v37  ;;  %v5844_v3 = vld [vmem:[%s5345_s7 + $0x138] sm:$0xff]  ;;  %v3403_v53 = vld [vmem:[%s6607_s1 + $0x340] sm:$0xff]  ;;  %v3404_v61 = vld [vmem:[%s6607_s1 + $0x348] sm:$0xff]  ;;  %v5862_v60 = vsel %vm970_vm1, %v992_v37, %v994_v25  ;;  %v1001_v37 = vrot.slane %v5577_v4, 2 }
  0x56   : > { %4314 = vmatmul.mubr.f32.gmra.mrb[2].mxu0 %v5788_v19  ;;  %3940 = vmatprep.mubr.f32.mxu1 %v5793_v20  ;;  %6723 = vst [vmem:[#allocation31_spill] sm:$0xff] %v5828_v8  ;;  %v452_v20 = vrot.slane %v5810_v46, 1  ;;  %6725 = vst [vmem:[#allocation33_spill] sm:$0xff] %v5839_v15  ;;  %v456_v7 = vrot.slane %v5844_v3, 1  ;;  %v5876_v12 = vsel %vm970_vm1, %v996_v47, %v997_v43  ;;  %v1002_v33 = vrot.slane %v5580_v5, 2  ;;  %v5881_v25 = vld [vmem:[%s5345_s7 + $0x150] sm:$0xff] }
  0x57   : > { %4316 = vmatprep.mubr.f32.mxu0 %v5802_v36  ;;  %4797 = vmatpush3.bf16.msra.mxu0 %v4794_v9  ;;  %v5847_v9 = vld [vmem:[%s5345_s7 + $0x140] sm:$0xff]  ;;  %6726 = vst [vmem:[#allocation34_spill] sm:$0xff] %v5859_v42  ;;  %6727 = vst [vmem:[#allocation35_spill] sm:$0xff] %v5862_v60  ;;  %v4806_v63 = vpack.c.bf16 %v3404_v61, %v3403_v53  ;;  %v3406_v47 = vld [vmem:[%s6607_s1 + $0x358] sm:$0xff]  ;;  %v459_v53 = vrot.slane %v5873_v27, 1  ;;  %v1004_v61 = vrot.slane %v5601_v21, 2 }
  0x58   : > { %4799 = vmatprep.subr.bf16.mxu0 %v4798_v24  ;;  %6729 = vst [vmem:[#allocation37_spill] sm:$0xff] %v5876_v12  ;;  %v1006_v21 = vrot.slane %v5611_v26, 2 }
  0x59   : > { %3941 = vmatmul.mubr.f32.gmra.mrb[20].mxu1 %v5822_v16  ;;  %v5867_v16 = vsel %vm390_vm0, %v451_v57, %v452_v20  ;;  %v5884_v57 = vld [vmem:[%s5345_s7 + $0x158] sm:$0xff]  ;;  %v5936_v19 = vsel %vm970_vm1, %v1002_v33, %v1004_v61 }
  0x5a   : > { %4317 = vmatmul.mubr.f32.gmra.mrb[4].mxu0 %v5828_v8  ;;  %3943 = vmatprep.mubr.f32.mxu1 %v5831_v11  ;;  %6728 = vst [vmem:[#allocation36_spill] sm:$0xff] %v5867_v16  ;;  %v457_v11 = vrot.slane %v5847_v9, 1  ;;  %v462_v36 = vrot.slane %v5884_v57, 1  ;;  %6734 = vst [vmem:[#allocation42_spill] sm:$0xff] %v5936_v19 }
  0x5b   : > { %4319 = vmatprep.mubr.f32.mxu0 %v5839_v15  ;;  %4801 = vmatpush3.bf16.msra.mxu0 %v4798_v24  ;;  %v3405_v24 = vld [vmem:[%s6607_s1 + $0x350] sm:$0xff]  ;;  %v5896_v15 = vsel %vm390_vm0, %v452_v20, %v454_v6  ;;  %v5913_v20 = vsel %vm970_vm1, %v1001_v37, %v1002_v33  ;;  %v1007_v6 = vrot.slane %v5614_v30, 2  ;;  %v1011_v33 = vrot.slane %v5645_v56, 2 }
  0x5c   : > { %4803 = vmatprep.subr.bf16.mxu0 %v4802_v44  ;;  %6730 = vst [vmem:[#allocation38_spill] sm:$0xff] %v5896_v15  ;;  %v5905_v8 = vsel %vm390_vm0, %v456_v7, %v457_v11  ;;  %v4810_v7 = vpack.c.bf16 %v3406_v47, %v3405_v24  ;;  %v5933_v37 = vsel %vm390_vm0, %v457_v11, %v459_v53  ;;  %v1012_v53 = vrot.slane %v5648_v59, 2 }
  0x5d   : > { %3944 = vmatmul.mubr.f32.gmra.mrb[22].mxu1 %v5859_v42  ;;  %v5902_v42 = vsel %vm970_vm1, %v997_v43, %v999_v39  ;;  %6732 = vst [vmem:[#allocation40_spill] sm:$0xff] %v5905_v8  ;;  %v5921_v39 = vld [vmem:[%s5345_s7 + $0x170] sm:$0xff]  ;;  %v3407_v43 = vld [vmem:[%s6607_s1 + $0x360] sm:$0xff]  ;;  %6733 = vst [vmem:[#allocation41_spill] sm:$0xff] %v5933_v37  ;;  %v5950_v11 = vsel %vm970_vm1, %v1006_v21, %v1007_v6 }
  0x5e   : > { %4320 = vmatmul.mubr.f32.gmra.mrb[6].mxu0 %v5862_v60  ;;  %3946 = vmatprep.mubr.f32.mxu1 %v5867_v16  ;;  %6731 = vst [vmem:[#allocation39_spill] sm:$0xff] %v5902_v42  ;;  %v461_v60 = vrot.slane %v5881_v25, 1  ;;  %v5910_v16 = vld [vmem:[%s5345_s7 + $0x160] sm:$0x3] }
  0x5f   : > { %4322 = vmatprep.mubr.f32.mxu0 %v5876_v12  ;;  %4805 = vmatpush3.bf16.msra.mxu0 %v4802_v44  ;;  %v5918_v12 = vld [vmem:[%s5345_s7 + $0x168] sm:$0xff]  ;;  %v464_v24 = vrot.slane %v5910_v16, 1 }
  0x60   : > { %4807 = vmatprep.subr.bf16.mxu0 %v4806_v63  ;;  %v3408_v44 = vld [vmem:[%s6607_s1 + $0x368] sm:$0xff]  ;;  %v5941_v47 = vsel %vm390_vm0, %v461_v60, %v462_v36  ;;  %v466_v41 = vrot.slane %v5918_v12, 1  ;;  %v3410_v60 = vld [vmem:[%s6607_s1 + $0x378] sm:$0xff] }
  0x61   : > { %3947 = vmatmul.mubr.f32.gmra.mrb[24].mxu1 %v5896_v15  ;;  %6735 = vst [vmem:[#allocation43_spill] sm:$0xff] %v5941_v47  ;;  %v1009_v15 = vrot.slane %v5635_v52, 2  ;;  %v4814_v61 = vpack.c.bf16 %v3408_v44, %v3407_v43  ;;  %v3409_v52 = vld [vmem:[%s6607_s1 + $0x370] sm:$0xff] }
  0x62   : > { %4323 = vmatmul.mubr.f32.gmra.mrb[8].mxu0 %v5902_v42  ;;  %3949 = vmatprep.mubr.f32.mxu1 %v5905_v8  ;;  %v467_v42 = vrot.slane %v5921_v39, 1  ;;  %v5947_v8 = vld [vmem:[%s5345_s7 + $0x178] sm:$0x3] }
  0x63   : > { %4325 = vmatprep.mubr.f32.mxu0 %v5913_v20  ;;  %4809 = vmatpush3.bf16.msra.mxu0 %v4806_v63  ;;  %v5964_v63 = vsel %vm390_vm0, %v462_v36, %v464_v24  ;;  %v469_v21 = vrot.slane %v5947_v8, 1  ;;  %v5969_v43 = vsel %vm970_vm1, %v1007_v6, %v1009_v15  ;;  %v1017_v36 = vrot.slane %v5700_v58, 2  ;;  %v3411_v15 = vld [vmem:[%s6607_s1 + $0x380] sm:$0xff] }
  0x64   : > { %4811 = vmatprep.subr.bf16.mxu0 %v4810_v7  ;;  %6736 = vst [vmem:[#allocation44_spill] sm:$0xff] %v5964_v63  ;;  %v5972_v44 = vsel %vm390_vm0, %v466_v41, %v467_v42  ;;  %v4818_v24 = vpack.c.bf16 %v3410_v60, %v3409_v52  ;;  %v1021_v52 = vrot.slane %v5733_v10, 2  ;;  %v1022_v60 = vrot.slane %v5736_v17, 2 }
  0x65   : > { %3950 = vmatmul.mubr.f32.gmra.mrb[26].mxu1 %v5933_v37  ;;  %6737 = vst [vmem:[#allocation45_spill] sm:$0xff] %v5972_v44  ;;  %v1014_v37 = vrot.slane %v5669_v22, 2  ;;  %v3412_v22 = vld [vmem:[%s6607_s1 + $0x388] sm:$0xff]  ;;  %v5990_v41 = vsel %vm390_vm0, %v467_v42, %v469_v21  ;;  %v3333_v42 = vld [vmem:[%s6607_s1 + $0x110] sm:$0xff]  ;;  %v1027_v21 = vrot.slane %v5772_v18, 2 }
  0x66   : > { %4326 = vmatmul.mubr.f32.gmra.mrb[10].mxu0 %v5936_v19  ;;  %3952 = vmatprep.mubr.f32.mxu1 %v5941_v47  ;;  %v5976_v19 = vsel %vm970_vm1, %v1011_v33, %v1012_v53  ;;  %v1016_v47 = vrot.slane %v5697_v0, 2  ;;  %6738 = vst [vmem:[#allocation46_spill] sm:$0xff] %v5990_v41 }
  0x67   : > { %4328 = vmatprep.mubr.f32.mxu0 %v5950_v11  ;;  %4813 = vmatpush3.bf16.msra.mxu0 %v4810_v7  ;;  %v5994_v6 = vsel %vm970_vm1, %v1012_v53, %v1014_v37  ;;  %v1019_v7 = vrot.slane %v5725_v51, 2  ;;  %v3334_v51 = vld [vmem:[%s6607_s1 + $0x118] sm:$0xff]  ;;  %v6019_v53 = vsel %vm970_vm1, %v1021_v52, %v1022_v60 }
  0x68   : > { %4815 = vmatprep.subr.bf16.mxu0 %v4814_v61  ;;  %v5998_v33 = vsel %vm970_vm1, %v1016_v47, %v1017_v36  ;;  %v1024_v47 = vrot.slane %v5761_v38, 2  ;;  %v3336_v38 = vld [vmem:[%s6607_s1 + $0x128] sm:$0xff] }
  0x69   : > { %3953 = vmatmul.mubr.f32.gmra.mrb[28].mxu1 %v5964_v63  ;;  %v6015_v37 = vsel %vm970_vm1, %v1017_v36, %v1019_v7  ;;  %v1032_v7 = vrot.slane %v5810_v46, 2  ;;  %v6127_v63 = vld [vmem:[%s5345_s7 + $0x190] sm:$0x3] }
  0x6a   : > { %4329 = vmatmul.mubr.f32.gmra.mrb[12].mxu0 %v5969_v43  ;;  %3955 = vmatprep.mubr.f32.mxu1 %v5972_v44  ;;  %v6002_v44 = vpack.c.bf16 %v3412_v22, %v3411_v15  ;;  %v4666_v15 = vpack.c.bf16 %v3334_v51, %v3333_v42  ;;  %v6036_v36 = vsel %vm970_vm1, %v1022_v60, %v1024_v47  ;;  %v1031_v22 = vrot.slane %v5807_v23, 2 }
  0x6b   : > { %4331 = vmatprep.mubr.f32.mxu0 %v5976_v19  ;;  %4817 = vmatpush3.bf16.msra.mxu0 %v4814_v61  ;;  %v1026_v61 = vrot.slane %v5769_v62, 2  ;;  %v1036_v42 = vrot.slane %v5844_v3, 2  ;;  %v1037_v51 = vrot.slane %v5847_v9, 2 }
  0x6c   : > { %4819 = vmatprep.subr.bf16.mxu0 %v4818_v24  ;;  %v6059_v60 = vsel %vm970_vm1, %v1031_v22, %v1032_v7 }
  0x6d   : > { %3956 = vmatmul.mubr.f32.gmra.mrb[30].mxu1 %v5990_v41  ;;  %v6106_v41 = vld [vmem:[%s5345_s7 + $0x188] sm:$0xff] }
  0x6e   : > { %4332 = vmatmul.mubr.f32.gmra.mrb[14].mxu0 %v5994_v6  ;;  %3990 = vmatprep.mubr.f32.mxu1 %v5364_v28  ;;  %v3335_v28 = vld [vmem:[%s6607_s1 + $0x120] sm:$0xff] }
  0x6f   : > { %4334 = vmatprep.mubr.f32.mxu0 %v5998_v33  ;;  %4821 = vmatpush3.bf16.msra.mxu0 %v4818_v24  ;;  %v6040_v24 = vsel %vm970_vm1, %v1026_v61, %v1027_v21  ;;  %v4670_v52 = vpack.c.bf16 %v3336_v38, %v3335_v28  ;;  %v3339_v61 = vld [vmem:[%s6607_s1 + $0x140] sm:$0xff]  ;;  %v6078_v28 = vsel %vm970_vm1, %v1036_v42, %v1037_v51  ;;  %v1041_v38 = vrot.slane %v5881_v25, 2 }
  0x70   : > { %4823 = vmatprep.subr.bf16.mxu0 %v6002_v44  ;;  %v1047_v42 = vrot.slane %v5921_v39, 2 }
  0x71   : > { %3991 = vmatmul.mubr.f32.vlgmr.msra.gmra.mrb[0].mxu1 %v5367_v29  ;;  %v1029_v29 = vrot.slane %v5799_v40, 2 }
  0x72   : > { %4335 = vmatmul.mubr.f32.gmra.mrb[16].mxu0 %v6015_v37  ;;  %4665 = vmatpush3.bf16.msra.mxu1 %v5745_v54  ;;  %v3338_v54 = vld [vmem:[%s6607_s1 + $0x138] sm:$0xff] }
  0x73   : > { %3993 = vmatprep.mubr.f32.mxu1 %v5371_v31  ;;  %4337 = vmatprep.mubr.f32.mxu0 %v6019_v53  ;;  %v3337_v31 = vld [vmem:[%s6607_s1 + $0x130] sm:$0xff]  ;;  %v6055_v40 = vsel %vm970_vm1, %v1027_v21, %v1029_v29  ;;  %v3340_v21 = vld [vmem:[%s6607_s1 + $0x148] sm:$0xff]  ;;  %v1042_v29 = vrot.slane %v5884_v57, 2 }
  0x74   : > { %4667 = vmatprep.subr.bf16.mxu1 %v4666_v15  ;;  %v4674_v47 = vpack.c.bf16 %v3338_v54, %v3337_v31  ;;  %v4678_v22 = vpack.c.bf16 %v3340_v21, %v3339_v61  ;;  %v1044_v31 = vrot.slane %v5910_v16, 2  ;;  %v6102_v61 = vld [vmem:[%s5345_s7 + $0x180] sm:$0xff] }
  0x75   : > { %3994 = vmatmul.mubr.f32.gmra.mrb[2].mxu1 %v5374_v32  ;;  %v1034_v32 = vrot.slane %v5836_v55, 2  ;;  %v6097_v54 = vsel %vm970_vm1, %v1041_v38, %v1042_v29  ;;  %v3343_v16 = vld [vmem:[%s6607_s1 + $0x160] sm:$0xff] }
  0x76   : > { %4338 = vmatmul.mubr.f32.gmra.mrb[18].mxu0 %v6036_v36  ;;  %3996 = vmatprep.mubr.f32.mxu1 %v5457_v1 }
  0x77   : > { %4340 = vmatprep.mubr.f32.mxu0 %v6040_v24  ;;  %4669 = vmatpush3.bf16.msra.mxu1 %v4666_v15  ;;  %v6074_v55 = vsel %vm970_vm1, %v1032_v7, %v1034_v32  ;;  %v1039_v15 = vrot.slane %v5873_v27, 2  ;;  %v3341_v7 = vld [vmem:[%s6607_s1 + $0x150] sm:$0xff]  ;;  %v3342_v27 = vld [vmem:[%s6607_s1 + $0x158] sm:$0xff]  ;;  %v1046_v32 = vrot.slane %v5918_v12, 2 }
  0x78   : > { %4671 = vmatprep.subr.bf16.mxu1 %v4670_v52  ;;  %v4682_v21 = vpack.c.bf16 %v3342_v27, %v3341_v7  ;;  %v1915_v7 = vrot.slane %v6102_v61, 2  ;;  %v1916_v27 = vrot.slane %v6106_v41, 2 }
  0x79   : > { %3997 = vmatmul.mubr.f32.gmra.mrb[4].mxu1 %v5460_v2  ;;  %v6122_v38 = vsel %vm970_vm1, %v1046_v32, %v1047_v42 }
  0x7a   : > { %4341 = vmatmul.mubr.f32.gmra.mrb[20].mxu0 %v6055_v40  ;;  %3999 = vmatprep.mubr.f32.mxu1 %v5477_v13  ;;  %6740 = vst [vmem:[#allocation48_spill] sm:$0xff] %v6122_v38  ;;  %v6144_v32 = vsel %vm970_vm1, %v1915_v7, %v1916_v27  ;;  %v3414_v7 = vld [vmem:[%s6607_s1 + $0x398] sm:$0xff] }
  0x7b   : > { %4343 = vmatprep.mubr.f32.mxu0 %v6059_v60  ;;  %4673 = vmatpush3.bf16.msra.mxu1 %v4670_v52  ;;  %v6093_v52 = vsel %vm970_vm1, %v1037_v51, %v1039_v15  ;;  %v3344_v51 = vld [vmem:[%s6607_s1 + $0x168] sm:$0xff]  ;;  %v1049_v15 = vrot.slane %v5947_v8, 2  ;;  %v3346_v8 = vld [vmem:[%s6607_s1 + $0x178] sm:$0xff]  ;;  %6741 = vst [vmem:[#allocation49_spill] sm:$0xff] %v6144_v32 }
  0x7c   : > { %4675 = vmatprep.subr.bf16.mxu1 %v4674_v47  ;;  %6739 = vst [vmem:[#allocation47_spill] sm:$0xff] %v6093_v52 }
  0x7d   : > { %4000 = vmatmul.mubr.f32.gmra.mrb[6].mxu1 %v5480_v14 }
  0x7e   : > { %4344 = vmatmul.mubr.f32.gmra.mrb[22].mxu0 %v6074_v55  ;;  %4002 = vmatprep.mubr.f32.mxu1 %v5511_v34 }
  0x7f   : > { %4346 = vmatprep.mubr.f32.mxu0 %v6078_v28  ;;  %4677 = vmatpush3.bf16.msra.mxu1 %v4674_v47  ;;  %v6118_v47 = vsel %vm970_vm1, %v1042_v29, %v1044_v31  ;;  %v3345_v29 = vld [vmem:[%s6607_s1 + $0x170] sm:$0xff]  ;;  %v1918_v31 = vrot.slane %v6127_v63, 2 }
  0x80   : > { %4679 = vmatprep.subr.bf16.mxu1 %v4678_v22 }
  0x81   : > { %4003 = vmatmul.mubr.f32.gmra.mrb[8].mxu1 %v5514_v35 }
  0x82   : > { %4347 = vmatmul.mubr.f32.gmra.mrb[24].mxu0 %v6093_v52  ;;  %4005 = vmatprep.mubr.f32.mxu1 %v5543_v49  ;;  %v4686_v52 = vpack.c.bf16 %v3344_v51, %v3343_v16  ;;  %v4690_v16 = vpack.c.bf16 %v3346_v8, %v3345_v29  ;;  %v3347_v51 = vld [vmem:[%s6607_s1 + $0x180] sm:$0xff]  ;;  %v3417_v29 = vld [vmem:[%s6607_s1 + $0x3b0] sm:$0xff]  ;;  %v3418_v8 = vld [vmem:[%s6607_s1 + $0x3b8] sm:$0xff] }
  0x83   : > { %4349 = vmatprep.mubr.f32.mxu0 %v6097_v54  ;;  %4681 = vmatpush3.bf16.msra.mxu1 %v4678_v22  ;;  %v6140_v22 = vsel %vm970_vm1, %v1047_v42, %v1049_v15  ;;  %v6157_v42 = vsel %vm970_vm1, %v1916_v27, %v1918_v31  ;;  %v3413_v15 = vld [vmem:[%s6607_s1 + $0x390] sm:$0xff]  ;;  %v3416_v27 = vld [vmem:[%s6607_s1 + $0x3a8] sm:$0xff]  ;;  %v3422_v31 = vld [vmem:[%s6607_s1 + $0x3d8] sm:$0xff] }
  0x84   : > { %4683 = vmatprep.subr.bf16.mxu1 %v4682_v21  ;;  %6742 = vst [vmem:[#allocation50_spill] sm:$0xff] %v6157_v42 }
  0x85   : > { %4006 = vmatmul.mubr.f32.gmra.mrb[10].mxu1 %v5546_v50 }
  0x86   : > { %4350 = vmatmul.mubr.f32.gmra.mrb[26].mxu0 %v6118_v47  ;;  %4008 = vmatprep.mubr.f32.mxu1 %v5577_v4 }
  0x87   : > { %4352 = vmatprep.mubr.f32.mxu0 %v6122_v38  ;;  %4685 = vmatpush3.bf16.msra.mxu1 %v4682_v21  ;;  %v3348_v38 = vld [vmem:[%s6607_s1 + $0x188] sm:$0xff] }
  0x88   : > { %4687 = vmatprep.subr.bf16.mxu1 %v4686_v52  ;;  %v6159_v21 = vpack.c.bf16 %v3348_v38, %v3347_v51  ;;  %v3415_v38 = vld [vmem:[%s6607_s1 + $0x3a0] sm:$0xff]  ;;  %v3426_v51 = vld [vmem:[%s6607_s1 + $0x3f8] sm:$0xff] }
  0x89   : > { %4009 = vmatmul.mubr.f32.gmra.mrb[12].mxu1 %v5580_v5 }
  0x8a   : > { %4353 = vmatmul.mubr.f32.gmra.mrb[28].mxu0 %v6140_v22  ;;  %4011 = vmatprep.mubr.f32.mxu1 %v5611_v26 }
  0x8b   : > { %4355 = vmatprep.mubr.f32.mxu0 %v6144_v32  ;;  %4689 = vmatpush3.bf16.msra.mxu1 %v4686_v52  ;;  %v4826_v52 = vpack.c.bf16 %v3414_v7, %v3413_v15  ;;  %v5184_v15 = vld [vmem:[%s5345_s7 + $0x8] sm:$0xff] }
  0x8c   : > { %4691 = vmatprep.subr.bf16.mxu1 %v4690_v16  ;;  %v972_v7 = vrot.slane %v5184_v15, 2  ;;  %v3361_v15 = vld [vmem:[%s6607_s1 + $0x1f0] sm:$0xff] }
  0x8d   : > { %4012 = vmatmul.mubr.f32.gmra.mrb[14].mxu1 %v5614_v30 }
  0x8e   : > { %4356 = vmatmul.mubr.f32.gmra.mrb[30].mxu0 %v6157_v42  ;;  %4014 = vmatprep.mubr.f32.mxu1 %v5645_v56  ;;  %v6787_v42 = vld [vmem:[#allocation46_spill] sm:$0xff] }
  0x8f   : > { %4390 = vmatprep.mubr.f32.mxu0 %v5457_v1  ;;  %4693 = vmatpush3.bf16.msra.mxu1 %v4690_v16  ;;  %v4830_v1 = vpack.c.bf16 %v3416_v27, %v3415_v38  ;;  %v3424_v16 = vld [vmem:[%s6607_s1 + $0x3e8] sm:$0xff]  ;;  %v3427_v38 = vld [vmem:[%s6607_s1 + $0x400] sm:$0xff]  ;;  %v5185_v27 = vld [vmem:[%s5345_s7 + $0x10] sm:$0x3] }
  0x90   : > { %4695 = vmatprep.subr.bf16.mxu1 %v6159_v21 }
  0x91   : > { %4015 = vmatmul.mubr.f32.gmra.mrb[16].mxu1 %v5648_v59 }
  0x92   : > { %4391 = vmatmul.mubr.f32.vlgmr.msra.gmra.mrb[0].mxu0 %v5460_v2  ;;  %4017 = vmatprep.mubr.f32.mxu1 %v5697_v0  ;;  %v4834_v2 = vpack.c.bf16 %v3418_v8, %v3417_v29  ;;  %v3349_v8 = vld [vmem:[%s6607_s1 + $0x190] sm:$0xff] }
  0x93   : > { %4825 = vmatpush3.bf16.msra.mxu0 %v6002_v44  ;;  %4393 = vmatprep.mubr.f32.mxu0 %v5477_v13  ;;  %v3419_v13 = vld [vmem:[%s6607_s1 + $0x3c0] sm:$0xff]  ;;  %v3420_v44 = vld [vmem:[%s6607_s1 + $0x3c8] sm:$0xff] }
  0x94   : > { %4827 = vmatprep.subr.bf16.mxu0 %v4826_v52 }
  0x95   : > { %4018 = vmatmul.mubr.f32.gmra.mrb[18].mxu1 %v5700_v58 }
  0x96   : > { %4394 = vmatmul.mubr.f32.gmra.mrb[2].mxu0 %v5480_v14  ;;  %4020 = vmatprep.mubr.f32.mxu1 %v5733_v10  ;;  %v4838_v14 = vpack.c.bf16 %v3420_v44, %v3419_v13  ;;  %v3351_v13 = vld [vmem:[%s6607_s1 + $0x1a0] sm:$0xff]  ;;  %v3352_v44 = vld [vmem:[%s6607_s1 + $0x1a8] sm:$0xff] }
  0x97   : > { %4396 = vmatprep.mubr.f32.mxu0 %v5511_v34  ;;  %4829 = vmatpush3.bf16.msra.mxu0 %v4826_v52  ;;  %v3421_v34 = vld [vmem:[%s6607_s1 + $0x3d0] sm:$0xff] }
  0x98   : > { %4831 = vmatprep.subr.bf16.mxu0 %v4830_v1 }
  0x99   : > { %4021 = vmatmul.mubr.f32.gmra.mrb[20].mxu1 %v5736_v17 }
  0x9a   : > { %4397 = vmatmul.mubr.f32.gmra.mrb[4].mxu0 %v5514_v35  ;;  %4023 = vmatprep.mubr.f32.mxu1 %v5769_v62  ;;  %v4842_v35 = vpack.c.bf16 %v3422_v31, %v3421_v34  ;;  %v6746_v34 = vld [vmem:[#allocation31_spill] sm:$0xff]  ;;  %v3357_v31 = vld [vmem:[%s6607_s1 + $0x1d0] sm:$0xff] }
  0x9b   : > { %4399 = vmatprep.mubr.f32.mxu0 %v5543_v49  ;;  %4833 = vmatpush3.bf16.msra.mxu0 %v4830_v1  ;;  %v3423_v49 = vld [vmem:[%s6607_s1 + $0x3e0] sm:$0xff]  ;;  %v974_v1 = vrot.slane %v5185_v27, 2 }
  0x9c   : > { %4835 = vmatprep.subr.bf16.mxu0 %v4834_v2  ;;  %v6328_v27 = vld [vmem:[%s5345_s7 + $0x1a0] sm:$0xff] }
  0x9d   : > { %4024 = vmatmul.mubr.f32.gmra.mrb[22].mxu1 %v5772_v18 }
  0x9e   : > { %4400 = vmatmul.mubr.f32.gmra.mrb[6].mxu0 %v5546_v50  ;;  %4026 = vmatprep.mubr.f32.mxu1 %v5807_v23  ;;  %v4846_v50 = vpack.c.bf16 %v3424_v16, %v3423_v49  ;;  %v6748_v16 = vld [vmem:[#allocation35_spill] sm:$0xff] }
  0x9f   : > { %4402 = vmatprep.mubr.f32.mxu0 %v5577_v4  ;;  %4837 = vmatpush3.bf16.msra.mxu0 %v4834_v2  ;;  %v3425_v4 = vld [vmem:[%s6607_s1 + $0x3f0] sm:$0xff] }
  0xa0   : > { %4839 = vmatprep.subr.bf16.mxu0 %v4838_v14  ;;  %v4850_v52 = vpack.c.bf16 %v3426_v51, %v3425_v4  ;;  %v3360_v4 = vld [vmem:[%s6607_s1 + $0x1e8] sm:$0xff]  ;;  %v6749_v51 = vld [vmem:[#allocation37_spill] sm:$0xff] }
  0xa1   : > { %4027 = vmatmul.mubr.f32.gmra.mrb[24].mxu1 %v5810_v46 }
  0xa2   : > { %4403 = vmatmul.mubr.f32.gmra.mrb[8].mxu0 %v5580_v5  ;;  %4029 = vmatprep.mubr.f32.mxu1 %v5844_v3  ;;  %v5183_v5 = vld [vmem:[%s5345_s7] sm:$0xff] }
  0xa3   : > { %4405 = vmatprep.mubr.f32.mxu0 %v5611_v26  ;;  %4841 = vmatpush3.bf16.msra.mxu0 %v4838_v14  ;;  %v971_v26 = vrot.slane %v5183_v5, 2  ;;  %v3354_v14 = vld [vmem:[%s6607_s1 + $0x1b8] sm:$0xff] }
  0xa4   : > { %4843 = vmatprep.subr.bf16.mxu0 %v4842_v35 }
  0xa5   : > { %4030 = vmatmul.mubr.f32.gmra.mrb[26].mxu1 %v5847_v9 }
  0xa6   : > { %4406 = vmatmul.mubr.f32.gmra.mrb[10].mxu0 %v5614_v30  ;;  %4032 = vmatprep.mubr.f32.mxu1 %v5881_v25  ;;  %v3428_v30 = vld [vmem:[%s6607_s1 + $0x408] sm:$0xff] }
  0xa7   : > { %4408 = vmatprep.mubr.f32.mxu0 %v5645_v56  ;;  %4845 = vmatpush3.bf16.msra.mxu0 %v4842_v35  ;;  %v973_v56 = vsel %vm970_vm1, %v971_v26, %v972_v7  ;;  %v6247_v29 = vpack.c.bf16 %v3428_v30, %v3427_v38  ;;  %v3358_v35 = vld [vmem:[%s6607_s1 + $0x1d8] sm:$0xff]  ;;  %v6750_v26 = vld [vmem:[#allocation39_spill] sm:$0xff]  ;;  %v6751_v30 = vld [vmem:[#allocation42_spill] sm:$0xff] }
  0xa8   : > { %4847 = vmatprep.subr.bf16.mxu0 %v4846_v50  ;;  %v4714_v49 = vpack.c.bf16 %v3358_v35, %v3357_v31  ;;  %v3436_v31 = vld [vmem:[%s6607_s1 + $0x448] sm:$0xff] }
  0xa9   : > { %4033 = vmatmul.mubr.f32.gmra.mrb[28].mxu1 %v5884_v57  ;;  %v6758_v35 = vld [vmem:[#allocation15_spill] sm:$0xff] }
  0xaa   : > { %4409 = vmatmul.mubr.f32.gmra.mrb[12].mxu0 %v5648_v59  ;;  %4035 = vmatprep.mubr.f32.mxu1 %v5918_v12  ;;  %v3350_v59 = vld [vmem:[%s6607_s1 + $0x198] sm:$0xff] }
  0xab   : > { %4411 = vmatprep.mubr.f32.mxu0 %v5697_v0  ;;  %4849 = vmatpush3.bf16.msra.mxu0 %v4846_v50  ;;  %v975_v0 = vsel %vm970_vm1, %v972_v7, %v974_v1  ;;  %v4698_v2 = vpack.c.bf16 %v3350_v59, %v3349_v8  ;;  %v3359_v50 = vld [vmem:[%s6607_s1 + $0x1e0] sm:$0xff]  ;;  %v3362_v7 = vld [vmem:[%s6607_s1 + $0x1f8] sm:$0xff]  ;;  %v3429_v1 = vld [vmem:[%s6607_s1 + $0x410] sm:$0xff] }
  0xac   : > { %4851 = vmatprep.subr.bf16.mxu0 %v4850_v52  ;;  %v4718_v5 = vpack.c.bf16 %v3360_v4, %v3359_v50  ;;  %v4722_v38 = vpack.c.bf16 %v3362_v7, %v3361_v15  ;;  %v6752_v8 = vld [vmem:[#allocation10_spill] sm:$0xff]  ;;  %v3437_v4 = vld [vmem:[%s6607_s1 + $0x450] sm:$0xff]  ;;  %v6760_v15 = vld [vmem:[#allocation17_spill] sm:$0xff] }
  0xad   : > { %4036 = vmatmul.mubr.f32.gmra.mrb[30].mxu1 %v5921_v39  ;;  %v6761_v7 = vld [vmem:[#allocation18_spill] sm:$0xff] }
  0xae   : > { %4412 = vmatmul.mubr.f32.gmra.mrb[14].mxu0 %v5700_v58  ;;  %4070 = vmatprep.mubr.f32.mxu1 %v973_v56  ;;  %v4702_v58 = vpack.c.bf16 %v3352_v44, %v3351_v13  ;;  %v3430_v56 = vld [vmem:[%s6607_s1 + $0x418] sm:$0xff]  ;;  %v3432_v13 = vld [vmem:[%s6607_s1 + $0x428] sm:$0xff] }
  0xaf   : > { %4414 = vmatprep.mubr.f32.mxu0 %v5733_v10  ;;  %4853 = vmatpush3.bf16.msra.mxu0 %v4850_v52  ;;  %v3353_v10 = vld [vmem:[%s6607_s1 + $0x1b0] sm:$0xff]  ;;  %v6321_v52 = vld [vmem:[%s5345_s7 + $0x198] sm:$0xff]  ;;  %v4858_v59 = vpack.c.bf16 %v3430_v56, %v3429_v1  ;;  %v6754_v44 = vld [vmem:[#allocation11_spill] sm:$0xff] }
  0xb0   : > { %4855 = vmatprep.subr.bf16.mxu0 %v6247_v29  ;;  %v3439_v1 = vld [vmem:[%s6607_s1 + $0x460] sm:$0xff]  ;;  %v3440_v56 = vld [vmem:[%s6607_s1 + $0x468] sm:$0xff] }
  0xb1   : > { %4071 = vmatmul.mubr.f32.vlgmr.msra.gmra.mrb[0].mxu1 %v975_v0  ;;  %v6753_v0 = vld [vmem:[#allocation2_spill] sm:$0xff] }
  0xb2   : > { %4415 = vmatmul.mubr.f32.gmra.mrb[16].mxu0 %v5736_v17  ;;  %4697 = vmatpush3.bf16.msra.mxu1 %v6159_v21  ;;  %v6743_v17 = vld [vmem:[#allocation25_spill] sm:$0xff]  ;;  %v3356_v21 = vld [vmem:[%s6607_s1 + $0x1c8] sm:$0xff] }
  0xb3   : > { %4073 = vmatprep.mubr.f32.mxu1 %v5728_v45  ;;  %4417 = vmatprep.mubr.f32.mxu0 %v5769_v62  ;;  %v4706_v45 = vpack.c.bf16 %v3354_v14, %v3353_v10  ;;  %v6744_v62 = vld [vmem:[#allocation27_spill] sm:$0xff]  ;;  %v3433_v14 = vld [vmem:[%s6607_s1 + $0x430] sm:$0xff] }
  0xb4   : > { %4699 = vmatprep.subr.bf16.mxu1 %v4698_v2 }
  0xb5   : > { %4074 = vmatmul.mubr.f32.gmra.mrb[2].mxu1 %v5753_v48  ;;  %v3355_v48 = vld [vmem:[%s6607_s1 + $0x1c0] sm:$0xff] }
  0xb6   : > { %4418 = vmatmul.mubr.f32.gmra.mrb[18].mxu0 %v5772_v18  ;;  %4076 = vmatprep.mubr.f32.mxu1 %v6743_v17  ;;  %v6745_v18 = vld [vmem:[#allocation29_spill] sm:$0xff] }
  0xb7   : > { %4420 = vmatprep.mubr.f32.mxu0 %v5807_v23  ;;  %4701 = vmatpush3.bf16.msra.mxu1 %v4698_v2  ;;  %v4710_v23 = vpack.c.bf16 %v3356_v21, %v3355_v48  ;;  %v3431_v2 = vld [vmem:[%s6607_s1 + $0x420] sm:$0xff]  ;;  %v6756_v48 = vld [vmem:[#allocation13_spill] sm:$0xff] }
  0xb8   : > { %4703 = vmatprep.subr.bf16.mxu1 %v4702_v58  ;;  %v4862_v10 = vpack.c.bf16 %v3432_v13, %v3431_v2  ;;  %v6757_v21 = vld [vmem:[#allocation14_spill] sm:$0xff]  ;;  %v4878_v2 = vpack.c.bf16 %v3440_v56, %v3439_v1  ;;  %v6764_v13 = vld [vmem:[#allocation47_spill] sm:$0xff]  ;;  %v6776_v56 = vld [vmem:[#allocation36_spill] sm:$0xff] }
  0xb9   : > { %4077 = vmatmul.mubr.f32.gmra.mrb[4].mxu1 %v6744_v62  ;;  %v5190_v1 = vld [vmem:[%s5345_s7 + $0x48] sm:$0xff] }
  0xba   : > { %4421 = vmatmul.mubr.f32.gmra.mrb[20].mxu0 %v5810_v46  ;;  %4079 = vmatprep.mubr.f32.mxu1 %v6745_v18  ;;  %v6747_v46 = vld [vmem:[#allocation33_spill] sm:$0xff] }
  0xbb   : > { %4423 = vmatprep.mubr.f32.mxu0 %v5844_v3  ;;  %4705 = vmatpush3.bf16.msra.mxu1 %v4702_v58  ;;  %v6755_v58 = vld [vmem:[#allocation12_spill] sm:$0xff] }
  0xbc   : > { %4707 = vmatprep.subr.bf16.mxu1 %v4706_v45 }
  0xbd   : > { %4080 = vmatmul.mubr.f32.gmra.mrb[6].mxu1 %v6746_v34 }
  0xbe   : > { %4424 = vmatmul.mubr.f32.gmra.mrb[22].mxu0 %v5847_v9  ;;  %4082 = vmatprep.mubr.f32.mxu1 %v6747_v46 }
  0xbf   : > { %4426 = vmatprep.mubr.f32.mxu0 %v5881_v25  ;;  %4709 = vmatpush3.bf16.msra.mxu1 %v4706_v45  ;;  %v3434_v45 = vld [vmem:[%s6607_s1 + $0x438] sm:$0xff] }
  0xc0   : > { %4711 = vmatprep.subr.bf16.mxu1 %v4710_v23 }
  0xc1   : > { %4083 = vmatmul.mubr.f32.gmra.mrb[8].mxu1 %v6748_v16 }
  0xc2   : > { %4427 = vmatmul.mubr.f32.gmra.mrb[24].mxu0 %v5884_v57  ;;  %4085 = vmatprep.mubr.f32.mxu1 %v6749_v51 }
  0xc3   : > { %4429 = vmatprep.mubr.f32.mxu0 %v5918_v12  ;;  %4713 = vmatpush3.bf16.msra.mxu1 %v4710_v23  ;;  %v3435_v23 = vld [vmem:[%s6607_s1 + $0x440] sm:$0xff] }
  0xc4   : > { %4715 = vmatprep.subr.bf16.mxu1 %v4714_v49  ;;  %v4870_v50 = vpack.c.bf16 %v3436_v31, %v3435_v23  ;;  %v6770_v23 = vld [vmem:[#allocation26_spill] sm:$0xff]  ;;  %v5186_v31 = vld [vmem:[%s5345_s7 + $0x18] sm:$0xff] }
  0xc5   : > { %4086 = vmatmul.mubr.f32.gmra.mrb[10].mxu1 %v6750_v26 }
  0xc6   : > { %4430 = vmatmul.mubr.f32.gmra.mrb[26].mxu0 %v5921_v39  ;;  %4088 = vmatprep.mubr.f32.mxu1 %v5913_v20 }
  0xc7   : > { %4432 = vmatprep.mubr.f32.mxu0 %v6102_v61  ;;  %4717 = vmatpush3.bf16.msra.mxu1 %v4714_v49  ;;  %v6759_v49 = vld [vmem:[#allocation16_spill] sm:$0xff] }
  0xc8   : > { %4719 = vmatprep.subr.bf16.mxu1 %v4718_v5 }
  0xc9   : > { %4089 = vmatmul.mubr.f32.gmra.mrb[12].mxu1 %v6751_v30 }
  0xca   : > { %4433 = vmatmul.mubr.f32.gmra.mrb[28].mxu0 %v6106_v41  ;;  %4091 = vmatprep.mubr.f32.mxu1 %v5950_v11 }
  0xcb   : > { %4435 = vmatprep.mubr.f32.mxu0 %v6321_v52  ;;  %4721 = vmatpush3.bf16.msra.mxu1 %v4718_v5  ;;  %v3438_v5 = vld [vmem:[%s6607_s1 + $0x458] sm:$0xff] }
  0xcc   : > { %4723 = vmatprep.subr.bf16.mxu1 %v4722_v38 }
  0xcd   : > { %4092 = vmatmul.mubr.f32.gmra.mrb[14].mxu1 %v5969_v43 }
  0xce   : > { %4436 = vmatmul.mubr.f32.gmra.mrb[30].mxu0 %v6328_v27  ;;  %4094 = vmatprep.mubr.f32.mxu1 %v5976_v19 }
  0xcf   : > { %4470 = vmatprep.mubr.f32.mxu0 %v6752_v8  ;;  %4725 = vmatpush3.bf16.msra.mxu1 %v4722_v38  ;;  %v4874_v38 = vpack.c.bf16 %v3438_v5, %v3437_v4  ;;  %v6762_v8 = vld [vmem:[#allocation19_spill] sm:$0xff]  ;;  %v5188_v4 = vld [vmem:[%s5345_s7 + $0x30] sm:$0xff] }
  0xd0   : > { %4886 = vmatprep.subr.bf16.mxu1 %v6753_v0  ;;  %v6773_v5 = vld [vmem:[#allocation32_spill] sm:$0xff] }
  0xd1   : > { %4095 = vmatmul.mubr.f32.gmra.mrb[16].mxu1 %v5994_v6 }
  0xd2   : > { %4471 = vmatmul.mubr.f32.vlgmr.msra.gmra.mrb[0].mxu0 %v6754_v44  ;;  %4097 = vmatprep.mubr.f32.mxu1 %v5998_v33  ;;  %v3441_v44 = vld [vmem:[%s6607_s1 + $0x470] sm:$0xff] }
  0xd3   : > { %4857 = vmatpush3.bf16.msra.mxu0 %v6247_v29  ;;  %4473 = vmatprep.mubr.f32.mxu0 %v6755_v58  ;;  %v4866_v29 = vpack.c.bf16 %v3434_v45, %v3433_v14  ;;  %v3442_v58 = vld [vmem:[%s6607_s1 + $0x478] sm:$0xff]  ;;  %v6766_v14 = vld [vmem:[#allocation22_spill] sm:$0xff] }
  0xd4   : > { %4859 = vmatprep.subr.bf16.mxu0 %v4858_v59  ;;  %v4882_v45 = vpack.c.bf16 %v3442_v58, %v3441_v44  ;;  %v6779_v44 = vld [vmem:[#allocation40_spill] sm:$0xff]  ;;  %v6780_v58 = vld [vmem:[#allocation5_spill] sm:$0xff] }
  0xd5   : > { %4098 = vmatmul.mubr.f32.gmra.mrb[18].mxu1 %v6015_v37 }
  0xd6   : > { %4474 = vmatmul.mubr.f32.gmra.mrb[2].mxu0 %v6756_v48  ;;  %4100 = vmatprep.mubr.f32.mxu1 %v6019_v53  ;;  %v6767_v48 = vld [vmem:[#allocation23_spill] sm:$0xff] }
  0xd7   : > { %4476 = vmatprep.mubr.f32.mxu0 %v6757_v21  ;;  %4861 = vmatpush3.bf16.msra.mxu0 %v4858_v59  ;;  %v6763_v59 = vld [vmem:[#allocation20_spill] sm:$0xff] }
  0xd8   : > { %4863 = vmatprep.subr.bf16.mxu0 %v4862_v10  ;;  %v6768_v21 = vld [vmem:[#allocation48_spill] sm:$0xff] }
  0xd9   : > { %4101 = vmatmul.mubr.f32.gmra.mrb[20].mxu1 %v6036_v36 }
  0xda   : > { %4477 = vmatmul.mubr.f32.gmra.mrb[4].mxu0 %v6758_v35  ;;  %4103 = vmatprep.mubr.f32.mxu1 %v6040_v24  ;;  %v6771_v35 = vld [vmem:[#allocation28_spill] sm:$0xff] }
  0xdb   : > { %4479 = vmatprep.mubr.f32.mxu0 %v6759_v49  ;;  %4865 = vmatpush3.bf16.msra.mxu0 %v4862_v10  ;;  %v6765_v10 = vld [vmem:[#allocation21_spill] sm:$0xff]  ;;  %v5187_v49 = vld [vmem:[%s5345_s7 + $0x20] sm:$0xff] }
  0xdc   : > { %4867 = vmatprep.subr.bf16.mxu0 %v4866_v29 }
  0xdd   : > { %4104 = vmatmul.mubr.f32.gmra.mrb[22].mxu1 %v6055_v40 }
  0xde   : > { %4480 = vmatmul.mubr.f32.gmra.mrb[6].mxu0 %v6760_v15  ;;  %4106 = vmatprep.mubr.f32.mxu1 %v6059_v60  ;;  %v6774_v15 = vld [vmem:[#allocation3_spill] sm:$0xff] }
  0xdf   : > { %4482 = vmatprep.mubr.f32.mxu0 %v6761_v7  ;;  %4869 = vmatpush3.bf16.msra.mxu0 %v4866_v29  ;;  %v6769_v29 = vld [vmem:[#allocation24_spill] sm:$0xff]  ;;  %v5189_v7 = vld [vmem:[%s5345_s7 + $0x38] sm:$0xff] }
  0xe0   : > { %4871 = vmatprep.subr.bf16.mxu0 %v4870_v50 }
  0xe1   : > { %4107 = vmatmul.mubr.f32.gmra.mrb[24].mxu1 %v6074_v55 }
  0xe2   : > { %4483 = vmatmul.mubr.f32.gmra.mrb[8].mxu0 %v6762_v8  ;;  %4109 = vmatprep.mubr.f32.mxu1 %v6078_v28  ;;  %v5191_v8 = vld [vmem:[%s5345_s7 + $0x50] sm:$0xff] }
  0xe3   : > { %4485 = vmatprep.mubr.f32.mxu0 %v6763_v59  ;;  %4873 = vmatpush3.bf16.msra.mxu0 %v4870_v50  ;;  %v6772_v50 = vld [vmem:[#allocation30_spill] sm:$0xff] }
  0xe4   : > { %4875 = vmatprep.subr.bf16.mxu0 %v4874_v38  ;;  %v6778_v59 = vld [vmem:[#allocation38_spill] sm:$0xff] }
  0xe5   : > { %4110 = vmatmul.mubr.f32.gmra.mrb[26].mxu1 %v6764_v13 }
  0xe6   : > { %4486 = vmatmul.mubr.f32.gmra.mrb[10].mxu0 %v6765_v10  ;;  %4112 = vmatprep.mubr.f32.mxu1 %v6097_v54  ;;  %v5193_v10 = vld [vmem:[%s5345_s7 + $0x68] sm:$0xff] }
  0xe7   : > { %4488 = vmatprep.mubr.f32.mxu0 %v6766_v14  ;;  %4877 = vmatpush3.bf16.msra.mxu0 %v4874_v38  ;;  %v6775_v38 = vld [vmem:[#allocation34_spill] sm:$0xff]  ;;  %v6781_v14 = vld [vmem:[#allocation41_spill] sm:$0xff] }
  0xe8   : > { %4879 = vmatprep.subr.bf16.mxu0 %v4878_v2 }
  0xe9   : > { %4113 = vmatmul.mubr.f32.gmra.mrb[28].mxu1 %v6118_v47 }
  0xea   : > { %4489 = vmatmul.mubr.f32.gmra.mrb[12].mxu0 %v6767_v48  ;;  %4115 = vmatprep.mubr.f32.mxu1 %v6768_v21  ;;  %v6782_v48 = vld [vmem:[#allocation43_spill] sm:$0xff] }
  0xeb   : > { %4491 = vmatprep.mubr.f32.mxu0 %v6769_v29  ;;  %4881 = vmatpush3.bf16.msra.mxu0 %v4878_v2  ;;  %v5192_v2 = vld [vmem:[%s5345_s7 + $0x60] sm:$0xff] }
  0xec   : > { %4883 = vmatprep.subr.bf16.mxu0 %v4882_v45 }
  0xed   : > { %4116 = vmatmul.mubr.f32.gmra.mrb[30].mxu1 %v6140_v22 }
  0xee   : > { %4492 = vmatmul.mubr.f32.gmra.mrb[14].mxu0 %v6770_v23  ;;  %4150 = vmatprep.mubr.f32.mxu1 %v5186_v31  ;;  %v1634_v31 = vrot.slane %v6102_v61, 1 }
  0xef   : > { %4494 = vmatprep.mubr.f32.mxu0 %v6771_v35  ;;  %4885 = vmatpush3.bf16.msra.mxu0 %v4882_v45  ;;  %v5194_v45 = vld [vmem:[%s5345_s7 + $0x78] sm:$0xff] }
  0xf1   : > { %4151 = vmatmul.mubr.f32.vlgmr.msra.gmra.mrb[0].mxu1 %v5187_v49  ;;  %v1635_v49 = vrot.slane %v6106_v41, 1 }
  0xf2   : > { %4495 = vmatmul.mubr.f32.gmra.mrb[16].mxu0 %v6772_v50  ;;  %4894 = vmatpush3.bf16.msra.mxu1 %v6753_v0  ;;  %v6777_v0 = vld [vmem:[#allocation4_spill] sm:$0xff] }
  0xf3   : > { %4153 = vmatprep.mubr.f32.mxu1 %v5188_v4  ;;  %4497 = vmatprep.mubr.f32.mxu0 %v6773_v5  ;;  %v6783_v4 = vld [vmem:[#allocation6_spill] sm:$0xff] }
  0xf4   : > { %4887 = vmatprep.subr.bf16.mxu1 %v6774_v15 }
  0xf5   : > { %4154 = vmatmul.mubr.f32.gmra.mrb[2].mxu1 %v5189_v7  ;;  %v6784_v7 = vld [vmem:[#allocation44_spill] sm:$0xff] }
  0xf6   : > { %4498 = vmatmul.mubr.f32.gmra.mrb[18].mxu0 %v6775_v38  ;;  %4156 = vmatprep.mubr.f32.mxu1 %v5190_v1  ;;  %v5196_v1 = vld [vmem:[%s5345_s7 + $0x90] sm:$0xff] }
  0xf7   : > { %4500 = vmatprep.mubr.f32.mxu0 %v6776_v56  ;;  %4895 = vmatpush3.bf16.msra.mxu1 %v6774_v15  ;;  %v5195_v15 = vld [vmem:[%s5345_s7 + $0x80] sm:$0xff] }
  0xf8   : > { %4888 = vmatprep.subr.bf16.mxu1 %v6777_v0 }
  0xf9   : > { %4157 = vmatmul.mubr.f32.gmra.mrb[4].mxu1 %v5191_v8  ;;  %v1637_v8 = vrot.slane %v6127_v63, 1  ;;  %v5198_v63 = vld [vmem:[%s5345_s7 + $0xa8] sm:$0xff] }
  0xfa   : > { %4501 = vmatmul.mubr.f32.gmra.mrb[20].mxu0 %v6778_v59  ;;  %4159 = vmatprep.mubr.f32.mxu1 %v5192_v2  ;;  %v2473_v2 = vrot.slane %v6321_v52, 1 }
  0xfb   : > { %4503 = vmatprep.mubr.f32.mxu0 %v6779_v44  ;;  %4896 = vmatpush3.bf16.msra.mxu1 %v6777_v0  ;;  %v6785_v0 = vld [vmem:[#allocation45_spill] sm:$0xff] }
  0xfc   : > { %4889 = vmatprep.subr.bf16.mxu1 %v6780_v58 }
  0xfd   : > { %4160 = vmatmul.mubr.f32.gmra.mrb[6].mxu1 %v5193_v10  ;;  %v6445_v10 = vsel %vm390_vm0, %v1634_v31, %v1635_v49 }
  0xfe   : > { %4504 = vmatmul.mubr.f32.gmra.mrb[22].mxu0 %v6781_v14  ;;  %4162 = vmatprep.mubr.f32.mxu1 %v5194_v45  ;;  %v6448_v45 = vld [vmem:[%s5345_s7 + $0x1a8] sm:$0x3] }
  0xff   : > { %4506 = vmatprep.mubr.f32.mxu0 %v6782_v48  ;;  %4897 = vmatpush3.bf16.msra.mxu1 %v6780_v58  ;;  %v2474_v58 = vrot.slane %v6328_v27, 1  ;;  %v2476_v31 = vrot.slane %v6448_v45, 1 }
 0x100   : > { %4890 = vmatprep.subr.bf16.mxu1 %v6783_v4 }
 0x101   : > { %4163 = vmatmul.mubr.f32.gmra.mrb[8].mxu1 %v5195_v15  ;;  %v6786_v15 = vld [vmem:[#allocation7_spill] sm:$0xff]  ;;  %v2475_v32 = vsel %vm390_vm0, %v2473_v2, %v2474_v58  ;;  %v5202_v2 = vld [vmem:[%s5345_s7 + $0xd8] sm:$0xff] }
 0x102   : > { %4507 = vmatmul.mubr.f32.gmra.mrb[24].mxu0 %v6784_v7  ;;  %4165 = vmatprep.mubr.f32.mxu1 %v5196_v1  ;;  %v5197_v1 = vld [vmem:[%s5345_s7 + $0x98] sm:$0xff] }
 0x103   : > { %4509 = vmatprep.mubr.f32.mxu0 %v6785_v0  ;;  %4898 = vmatpush3.bf16.msra.mxu1 %v6783_v4  ;;  %v6456_v4 = vsel %vm390_vm0, %v1635_v49, %v1637_v8  ;;  %v6788_v0 = vld [vmem:[#allocation8_spill] sm:$0xff]  ;;  %v2477_v49 = vsel %vm390_vm0, %v2474_v58, %v2476_v31  ;;  %v6789_v8 = vld [vmem:[#allocation9_spill] sm:$0xff]  ;;  %v5206_v31 = vld [vmem:[%s5345_s7 + $0x108] sm:$0xff] }
 0x104   : > { %4891 = vmatprep.subr.bf16.mxu1 %v6786_v15  ;;  %v5205_v58 = vld [vmem:[%s5345_s7 + $0xf8] sm:$0xff] }
 0x105   : > { %4166 = vmatmul.mubr.f32.gmra.mrb[10].mxu1 %v5197_v1  ;;  %v5199_v1 = vld [vmem:[%s5345_s7 + $0xb0] sm:$0xff] }
 0x106   : > { %4510 = vmatmul.mubr.f32.gmra.mrb[26].mxu0 %v6787_v42  ;;  %4168 = vmatprep.mubr.f32.mxu1 %v5198_v63  ;;  %v5200_v63 = vld [vmem:[%s5345_s7 + $0xc0] sm:$0xff] }
 0x107   : > { %4512 = vmatprep.mubr.f32.mxu0 %v6445_v10  ;;  %4899 = vmatpush3.bf16.msra.mxu1 %v6786_v15  ;;  %v5201_v15 = vld [vmem:[%s5345_s7 + $0xc8] sm:$0xff] }
 0x108   : > { %4892 = vmatprep.subr.bf16.mxu1 %v6788_v0 }
 0x109   : > { %4169 = vmatmul.mubr.f32.gmra.mrb[12].mxu1 %v5199_v1  ;;  %v5208_v1 = vld [vmem:[%s5345_s7 + $0x120] sm:$0xff] }
 0x10a   : > { %4513 = vmatmul.mubr.f32.gmra.mrb[28].mxu0 %v6456_v4  ;;  %4171 = vmatprep.mubr.f32.mxu1 %v5200_v63 }
 0x10b   : > { %4515 = vmatprep.mubr.f32.mxu0 %v2475_v32  ;;  %4900 = vmatpush3.bf16.msra.mxu1 %v6788_v0  ;;  %v5203_v32 = vld [vmem:[%s5345_s7 + $0xe0] sm:$0xff]  ;;  %v5204_v0 = vld [vmem:[%s5345_s7 + $0xf0] sm:$0xff] }
 0x10c   : > { %4893 = vmatprep.subr.bf16.mxu1 %v6789_v8 }
 0x10d   : > { %4172 = vmatmul.mubr.f32.gmra.mrb[14].mxu1 %v5201_v15 }
 0x10e   : > { %4516 = vmatmul.mubr.f32.gmra.mrb[30].mxu0 %v2477_v49  ;;  %4174 = vmatprep.mubr.f32.mxu1 %v5202_v2 }
 0x10f   : > { %4550 = vmatprep.mubr.f32.mxu0 %v6743_v17  ;;  %4901 = vmatpush3.bf16.msra.mxu1 %v6789_v8  ;;  %v5207_v17 = vld [vmem:[%s5345_s7 + $0x110] sm:$0xff] }
 0x111   : > { %4175 = vmatmul.mubr.f32.gmra.mrb[16].mxu1 %v5203_v32 }
 0x112   : > { %4551 = vmatmul.mubr.f32.vlgmr.msra.gmra.mrb[0].mxu0 %v6744_v62  ;;  %4177 = vmatprep.mubr.f32.mxu1 %v5204_v0  ;;  %v5209_v62 = vld [vmem:[%s5345_s7 + $0x128] sm:$0xff]  ;;  %s3445_s7 = sshll.u32 %s6798_s18, 8 }
 0x113   : > { %4553 = vmatprep.mubr.f32.mxu0 %v6745_v18  ;;  %s6553_s26 = scalar_lea.vmem %s6610_s4, %s3445_s7 }
 0x115   : > { %4178 = vmatmul.mubr.f32.gmra.mrb[18].mxu1 %v5205_v58 }
 0x116   : > { %4554 = vmatmul.mubr.f32.gmra.mrb[2].mxu0 %v6746_v34  ;;  %4180 = vmatprep.mubr.f32.mxu1 %v5206_v31 }
 0x117   : > { %4556 = vmatprep.mubr.f32.mxu0 %v6747_v46 }
 0x119   : > { %4181 = vmatmul.mubr.f32.gmra.mrb[20].mxu1 %v5207_v17 }
 0x11a   : > { %4557 = vmatmul.mubr.f32.gmra.mrb[4].mxu0 %v6748_v16  ;;  %4183 = vmatprep.mubr.f32.mxu1 %v5208_v1 }
 0x11b   : > { %4559 = vmatprep.mubr.f32.mxu0 %v6749_v51 }
 0x11d   : > { %4184 = vmatmul.mubr.f32.gmra.mrb[22].mxu1 %v5209_v62 }
 0x11e   : > { %4560 = vmatmul.mubr.f32.gmra.mrb[6].mxu0 %v6750_v26  ;;  %4186 = vmatprep.mubr.f32.mxu1 %v5844_v3  ;;  %v2755_v3 = vrot.slane %v6328_v27, 2 }
 0x11f   : > { %4562 = vmatprep.mubr.f32.mxu0 %v5913_v20  ;;  %v6792_v20 = vld [vmem:[#allocation50_spill] sm:$0xff] }
 0x121   : > { %4187 = vmatmul.mubr.f32.gmra.mrb[24].mxu1 %v5847_v9  ;;  %v6790_v9 = vld [vmem:[#allocation45_spill] sm:$0xff] }
 0x122   : > { %4563 = vmatmul.mubr.f32.gmra.mrb[8].mxu0 %v6751_v30  ;;  %4189 = vmatprep.mubr.f32.mxu1 %v5881_v25  ;;  %v2757_v25 = vrot.slane %v6448_v45, 2 }
 0x123   : > { %4565 = vmatprep.mubr.f32.mxu0 %v5950_v11 }
 0x125   : > { %4190 = vmatmul.mubr.f32.gmra.mrb[26].mxu1 %v5884_v57 }
 0x126   : > { %4566 = vmatmul.mubr.f32.gmra.mrb[10].mxu0 %v5969_v43  ;;  %4192 = vmatprep.mubr.f32.mxu1 %v5918_v12  ;;  %v6791_v12 = vld [vmem:[#allocation49_spill] sm:$0xff] }
 0x127   : > { %4568 = vmatprep.mubr.f32.mxu0 %v5976_v19  ;;  %v2754_v19 = vrot.slane %v6321_v52, 2 }
 0x129   : > { %4193 = vmatmul.mubr.f32.gmra.mrb[28].mxu1 %v5921_v39  ;;  %v2756_v57 = vsel %vm970_vm1, %v2754_v19, %v2755_v3  ;;  %v2758_v39 = vsel %vm970_vm1, %v2755_v3, %v2757_v25 }
 0x12a   : > { %4569 = vmatmul.mubr.f32.gmra.mrb[12].mxu0 %v5994_v6  ;;  %4195 = vmatprep.mubr.f32.mxu1 %v6102_v61 }
 0x12b   : > { %4571 = vmatprep.mubr.f32.mxu0 %v5998_v33 }
 0x12d   : > { %4196 = vmatmul.mubr.f32.gmra.mrb[30].mxu1 %v6106_v41 }
 0x12e   : > { %4572 = vmatmul.mubr.f32.gmra.mrb[14].mxu0 %v6015_v37  ;;  %4254 = vmatprep.mubr.f32.mxu1 %v6769_v29 }
 0x12f   : > { %4574 = vmatprep.mubr.f32.mxu0 %v6019_v53 }
 0x131   : > { %4255 = vmatmul.mubr.f32.vlgmr.msra.gmra.mrb[16].mxu1 %v6770_v23 }
 0x132   : > { %4575 = vmatmul.mubr.f32.gmra.mrb[16].mxu0 %v6036_v36  ;;  %4257 = vmatprep.mubr.f32.mxu1 %v6771_v35 }
 0x133   : > { %4577 = vmatprep.mubr.f32.mxu0 %v6040_v24 }
 0x135   : > { %4258 = vmatmul.mubr.f32.gmra.mrb[18].mxu1 %v6772_v50 }
 0x136   : > { %4578 = vmatmul.mubr.f32.gmra.mrb[18].mxu0 %v6055_v40  ;;  %4260 = vmatprep.mubr.f32.mxu1 %v6773_v5 }
 0x137   : > { %4580 = vmatprep.mubr.f32.mxu0 %v6059_v60 }
 0x139   : > { %4261 = vmatmul.mubr.f32.gmra.mrb[20].mxu1 %v6775_v38 }
 0x13a   : > { %4581 = vmatmul.mubr.f32.gmra.mrb[20].mxu0 %v6074_v55  ;;  %4263 = vmatprep.mubr.f32.mxu1 %v6776_v56 }
 0x13b   : > { %4583 = vmatprep.mubr.f32.mxu0 %v6078_v28 }
 0x13d   : > { %4264 = vmatmul.mubr.f32.gmra.mrb[22].mxu1 %v6778_v59 }
 0x13e   : > { %4584 = vmatmul.mubr.f32.gmra.mrb[22].mxu0 %v6764_v13  ;;  %4266 = vmatprep.mubr.f32.mxu1 %v6779_v44 }
 0x13f   : > { %4586 = vmatprep.mubr.f32.mxu0 %v6097_v54 }
 0x141   : > { %4267 = vmatmul.mubr.f32.gmra.mrb[24].mxu1 %v6781_v14 }
 0x142   : > { %4587 = vmatmul.mubr.f32.gmra.mrb[24].mxu0 %v6118_v47  ;;  %4269 = vmatprep.mubr.f32.mxu1 %v6782_v48 }
 0x143   : > { %4589 = vmatprep.mubr.f32.mxu0 %v6768_v21 }
 0x145   : > { %4270 = vmatmul.mubr.f32.gmra.mrb[26].mxu1 %v6784_v7 }
 0x146   : > { %4590 = vmatmul.mubr.f32.gmra.mrb[26].mxu0 %v6140_v22  ;;  %4272 = vmatprep.mubr.f32.mxu1 %v6790_v9 }
 0x147   : > { %4592 = vmatprep.mubr.f32.mxu0 %v6791_v12 }
 0x149   : > { %4273 = vmatmul.mubr.f32.gmra.mrb[28].mxu1 %v6787_v42 }
 0x14a   : > { %4593 = vmatmul.mubr.f32.gmra.mrb[28].mxu0 %v6792_v20  ;;  %4275 = vmatprep.mubr.f32.mxu1 %v6445_v10 }
 0x14b   : > { %4595 = vmatprep.mubr.f32.mxu0 %v2756_v57 }
 0x14d   : > { %4276 = vmatmul.mubr.f32.gmra.mrb[30].mxu1 %v6456_v4 }
 0x14e   : > { %4596 = vmatmul.mubr.f32.gmra.mrb[30].mxu0 %v2758_v39 }
 0x1c4   : > { %v4152_v11 = vpop.f32.mrb[0].mxu1 }
 0x1c5   : > { %v1440_v43 = vpop.f32.mrb[1].mxu1 }
 0x1c8   : > { %v4155_v41 = vpop.f32.mrb[2].mxu1 }
 0x1c9   : > { %v1450_v6 = vpop.f32.mrb[3].mxu1 }
 0x1cc   : > { %v4158_v33 = vpop.f32.mrb[4].mxu1 }
 0x1cd   : > { %v1460_v37 = vpop.f32.mrb[5].mxu1 }
 0x1d0   : > { %v4161_v53 = vpop.f32.mrb[6].mxu1 }
 0x1d1   : > { %v1470_v36 = vpop.f32.mrb[7].mxu1 }
 0x1d4   : > { %v4164_v24 = vpop.f32.mrb[8].mxu1 }
 0x1d5   : > { %v1480_v40 = vpop.f32.mrb[9].mxu1 }
 0x1d8   : > { %v6537_v60 = vpop.f32.mrb[10].mxu1 }
 0x1d9   : > { %v6539_v55 = vpop.f32.mrb[11].mxu1 }
 0x1dc   : > { %v6541_v28 = vpop.f32.mrb[12].mxu1 }
 0x1dd   : > { %v6543_v54 = vpop.f32.mrb[13].mxu1 }
 0x1e0   : > { %v6545_v61 = vpop.f32.mrb[14].mxu1 }
 0x1e1   : > { %v6547_v47 = vpop.f32.mrb[15].mxu1 }
 0x1e5   : > { %v4552_v22 = vpop.f32.mrb[0].mxu0 }
 0x1e6   : > { %v4902_v42 = vadd.f32 %v4552_v22, %v4152_v11  ;;  %v2844_v18 = vpop.f32.mrb[1].mxu0 }
 0x1e7   : > { %v4903_v34 = vadd.f32 %v2844_v18, %v1440_v43 }
 0x1e8   : > { %v3073_v46 = vmul.f32 %v4902_v42, %v4902_v42  ;;  %3145 = vst [vmem:[%s6553_s26 + $0x8] sm:$0xff] %v4902_v42 }
 0x1e9   : > { %v3035_v16 = vadd.f32 %v4903_v34, %v4902_v42  ;;  %v3072_v51 = vmul.f32 %v4903_v34, %v4903_v34  ;;  %3144 = vst [vmem:[%s6553_s26] sm:$0xff] %v4903_v34  ;;  %v4555_v26 = vpop.f32.mrb[2].mxu0 }
 0x1ea   : > { %v4904_v52 = vadd.f32 %v4555_v26, %v4155_v41  ;;  %v2854_v30 = vpop.f32.mrb[3].mxu0 }
 0x1eb   : > { %v3104_v27 = vadd.f32 %v3073_v46, %v3072_v51  ;;  %v4905_v13 = vadd.f32 %v2854_v30, %v1450_v6 }
 0x1ec   : > { %3147 = vst [vmem:[%s6553_s26 + $0x18] sm:$0xff] %v4904_v52  ;;  %v3075_v5 = vmul.f32 %v4904_v52, %v4904_v52 }
 0x1ed   : > { %v3036_v21 = vadd.f32 %v4905_v13, %v3035_v16  ;;  %v3074_v29 = vmul.f32 %v4905_v13, %v4905_v13  ;;  %3146 = vst [vmem:[%s6553_s26 + $0x10] sm:$0xff] %v4905_v13  ;;  %v4558_v23 = vpop.f32.mrb[4].mxu0 }
 0x1ee   : > { %v4906_v35 = vadd.f32 %v4558_v23, %v4158_v33  ;;  %v2864_v50 = vpop.f32.mrb[5].mxu0 }
 0x1ef   : > { %v3105_v38 = vadd.f32 %v3104_v27, %v3074_v29  ;;  %v4907_v56 = vadd.f32 %v2864_v50, %v1460_v37  ;;  %v3037_v59 = vadd.f32 %v4904_v52, %v3036_v21 }
 0x1f0   : > { %3149 = vst [vmem:[%s6553_s26 + $0x28] sm:$0xff] %v4906_v35  ;;  %v3077_v4 = vmul.f32 %v4906_v35, %v4906_v35 }
 0x1f1   : > { %v3038_v44 = vadd.f32 %v4907_v56, %v3037_v59  ;;  %v3076_v14 = vmul.f32 %v4907_v56, %v4907_v56  ;;  %v3106_v48 = vadd.f32 %v3105_v38, %v3075_v5  ;;  %3148 = vst [vmem:[%s6553_s26 + $0x20] sm:$0xff] %v4907_v56  ;;  %v4561_v7 = vpop.f32.mrb[6].mxu0 }
 0x1f2   : > { %v4908_v10 = vadd.f32 %v4561_v7, %v4161_v53  ;;  %v2874_v45 = vpop.f32.mrb[7].mxu0 }
 0x1f3   : > { %v3107_v63 = vadd.f32 %v3106_v48, %v3076_v14  ;;  %v4909_v49 = vadd.f32 %v2874_v45, %v1470_v36  ;;  %v3039_v8 = vadd.f32 %v4906_v35, %v3038_v44 }
 0x1f4   : > { %3151 = vst [vmem:[%s6553_s26 + $0x38] sm:$0xff] %v4908_v10  ;;  %v3079_v17 = vmul.f32 %v4908_v10, %v4908_v10 }
 0x1f5   : > { %v3040_v15 = vadd.f32 %v4909_v49, %v3039_v8  ;;  %v3078_v2 = vmul.f32 %v4909_v49, %v4909_v49  ;;  %v3108_v32 = vadd.f32 %v3107_v63, %v3077_v4  ;;  %3150 = vst [vmem:[%s6553_s26 + $0x30] sm:$0xff] %v4909_v49  ;;  %v4564_v0 = vpop.f32.mrb[8].mxu0 }
 0x1f6   : > { %v4910_v58 = vadd.f32 %v4564_v0, %v4164_v24  ;;  %v2884_v31 = vpop.f32.mrb[9].mxu0 }
 0x1f7   : > { %v3109_v1 = vadd.f32 %v3108_v32, %v3078_v2  ;;  %v4911_v62 = vadd.f32 %v2884_v31, %v1480_v40  ;;  %v3041_v19 = vadd.f32 %v4908_v10, %v3040_v15 }
 0x1f8   : > { %3153 = vst [vmem:[%s6553_s26 + $0x48] sm:$0xff] %v4910_v58  ;;  %v3081_v39 = vmul.f32 %v4910_v58, %v4910_v58 }
 0x1f9   : > { %v3042_v3 = vadd.f32 %v4911_v62, %v3041_v19  ;;  %v3080_v9 = vmul.f32 %v4911_v62, %v4911_v62  ;;  %v3110_v12 = vadd.f32 %v3109_v1, %v3079_v17  ;;  %3152 = vst [vmem:[%s6553_s26 + $0x40] sm:$0xff] %v4911_v62  ;;  %v4567_v25 = vpop.f32.mrb[10].mxu0 }
 0x1fa   : > { %v4912_v57 = vadd.f32 %v4567_v25, %v6537_v60  ;;  %v2894_v20 = vpop.f32.mrb[11].mxu0 }
 0x1fb   : > { %v3111_v11 = vadd.f32 %v3110_v12, %v3080_v9  ;;  %v4913_v43 = vadd.f32 %v2894_v20, %v6539_v55  ;;  %v3043_v41 = vadd.f32 %v4910_v58, %v3042_v3 }
 0x1fc   : > { %3155 = vst [vmem:[%s6553_s26 + $0x58] sm:$0xff] %v4912_v57  ;;  %v3083_v40 = vmul.f32 %v4912_v57, %v4912_v57 }
 0x1fd   : > { %v3044_v6 = vadd.f32 %v4913_v43, %v3043_v41  ;;  %v3082_v33 = vmul.f32 %v4913_v43, %v4913_v43  ;;  %v3112_v37 = vadd.f32 %v3111_v11, %v3081_v39  ;;  %3154 = vst [vmem:[%s6553_s26 + $0x50] sm:$0xff] %v4913_v43  ;;  %v4570_v53 = vpop.f32.mrb[12].mxu0 }
 0x1fe   : > { %v4914_v36 = vadd.f32 %v4570_v53, %v6541_v28  ;;  %v2904_v24 = vpop.f32.mrb[13].mxu0 }
 0x1ff   : > { %v3113_v60 = vadd.f32 %v3112_v37, %v3082_v33  ;;  %v4915_v22 = vadd.f32 %v2904_v24, %v6543_v54  ;;  %v3045_v42 = vadd.f32 %v4912_v57, %v3044_v6 }
 0x200   : > { %3157 = vst [vmem:[%s6553_s26 + $0x68] sm:$0xff] %v4914_v36  ;;  %v3085_v26 = vmul.f32 %v4914_v36, %v4914_v36 }
 0x201   : > { %v3046_v18 = vadd.f32 %v4915_v22, %v3045_v42  ;;  %v3084_v55 = vmul.f32 %v4915_v22, %v4915_v22  ;;  %v3114_v34 = vadd.f32 %v3113_v60, %v3083_v40  ;;  %3156 = vst [vmem:[%s6553_s26 + $0x60] sm:$0xff] %v4915_v22  ;;  %v4573_v46 = vpop.f32.mrb[14].mxu0 }
 0x202   : > { %v4916_v16 = vadd.f32 %v4573_v46, %v6545_v61  ;;  %v2914_v51 = vpop.f32.mrb[15].mxu0 }
 0x203   : > { %v3115_v52 = vadd.f32 %v3114_v34, %v3084_v55  ;;  %v4917_v28 = vadd.f32 %v2914_v51, %v6547_v47  ;;  %v3047_v30 = vadd.f32 %v4914_v36, %v3046_v18 }
 0x204   : > { %3159 = vst [vmem:[%s6553_s26 + $0x78] sm:$0xff] %v4916_v16  ;;  %v4256_v27 = vpop.f32.mrb[16].mxu1  ;;  %v3087_v5 = vmul.f32 %v4916_v16, %v4916_v16 }
 0x205   : > { %v3048_v54 = vadd.f32 %v4917_v28, %v3047_v30  ;;  %v3086_v13 = vmul.f32 %v4917_v28, %v4917_v28  ;;  %v3116_v21 = vadd.f32 %v3115_v52, %v3085_v26  ;;  %3158 = vst [vmem:[%s6553_s26 + $0x70] sm:$0xff] %v4917_v28  ;;  %v4576_v29 = vpop.f32.mrb[16].mxu0  ;;  %v1804_v23 = vpop.f32.mrb[17].mxu1 }
 0x206   : > { %v4918_v35 = vadd.f32 %v4576_v29, %v4256_v27  ;;  %v2924_v50 = vpop.f32.mrb[17].mxu0 }
 0x207   : > { %v3117_v61 = vadd.f32 %v3116_v21, %v3086_v13  ;;  %v4919_v38 = vadd.f32 %v2924_v50, %v1804_v23  ;;  %v3049_v56 = vadd.f32 %v4916_v16, %v3048_v54 }
 0x208   : > { %3161 = vst [vmem:[%s6553_s26 + $0x88] sm:$0xff] %v4918_v35  ;;  %v4259_v47 = vpop.f32.mrb[18].mxu1  ;;  %v3089_v4 = vmul.f32 %v4918_v35, %v4918_v35 }
 0x209   : > { %v3050_v59 = vadd.f32 %v4919_v38, %v3049_v56  ;;  %v3088_v44 = vmul.f32 %v4919_v38, %v4919_v38  ;;  %v3118_v14 = vadd.f32 %v3117_v61, %v3087_v5  ;;  %3160 = vst [vmem:[%s6553_s26 + $0x80] sm:$0xff] %v4919_v38  ;;  %v4579_v48 = vpop.f32.mrb[18].mxu0  ;;  %v1814_v7 = vpop.f32.mrb[19].mxu1 }
 0x20a   : > { %v4920_v10 = vadd.f32 %v4579_v48, %v4259_v47  ;;  %v2934_v45 = vpop.f32.mrb[19].mxu0 }
 0x20b   : > { %v3119_v63 = vadd.f32 %v3118_v14, %v3088_v44  ;;  %v4921_v49 = vadd.f32 %v2934_v45, %v1814_v7  ;;  %v3051_v8 = vadd.f32 %v4918_v35, %v3050_v59 }
 0x20c   : > { %3163 = vst [vmem:[%s6553_s26 + $0x98] sm:$0xff] %v4920_v10  ;;  %v4262_v15 = vpop.f32.mrb[20].mxu1  ;;  %v3091_v62 = vmul.f32 %v4920_v10, %v4920_v10 }
 0x20d   : > { %v3052_v2 = vadd.f32 %v4921_v49, %v3051_v8  ;;  %v3090_v32 = vmul.f32 %v4921_v49, %v4921_v49  ;;  %v3120_v0 = vadd.f32 %v3119_v63, %v3089_v4  ;;  %3162 = vst [vmem:[%s6553_s26 + $0x90] sm:$0xff] %v4921_v49  ;;  %v4582_v58 = vpop.f32.mrb[20].mxu0  ;;  %v1824_v31 = vpop.f32.mrb[21].mxu1 }
 0x20e   : > { %v4922_v17 = vadd.f32 %v4582_v58, %v4262_v15  ;;  %v2944_v1 = vpop.f32.mrb[21].mxu0 }
 0x20f   : > { %v3121_v19 = vadd.f32 %v3120_v0, %v3090_v32  ;;  %v4923_v3 = vadd.f32 %v2944_v1, %v1824_v31  ;;  %v3053_v9 = vadd.f32 %v4920_v10, %v3052_v2 }
 0x210   : > { %3165 = vst [vmem:[%s6553_s26 + $0xa8] sm:$0xff] %v4922_v17  ;;  %v4265_v12 = vpop.f32.mrb[22].mxu1  ;;  %v3093_v6 = vmul.f32 %v4922_v17, %v4922_v17 }
 0x211   : > { %v3054_v25 = vadd.f32 %v4923_v3, %v3053_v9  ;;  %v3092_v57 = vmul.f32 %v4923_v3, %v4923_v3  ;;  %v3122_v20 = vadd.f32 %v3121_v19, %v3091_v62  ;;  %3164 = vst [vmem:[%s6553_s26 + $0xa0] sm:$0xff] %v4923_v3  ;;  %v4585_v39 = vpop.f32.mrb[22].mxu0  ;;  %v1834_v11 = vpop.f32.mrb[23].mxu1 }
 0x212   : > { %v4924_v43 = vadd.f32 %v4585_v39, %v4265_v12  ;;  %v2954_v41 = vpop.f32.mrb[23].mxu0 }
 0x213   : > { %v3123_v33 = vadd.f32 %v3122_v20, %v3092_v57  ;;  %v4925_v37 = vadd.f32 %v2954_v41, %v1834_v11  ;;  %v3055_v53 = vadd.f32 %v4922_v17, %v3054_v25 }
 0x214   : > { %3167 = vst [vmem:[%s6553_s26 + $0xb8] sm:$0xff] %v4924_v43  ;;  %v4268_v36 = vpop.f32.mrb[24].mxu1  ;;  %v3095_v34 = vmul.f32 %v4924_v43, %v4924_v43 }
 0x215   : > { %v3056_v24 = vadd.f32 %v4925_v37, %v3055_v53  ;;  %v3094_v40 = vmul.f32 %v4925_v37, %v4925_v37  ;;  %v3124_v60 = vadd.f32 %v3123_v33, %v3093_v6  ;;  %3166 = vst [vmem:[%s6553_s26 + $0xb0] sm:$0xff] %v4925_v37  ;;  %v4588_v22 = vpop.f32.mrb[24].mxu0  ;;  %v1844_v42 = vpop.f32.mrb[25].mxu1 }
 0x216   : > { %v4926_v18 = vadd.f32 %v4588_v22, %v4268_v36  ;;  %v2964_v55 = vpop.f32.mrb[25].mxu0 }
 0x217   : > { %v3125_v46 = vadd.f32 %v3124_v60, %v3094_v40  ;;  %v4927_v16 = vadd.f32 %v2964_v55, %v1844_v42  ;;  %v3057_v51 = vadd.f32 %v4924_v43, %v3056_v24 }
 0x218   : > { %3169 = vst [vmem:[%s6553_s26 + $0xc8] sm:$0xff] %v4926_v18  ;;  %v4271_v26 = vpop.f32.mrb[26].mxu1  ;;  %v3097_v29 = vmul.f32 %v4926_v18, %v4926_v18 }
 0x219   : > { %v3058_v52 = vadd.f32 %v4927_v16, %v3057_v51  ;;  %v3096_v28 = vmul.f32 %v4927_v16, %v4927_v16  ;;  %v3126_v30 = vadd.f32 %v3125_v46, %v3095_v34  ;;  %3168 = vst [vmem:[%s6553_s26 + $0xc0] sm:$0xff] %v4927_v16  ;;  %v4591_v27 = vpop.f32.mrb[26].mxu0  ;;  %v1854_v54 = vpop.f32.mrb[27].mxu1 }
 0x21a   : > { %v4928_v13 = vadd.f32 %v4591_v27, %v4271_v26  ;;  %v2974_v21 = vpop.f32.mrb[27].mxu0 }
 0x21b   : > { %v3127_v23 = vadd.f32 %v3126_v30, %v3096_v28  ;;  %v4929_v35 = vadd.f32 %v2974_v21, %v1854_v54  ;;  %v3059_v50 = vadd.f32 %v4926_v18, %v3058_v52 }
 0x21c   : > { %3171 = vst [vmem:[%s6553_s26 + $0xd8] sm:$0xff] %v4928_v13  ;;  %v4274_v5 = vpop.f32.mrb[28].mxu1  ;;  %v3099_v48 = vmul.f32 %v4928_v13, %v4928_v13 }
 0x21d   : > { %v3060_v61 = vadd.f32 %v4929_v35, %v3059_v50  ;;  %v3098_v38 = vmul.f32 %v4929_v35, %v4929_v35  ;;  %v3128_v56 = vadd.f32 %v3127_v23, %v3097_v29  ;;  %3170 = vst [vmem:[%s6553_s26 + $0xd0] sm:$0xff] %v4929_v35  ;;  %v4594_v47 = vpop.f32.mrb[28].mxu0  ;;  %v1864_v59 = vpop.f32.mrb[29].mxu1 }
 0x21e   : > { %v4930_v44 = vadd.f32 %v4594_v47, %v4274_v5  ;;  %v2984_v14 = vpop.f32.mrb[29].mxu0 }
 0x21f   : > { %v3129_v7 = vadd.f32 %v3128_v56, %v3098_v38  ;;  %v4931_v10 = vadd.f32 %v2984_v14, %v1864_v59  ;;  %v3061_v45 = vadd.f32 %v4928_v13, %v3060_v61 }
 0x220   : > { %3173 = vst [vmem:[%s6553_s26 + $0xe8] sm:$0xff] %v4930_v44  ;;  %v4277_v4 = vpop.f32.mrb[30].mxu1  ;;  %v3101_v58 = vmul.f32 %v4930_v44, %v4930_v44 }
 0x221   : > { %v3062_v63 = vadd.f32 %v4931_v10, %v3061_v45  ;;  %v3100_v49 = vmul.f32 %v4931_v10, %v4931_v10  ;;  %v3130_v8 = vadd.f32 %v3129_v7, %v3099_v48  ;;  %3172 = vst [vmem:[%s6553_s26 + $0xe0] sm:$0xff] %v4931_v10  ;;  %v4597_v15 = vpop.f32.mrb[30].mxu0  ;;  %v1874_v2 = vpop.f32.mrb[31].mxu1 }
 0x222   : > { %v4932_v32 = vadd.f32 %v4597_v15, %v4277_v4  ;;  %v2994_v0 = vpop.f32.mrb[31].mxu0 }
 0x223   : > { %v3131_v31 = vadd.f32 %v3130_v8, %v3100_v49  ;;  %v4933_v17 = vadd.f32 %v2994_v0, %v1874_v2  ;;  %v3063_v1 = vadd.f32 %v4930_v44, %v3062_v63 }
 0x224   : > { %3175 = vst [vmem:[%s6553_s26 + $0xf8] sm:$0xff] %v4932_v32  ;;  %v3103_v9 = vmul.f32 %v4932_v32, %v4932_v32 }
 0x225   : > { %v3064_v62 = vadd.f32 %v4933_v17, %v3063_v1  ;;  %v3102_v19 = vmul.f32 %v4933_v17, %v4933_v17  ;;  %v3132_v3 = vadd.f32 %v3131_v31, %v3101_v58  ;;  %3174 = vst [vmem:[%s6553_s26 + $0xf0] sm:$0xff] %v4933_v17 }
 0x227   : > { %v3065_v12 = vadd.f32 %v4932_v32, %v3064_v62  ;;  %v3133_v25 = vadd.f32 %v3132_v3, %v3102_v19 }
 0x229   : > { %v3066_v57 = vrot.slane %v3065_v12, 4  ;;  %v3134_v20 = vadd.f32 %v3133_v25, %v3103_v9 }
 0x22b   : > { %v3067_v39 = vadd.f32 %v3066_v57, %v3065_v12  ;;  %v3135_v11 = vrot.slane %v3134_v20, 4 }
 0x22d   : > { %v3068_v43 = vrot.slane %v3067_v39, 2  ;;  %v3136_v41 = vadd.f32 %v3135_v11, %v3134_v20 }
 0x22f   : > { %v3069_v6 = vadd.f32 %v3068_v43, %v3067_v39  ;;  %v3137_v33 = vrot.slane %v3136_v41, 2 }
 0x231   : > { %v3070_v37 = vrot.slane %v3069_v6, 1  ;;  %v3138_v53 = vadd.f32 %v3137_v33, %v3136_v41 }
 0x233   : > { %v3139_v36 = vrot.slane %v3138_v53, 1  ;;  %v3071_v24 = vadd.f32 %v3070_v37, %v3069_v6 }
 0x235   : > { %v3140_v40 = vadd.f32 %v3139_v36, %v3138_v53 }
 0x237   : > { %v3142_v60 = vsel %vm3141_vm2, %v3071_v24, %v3140_v40 }
 0x238   : > { %3143 = vst [vmem:[%s268_s30] sm:$0x3] %v3142_v60 }
 0x239 PF: > { %s16_s20 = sadd.s32 1, %s5232_s20   ;;  %s6793_s18 = smov %s5228_s19 }
 0x23a   : > { %p13_p5 = scmp.ge.s32.totalorder %s16_s20, 4   ;;  %s6794_s19 = smov %s6796_s2 }
 0x23c   :  { %15 = sbr.rel (!%p13_p5) target bundleno = 2 (0x2), region = 87 }

// kernel: _lambda_.4
= control target key start
LH: loop header
LB: loop body
LE: loop exit
PB: predicated region body
PF: predicated region fallthrough
CT: control target
= control target key end

     0   :  { %s5817_s18 = smov 0   ;;  %s5819_s19 = smov 0   ;;  %s7511_s0 = inlined_call_operand.vmem [shape: f32[2,18,18,128], index: 0, kind: input, shape index: {}]   ;;  %s7512_s1 = inlined_call_operand.vmem [shape: f32[3,3,128,128], index: 1, kind: input, shape index: {}]   ;;  %s7513_s2 = inlined_call_operand.vmem [shape: f32[1,128], index: 2, kind: input, shape index: {}]   ;;  %s7514_s3 = inlined_call_operand.vmem [shape: f32[1,128], index: 3, kind: input, shape index: {}]   ;;  %s7515_s4 = inlined_call_operand.vmem [shape: f32[2,16,16,128], index: 4, kind: output, shape index: {0}]   ;;  %s7516_s5 = inlined_call_operand.vmem [shape: f32[2,1,2,128], index: 5, kind: output, shape index: {1}]  }
   0x1   :  { %s5821_s20 = smov 0  }
   0x2 LB: > { %s28_s21 = sadd.s32 1, %s5780_s19  ;;  %p3838_p0 = scmp.ge.s32.totalorder %s5784_s20, 1  ;;  %s5784_s20 = sphi %s5821_s20, %s16_s20   ;;  %s5780_s19 = sphi %s5819_s19, %s7760_s19   ;;  %s5776_s18 = sphi %s5817_s18, %s7759_s18  }
   0x3   : > { %p30_p1 = scmp.ge.s32.totalorder %s28_s21, 2  ;;  %p206_p2 = scmp.lt.s32.totalorder %s5784_s20, 3 }
   0x5   : > { %s7762_s21 = smov (%p30_p1, %s28_s21), 0  ;;  %p207_p3 = pnand %p3838_p0, %p206_p2 }
   0x7   : > { %210 = sbr.rel (%p207_p3) target bundleno = 569 (0x239), region = 36 }
   0xe   : > { %v3845_v0 = vld [vmem:[%s7512_s1 + $0x80] sm:$0xff]  ;;  %v3846_v1 = vld [vmem:[%s7512_s1 + $0x88] sm:$0xff]  ;;  %p246_p4 = scmp.lt.s32.totalorder %s5776_s18, 1  ;;  %v3847_v5 = vld [vmem:[%s7512_s1 + $0x90] sm:$0xff]  ;;  %v7517_v7 = vmov 0.0   ;;  %v520_v9 = vlaneseq  ;;  %vm918_vm0 = vcmask 1046528  }
   0xf   : > { %v3924_v2 = vld [vmem:[%s7512_s1 + $0x200] sm:$0xff]  ;;  %v5174_v3 = vpack.c.bf16 %v3846_v1, %v3845_v0  ;;  %v3925_v4 = vld [vmem:[%s7512_s1 + $0x208] sm:$0xff]  ;;  %v3848_v6 = vld [vmem:[%s7512_s1 + $0x98] sm:$0xff]  ;;  %v5854_v8 = vrot.slane %v7517_v7, 1  ;;  %vm1498_vm3 = vcmask 1045504   ;;  %vm3669_vm4 = vcmask 1040384  }
  0x10   : > { %v5856_v10 = vpack.c.bf16 %v3925_v4, %v3924_v2  ;;  %v5178_v11 = vpack.c.bf16 %v3848_v6, %v3847_v5  ;;  %v3926_v12 = vld [vmem:[%s7512_s1 + $0x210] sm:$0xff]  ;;  %v3927_v13 = vld [vmem:[%s7512_s1 + $0x218] sm:$0xff]  ;;  %v3849_v14 = vld [vmem:[%s7512_s1 + $0xa0] sm:$0xff]  ;;  %s7764_s18 = smov (!%p246_p4, %s5776_s18), 1  ;;  %v5884_v20 = vshrl.u32 %v520_v9, 7 }
  0x11   : > { %7625 = vst [vmem:[#allocation2_spill] sm:$0xff] %v5854_v8  ;;  %5175 = vmatprep.subr.bf16.mxu1 %v5174_v3  ;;  %v5869_v15 = vpack.c.bf16 %v3927_v13, %v3926_v12  ;;  %v3850_v16 = vld [vmem:[%s7512_s1 + $0xa8] sm:$0xff]  ;;  %v3928_v17 = vld [vmem:[%s7512_s1 + $0x220] sm:$0xff]  ;;  %4486 = vmatprep.mubr.f32.mxu1 %v5854_v8  ;;  %s5734_s25 = smul.u32 432, %s7764_s18  ;;  %v3851_v22 = vld [vmem:[%s7512_s1 + $0xb0] sm:$0xff]  ;;  %s4021_s9 = sshll.u32 %s7764_s18, 8 }
  0x12   : > { %7626 = vst [vmem:[#allocation3_spill] sm:$0xff] %v5856_v10  ;;  %v3929_v18 = vld [vmem:[%s7512_s1 + $0x228] sm:$0xff]  ;;  %5303 = vmatprep.subr.bf16.mxu0 %v5856_v10  ;;  %5177 = vmatpush3.bf16.msra.mxu1 %v5174_v3  ;;  %v5182_v19 = vpack.c.bf16 %v3850_v16, %v3849_v14  ;;  %v3852_v23 = vld [vmem:[%s7512_s1 + $0xb8] sm:$0xff]  ;;  %v3930_v24 = vld [vmem:[%s7512_s1 + $0x230] sm:$0xff]  ;;  %v5932_v35 = vadd.s32 16, %v5884_v20  ;;  %vm578_vm1 = vcmp.ge.s32.totalorder %v5884_v20, 1  ;;  %s7458_s12 = scalar_lea.vmem %s7515_s4, %s4021_s9 }
  0x13   : > { %7627 = vst [vmem:[#allocation4_spill] sm:$0xff] %v5869_v15  ;;  %5305 = vmatpush3.bf16.msra.mxu0 %v5856_v10  ;;  %5179 = vmatprep.subr.bf16.mxu1 %v5178_v11  ;;  %v5887_v21 = vpack.c.bf16 %v3929_v18, %v3928_v17  ;;  %v3931_v25 = vld [vmem:[%s7512_s1 + $0x238] sm:$0xff]  ;;  %v3853_v26 = vld [vmem:[%s7512_s1 + $0xc0] sm:$0xff]  ;;  %v3854_v27 = vld [vmem:[%s7512_s1 + $0xc8] sm:$0xff]  ;;  %s5910_s15 = scalar_lea.vmem %s7511_s0, %s5734_s25  ;;  %v5186_v31 = vpack.c.bf16 %v3852_v23, %v3851_v22  ;;  %s3842_s13 = sshll.u32 %s7764_s18, 1 }
  0x14   : > { %5307 = vmatprep.subr.bf16.mxu0 %v5869_v15  ;;  %v3932_v28 = vld [vmem:[%s7512_s1 + $0x240] sm:$0xff]  ;;  %v3933_v29 = vld [vmem:[%s7512_s1 + $0x248] sm:$0xff]  ;;  %v3855_v30 = vld [vmem:[%s7512_s1 + $0xd0] sm:$0xff]  ;;  %v5935_v36 = vpack.c.bf16 %v3931_v25, %v3930_v24  ;;  %v5190_v43 = vpack.c.bf16 %v3854_v27, %v3853_v26  ;;  %vm637_vm2 = vcmp.le.s32.totalorder %v5932_v35, 16  ;;  %s268_s17 = scalar_lea.vmem %s7516_s5, %s3842_s13 }
  0x15   : > { %7628 = vst [vmem:[#allocation5_spill] sm:$0xff] %v5887_v21  ;;  %v3856_v32 = vld [vmem:[%s7512_s1 + $0xd8] sm:$0xff]  ;;  %v3934_v33 = vld [vmem:[%s7512_s1 + $0x250] sm:$0xff]  ;;  %v3857_v37 = vld [vmem:[%s7512_s1 + $0xe0] sm:$0xff]  ;;  %v5956_v44 = vpack.c.bf16 %v3933_v29, %v3932_v28 }
  0x16   : > { %5181 = vmatpush3.bf16.msra.mxu1 %v5178_v11  ;;  %v3935_v34 = vld [vmem:[%s7512_s1 + $0x258] sm:$0xff]  ;;  %7629 = vst [vmem:[#allocation6_spill] sm:$0xff] %v5935_v36  ;;  %v3858_v38 = vld [vmem:[%s7512_s1 + $0xe8] sm:$0xff]  ;;  %v276_v40 = vld [vmem:[%s5910_s15 + $0x20] sm:$0xff]  ;;  %v5968_v50 = vpack.c.bf16 %v3856_v32, %v3855_v30 }
  0x17   : > { %5309 = vmatpush3.bf16.msra.mxu0 %v5869_v15  ;;  %5183 = vmatprep.subr.bf16.mxu1 %v5182_v19  ;;  %v275_v39 = vld [vmem:[%s5910_s15 + $0x18] sm:$0xff]  ;;  %v5948_v41 = vld [vmem:[%s7513_s2] ss:$0 sm:$0xff]  ;;  %7630 = vst [vmem:[#allocation7_spill] sm:$0xff] %v5956_v44  ;;  %v3937_v46 = vld [vmem:[%s7512_s1 + $0x268] sm:$0xff]  ;;  %v5970_v51 = vpack.c.bf16 %v3935_v34, %v3934_v33  ;;  %v5982_v56 = vpack.c.bf16 %v3858_v38, %v3857_v37 }
  0x18   : > { %5311 = vmatprep.subr.bf16.mxu0 %v5887_v21  ;;  %v5953_v42 = vld [vmem:[%s7514_s3] ss:$0 sm:$0xff]  ;;  %v337_v47 = vmul.f32 %v5948_v41, %v275_v39  ;;  %v338_v48 = vmul.f32 %v5948_v41, %v276_v40  ;;  %v277_v49 = vld [vmem:[%s5910_s15 + $0x28] sm:$0x3]  ;;  %v3859_v52 = vld [vmem:[%s7512_s1 + $0xf0] sm:$0xff] }
  0x19   : > { %v3936_v45 = vld [vmem:[%s7512_s1 + $0x260] sm:$0xff]  ;;  %7631 = vst [vmem:[#allocation8_spill] sm:$0xff] %v5970_v51  ;;  %v3860_v53 = vld [vmem:[%s7512_s1 + $0xf8] sm:$0xff]  ;;  %v339_v54 = vmul.f32 %v5948_v41, %v277_v49  ;;  %v278_v55 = vld [vmem:[%s5910_s15 + $0x30] sm:$0xff] }
  0x1a   : > { %5185 = vmatpush3.bf16.msra.mxu1 %v5182_v19  ;;  %v397_v57 = vadd.f32 %v5953_v42, %v337_v47  ;;  %v398_v58 = vadd.f32 %v5953_v42, %v338_v48  ;;  %v279_v59 = vld [vmem:[%s5910_s15 + $0x38] sm:$0xff]  ;;  %v340_v60 = vmul.f32 %v5948_v41, %v278_v55  ;;  %v280_v61 = vld [vmem:[%s5910_s15 + $0x40] sm:$0x3]  ;;  %v5989_v62 = vpack.c.bf16 %v3937_v46, %v3936_v45  ;;  %v281_v2 = vld [vmem:[%s5910_s15 + $0x48] sm:$0xff] }
  0x1b   : > { %5313 = vmatpush3.bf16.msra.mxu0 %v5887_v21  ;;  %5187 = vmatprep.subr.bf16.mxu1 %v5186_v31  ;;  %v399_v63 = vadd.f32 %v5953_v42, %v339_v54  ;;  %v341_v0 = vmul.f32 %v5948_v41, %v279_v59  ;;  %v342_v1 = vmul.f32 %v5948_v41, %v280_v61  ;;  %v282_v3 = vld [vmem:[%s5910_s15 + $0x50] sm:$0xff]  ;;  %v3939_v12 = vld [vmem:[%s7512_s1 + $0x278] sm:$0xff]  ;;  %v854_v22 = vld [vmem:[%s7512_s1] sm:$0xff] }
  0x1c   : > { %5315 = vmatprep.subr.bf16.mxu0 %v5935_v36  ;;  %7632 = vst [vmem:[#allocation9_spill] sm:$0xff] %v5989_v62  ;;  %v5996_v4 = vpack.c.bf16 %v3860_v53, %v3859_v52  ;;  %v5998_v5 = vmax.f32 %v397_v57, 0.0  ;;  %v6000_v6 = vmax.f32 %v398_v58, 0.0  ;;  %v400_v9 = vadd.f32 %v5953_v42, %v340_v60  ;;  %v3938_v11 = vld [vmem:[%s7512_s1 + $0x270] sm:$0xff]  ;;  %v855_v23 = vld [vmem:[%s7512_s1 + $0x8] sm:$0xff]  ;;  %v3940_v28 = vld [vmem:[%s7512_s1 + $0x280] sm:$0xff] }
  0x1d   : > { %v453_v13 = vmax.f32 %v399_v63, 0.0  ;;  %v401_v14 = vadd.f32 %v5953_v42, %v341_v0  ;;  %v402_v16 = vadd.f32 %v5953_v42, %v342_v1  ;;  %v343_v17 = vmul.f32 %v5948_v41, %v281_v2  ;;  %v3941_v29 = vld [vmem:[%s7512_s1 + $0x288] sm:$0xff]  ;;  %v3942_v37 = vld [vmem:[%s7512_s1 + $0x290] sm:$0xff]  ;;  %v3943_v38 = vld [vmem:[%s7512_s1 + $0x298] sm:$0xff] }
  0x1e   : > { %5189 = vmatpush3.bf16.msra.mxu1 %v5186_v31  ;;  %7633 = vst [vmem:[#allocation10_spill] sm:$0xff] %v5998_v5  ;;  %7634 = vst [vmem:[#allocation11_spill] sm:$0xff] %v6000_v6  ;;  %v6017_v18 = vsel %vm578_vm1, %v5998_v5, 0.0  ;;  %v925_v19 = vrot.slane %v6000_v6, 1  ;;  %v6026_v24 = vmax.f32 %v400_v9, 0.0  ;;  %v344_v25 = vmul.f32 %v5948_v41, %v282_v3  ;;  %v856_v48 = vld [vmem:[%s7512_s1 + $0x10] sm:$0xff] }
  0x1f   : > { %5317 = vmatpush3.bf16.msra.mxu0 %v5935_v36  ;;  %5191 = vmatprep.subr.bf16.mxu1 %v5190_v43  ;;  %v924_v26 = vrot.slane %v6017_v18, 1  ;;  %v6032_v27 = vsel %vm637_vm2, %v453_v13, 0.0  ;;  %v6040_v30 = vmax.f32 %v401_v14, 0.0  ;;  %v456_v31 = vmax.f32 %v402_v16, 0.0  ;;  %v283_v40 = vld [vmem:[%s5910_s15 + $0x58] sm:$0x3] }
  0x20   : > { %5319 = vmatprep.subr.bf16.mxu0 %v5956_v44  ;;  %v6042_v32 = vpack.c.bf16 %v3939_v12, %v3938_v11  ;;  %v927_v33 = vrot.slane %v6032_v27, 1  ;;  %v6048_v34 = vsel %vm578_vm1, %v6026_v24, 0.0  ;;  %v403_v39 = vadd.f32 %v5953_v42, %v343_v17  ;;  %v857_v49 = vld [vmem:[%s7512_s1 + $0x18] sm:$0xff]  ;;  %v284_v52 = vld [vmem:[%s5910_s15 + $0x60] sm:$0xff]  ;;  %v285_v58 = vld [vmem:[%s5910_s15 + $0x68] sm:$0xff] }
  0x21   : > { %v929_v45 = vrot.slane %v6048_v34, 1  ;;  %v930_v46 = vrot.slane %v6040_v30, 1  ;;  %v6067_v47 = vsel %vm637_vm2, %v456_v31, 0.0  ;;  %v6078_v53 = vpack.c.bf16 %v855_v23, %v854_v22  ;;  %v286_v59 = vld [vmem:[%s5910_s15 + $0x70] sm:$0x3]  ;;  %v3944_v1 = vld [vmem:[%s7512_s1 + $0x2a0] sm:$0xff] }
  0x22   : > { %5193 = vmatpush3.bf16.msra.mxu1 %v5190_v43  ;;  %7635 = vst [vmem:[#allocation12_spill] sm:$0xff] %v6042_v32  ;;  %v6061_v43 = vsel %vm918_vm0, %v924_v26, %v925_v19  ;;  %v932_v54 = vrot.slane %v6067_v47, 1  ;;  %v404_v55 = vadd.f32 %v5953_v42, %v344_v25  ;;  %v6082_v57 = vmax.f32 %v403_v39, 0.0  ;;  %v3945_v2 = vld [vmem:[%s7512_s1 + $0x2a8] sm:$0xff]  ;;  %v287_v3 = vld [vmem:[%s5910_s15 + $0x78] sm:$0xff]  ;;  %v288_v14 = vld [vmem:[%s5910_s15 + $0x80] sm:$0xff] }
  0x23   : > { %5321 = vmatpush3.bf16.msra.mxu0 %v5956_v44  ;;  %5195 = vmatprep.subr.bf16.mxu1 %v5968_v50  ;;  %v6087_v60 = vsel %vm918_vm0, %v925_v19, %v927_v33  ;;  %v6089_v61 = vpack.c.bf16 %v3941_v29, %v3940_v28  ;;  %v6091_v63 = vpack.c.bf16 %v3943_v38, %v3942_v37  ;;  %v289_v37 = vld [vmem:[%s5910_s15 + $0x88] sm:$0x3]  ;;  %v1507_v21 = vrot.slane %v6032_v27, 2  ;;  %v300_v10 = vld [vmem:[%s5910_s15 + $0xe0] sm:$0xff] }
  0x24   : > { %5323 = vmatprep.subr.bf16.mxu0 %v5970_v51  ;;  %4806 = vmatprep.mubr.f32.mxu0 %v6061_v43  ;;  %v345_v0 = vmul.f32 %v5948_v41, %v283_v40  ;;  %v6103_v9 = vsel %vm918_vm0, %v929_v45, %v930_v46  ;;  %v6105_v11 = vmax.f32 %v404_v55, 0.0  ;;  %v6107_v12 = vpack.c.bf16 %v857_v49, %v856_v48 }
  0x25   : > { %7636 = vst [vmem:[#allocation13_spill] sm:$0xff] %v6103_v9  ;;  %v346_v13 = vmul.f32 %v5948_v41, %v284_v52  ;;  %v6116_v16 = vsel %vm578_vm1, %v6082_v57, 0.0  ;;  %v347_v17 = vmul.f32 %v5948_v41, %v285_v58  ;;  %v348_v19 = vmul.f32 %v5948_v41, %v286_v59  ;;  %v3947_v52 = vld [vmem:[%s7512_s1 + $0x2b8] sm:$0xff] }
  0x26   : > { %5197 = vmatpush3.bf16.msra.mxu1 %v5968_v50  ;;  %v405_v50 = vadd.f32 %v5953_v42, %v345_v0  ;;  %v6123_v22 = vsel %vm918_vm0, %v930_v46, %v932_v54  ;;  %v6125_v23 = vpack.c.bf16 %v3945_v2, %v3944_v1  ;;  %v349_v26 = vmul.f32 %v5948_v41, %v287_v3  ;;  %v858_v0 = vld [vmem:[%s7512_s1 + $0x20] sm:$0xff]  ;;  %v859_v1 = vld [vmem:[%s7512_s1 + $0x28] sm:$0xff] }
  0x27   : > { %5325 = vmatpush3.bf16.msra.mxu0 %v5970_v51  ;;  %5199 = vmatprep.subr.bf16.mxu1 %v5982_v56  ;;  %7637 = vst [vmem:[#allocation14_spill] sm:$0xff] %v6123_v22  ;;  %v406_v25 = vadd.f32 %v5953_v42, %v346_v13  ;;  %v407_v29 = vadd.f32 %v5953_v42, %v347_v17  ;;  %v934_v38 = vrot.slane %v6116_v16, 1  ;;  %v935_v39 = vrot.slane %v6105_v11, 1  ;;  %v3948_v3 = vld [vmem:[%s7512_s1 + $0x2c0] sm:$0xff]  ;;  %v298_v51 = vld [vmem:[%s5910_s15 + $0xd0] sm:$0x3] }
  0x28   : > { %5327 = vmatprep.subr.bf16.mxu0 %v5989_v62  ;;  %v459_v28 = vmax.f32 %v405_v50, 0.0  ;;  %v408_v31 = vadd.f32 %v5953_v42, %v348_v19  ;;  %v350_v33 = vmul.f32 %v5948_v41, %v288_v14  ;;  %v409_v45 = vadd.f32 %v5953_v42, %v349_v26  ;;  %v290_v19 = vld [vmem:[%s5910_s15 + $0x90] sm:$0xff] }
  0x29   : > { %v6136_v40 = vmax.f32 %v406_v25, 0.0  ;;  %v6145_v48 = vmax.f32 %v407_v29, 0.0  ;;  %v351_v2 = vmul.f32 %v5948_v41, %v289_v37  ;;  %v291_v25 = vld [vmem:[%s5910_s15 + $0x98] sm:$0xff]  ;;  %v6185_v26 = vsel %vm918_vm0, %v934_v38, %v935_v39  ;;  %v292_v37 = vld [vmem:[%s5910_s15 + $0xa0] sm:$0x3] }
  0x2a   : > { %5201 = vmatpush3.bf16.msra.mxu1 %v5982_v56  ;;  %v6143_v46 = vsel %vm637_vm2, %v459_v28, 0.0  ;;  %v462_v49 = vmax.f32 %v408_v31, 0.0  ;;  %v3946_v56 = vld [vmem:[%s7512_s1 + $0x2b0] sm:$0xff]  ;;  %v410_v54 = vadd.f32 %v5953_v42, %v350_v33  ;;  %v6161_v59 = vmax.f32 %v409_v45, 0.0  ;;  %7640 = vst [vmem:[#allocation17_spill] sm:$0xff] %v6185_v26  ;;  %v3949_v33 = vld [vmem:[%s7512_s1 + $0x2c8] sm:$0xff] }
  0x2b   : > { %7638 = vst [vmem:[#allocation15_spill] sm:$0xff] %v6136_v40  ;;  %5329 = vmatpush3.bf16.msra.mxu0 %v5989_v62  ;;  %5203 = vmatprep.subr.bf16.mxu1 %v5996_v4  ;;  %v937_v55 = vrot.slane %v6143_v46, 1  ;;  %v6159_v58 = vsel %vm578_vm1, %v6136_v40, 0.0  ;;  %v940_v14 = vrot.slane %v6145_v48, 1  ;;  %v6187_v28 = vpack.c.bf16 %v3947_v52, %v3946_v56  ;;  %v293_v45 = vld [vmem:[%s5910_s15 + $0xa8] sm:$0xff]  ;;  %v294_v52 = vld [vmem:[%s5910_s15 + $0xb0] sm:$0xff] }
  0x2c   : > { %5331 = vmatprep.subr.bf16.mxu0 %v6042_v32  ;;  %7639 = vst [vmem:[#allocation16_spill] sm:$0xff] %v6161_v59  ;;  %v939_v13 = vrot.slane %v6159_v58, 1  ;;  %v6177_v50 = vsel %vm637_vm2, %v462_v49, 0.0  ;;  %v6179_v17 = vmax.f32 %v410_v54, 0.0  ;;  %v6192_v29 = vsel %vm578_vm1, %v6161_v59, 0.0 }
  0x2d   : > { %v411_v31 = vadd.f32 %v5953_v42, %v351_v2  ;;  %v942_v49 = vrot.slane %v6177_v50, 1  ;;  %v6209_v56 = vpack.c.bf16 %v859_v1, %v858_v0  ;;  %v944_v54 = vrot.slane %v6192_v29, 1  ;;  %v295_v1 = vld [vmem:[%s5910_s15 + $0xb8] sm:$0x3]  ;;  %v310_v40 = vld [vmem:[%s5910_s15 + $0x130] sm:$0x3] }
  0x2e   : > { %5205 = vmatpush3.bf16.msra.mxu1 %v5996_v4  ;;  %v6203_v4 = vsel %vm918_vm0, %v935_v39, %v937_v55  ;;  %v6206_v38 = vsel %vm918_vm0, %v939_v13, %v940_v14  ;;  %v352_v7 = vmul.f32 %v5948_v41, %v290_v19  ;;  %v945_v39 = vrot.slane %v6179_v17, 1 }
  0x2f   : > { %5333 = vmatpush3.bf16.msra.mxu0 %v6042_v32  ;;  %5207 = vmatprep.subr.bf16.mxu1 %v6078_v53  ;;  %7641 = vst [vmem:[#allocation18_spill] sm:$0xff] %v6203_v4  ;;  %7642 = vst [vmem:[#allocation19_spill] sm:$0xff] %v6206_v38  ;;  %v465_v2 = vmax.f32 %v411_v31, 0.0  ;;  %v353_v32 = vmul.f32 %v5948_v41, %v291_v25  ;;  %v6218_v55 = vpack.c.bf16 %v3949_v33, %v3948_v3  ;;  %v3950_v3 = vld [vmem:[%s7512_s1 + $0x2d0] sm:$0xff]  ;;  %v3951_v33 = vld [vmem:[%s7512_s1 + $0x2d8] sm:$0xff] }
  0x30   : > { %5335 = vmatprep.subr.bf16.mxu0 %v6089_v61  ;;  %v354_v13 = vmul.f32 %v5948_v41, %v292_v37  ;;  %v355_v0 = vmul.f32 %v5948_v41, %v293_v45  ;;  %v412_v25 = vadd.f32 %v5953_v42, %v352_v7  ;;  %v356_v37 = vmul.f32 %v5948_v41, %v294_v52 }
  0x31   : > { %4487 = vmatmul.mubr.f32.vlgmr.msra.gmra.mrb[0].mxu1 %v5854_v8  ;;  %v6227_v19 = vsel %vm637_vm2, %v465_v2, 0.0  ;;  %v413_v31 = vadd.f32 %v5953_v42, %v353_v32 }
  0x32   : > { %4807 = vmatmul.mubr.f32.vlgmr.msra.gmra.mrb[0].mxu0 %v6087_v60  ;;  %5209 = vmatpush3.bf16.msra.mxu1 %v6078_v53  ;;  %v6241_v53 = vsel %vm918_vm0, %v940_v14, %v942_v49  ;;  %v947_v7 = vrot.slane %v6227_v19, 1  ;;  %v414_v32 = vadd.f32 %v5953_v42, %v354_v13  ;;  %v415_v45 = vadd.f32 %v5953_v42, %v355_v0  ;;  %v296_v14 = vld [vmem:[%s5910_s15 + $0xc0] sm:$0xff] }
  0x33   : > { %5337 = vmatpush3.bf16.msra.mxu0 %v6089_v61  ;;  %4489 = vmatprep.mubr.f32.mxu1 %v6061_v43  ;;  %7643 = vst [vmem:[#allocation20_spill] sm:$0xff] %v6241_v53  ;;  %v6248_v2 = vmax.f32 %v412_v25, 0.0  ;;  %v6250_v52 = vmax.f32 %v413_v31, 0.0  ;;  %v416_v61 = vadd.f32 %v5953_v42, %v356_v37  ;;  %v357_v43 = vmul.f32 %v5948_v41, %v295_v1  ;;  %v860_v31 = vld [vmem:[%s7512_s1 + $0x30] sm:$0xff]  ;;  %v861_v1 = vld [vmem:[%s7512_s1 + $0x38] sm:$0xff]  ;;  %v3952_v37 = vld [vmem:[%s7512_s1 + $0x2e0] sm:$0xff] }
  0x34   : > { %4809 = vmatprep.mubr.f32.mxu0 %v6103_v9  ;;  %5339 = vmatprep.subr.bf16.mxu0 %v6091_v63  ;;  %v6258_v49 = vsel %vm918_vm0, %v944_v54, %v945_v39  ;;  %v468_v13 = vmax.f32 %v414_v32, 0.0  ;;  %v6260_v0 = vpack.c.bf16 %v3951_v33, %v3950_v3  ;;  %v6262_v25 = vmax.f32 %v415_v45, 0.0  ;;  %v3953_v32 = vld [vmem:[%s7512_s1 + $0x2e8] sm:$0xff] }
  0x35   : > { %7644 = vst [vmem:[#allocation21_spill] sm:$0xff] %v6248_v2  ;;  %4490 = vmatmul.mubr.f32.gmra.mrb[2].mxu1 %v6087_v60  ;;  %5211 = vmatprep.subr.bf16.mxu1 %v6107_v12  ;;  %7645 = vst [vmem:[#allocation22_spill] sm:$0xff] %v6258_v49  ;;  %v6275_v60 = vsel %vm578_vm1, %v6248_v2, 0.0  ;;  %v950_v54 = vrot.slane %v6250_v52, 1  ;;  %v6278_v3 = vmax.f32 %v416_v61, 0.0  ;;  %v417_v33 = vadd.f32 %v5953_v42, %v357_v43  ;;  %v297_v45 = vld [vmem:[%s5910_s15 + $0xc8] sm:$0xff] }
  0x36   : > { %7646 = vst [vmem:[#allocation23_spill] sm:$0xff] %v6262_v25  ;;  %4810 = vmatmul.mubr.f32.gmra.mrb[2].mxu0 %v6123_v22  ;;  %4492 = vmatprep.mubr.f32.mxu1 %v6103_v9  ;;  %v949_v8 = vrot.slane %v6275_v60, 1  ;;  %v6293_v61 = vsel %vm637_vm2, %v468_v13, 0.0  ;;  %v6298_v43 = vsel %vm578_vm1, %v6262_v25, 0.0  ;;  %v358_v62 = vmul.f32 %v5948_v41, %v296_v14 }
  0x37   : > { %5341 = vmatpush3.bf16.msra.mxu0 %v6091_v63  ;;  %4812 = vmatprep.mubr.f32.mxu0 %v6185_v26  ;;  %v6305_v63 = vsel %vm918_vm0, %v945_v39, %v947_v7  ;;  %v952_v44 = vrot.slane %v6293_v61, 1  ;;  %v5218_v36 = vpack.c.bf16 %v861_v1, %v860_v31  ;;  %v471_v13 = vmax.f32 %v417_v33, 0.0  ;;  %v3954_v39 = vld [vmem:[%s7512_s1 + $0x2f0] sm:$0xff]  ;;  %v863_v33 = vld [vmem:[%s7512_s1 + $0x48] sm:$0xff] }
  0x38   : > { %5343 = vmatprep.subr.bf16.mxu0 %v6125_v23  ;;  %5213 = vmatpush3.bf16.msra.mxu1 %v6107_v12  ;;  %7647 = vst [vmem:[#allocation24_spill] sm:$0xff] %v6305_v63  ;;  %v6311_v14 = vpack.c.bf16 %v3953_v32, %v3952_v37  ;;  %v359_v15 = vmul.f32 %v5948_v41, %v297_v45  ;;  %v954_v27 = vrot.slane %v6298_v43, 1  ;;  %v955_v7 = vrot.slane %v6278_v3, 1  ;;  %v299_v37 = vld [vmem:[%s5910_s15 + $0xd8] sm:$0xff] }
  0x39   : > { %4493 = vmatmul.mubr.f32.gmra.mrb[4].mxu1 %v6123_v22  ;;  %5215 = vmatprep.subr.bf16.mxu1 %v6209_v56  ;;  %v418_v12 = vadd.f32 %v5953_v42, %v358_v62  ;;  %v6324_v31 = vsel %vm637_vm2, %v471_v13, 0.0  ;;  %v360_v1 = vmul.f32 %v5948_v41, %v298_v51  ;;  %v862_v62 = vld [vmem:[%s7512_s1 + $0x40] sm:$0xff]  ;;  %v6337_v32 = vsel %vm918_vm0, %v949_v8, %v950_v54  ;;  %v3955_v13 = vld [vmem:[%s7512_s1 + $0x2f8] sm:$0xff]  ;;  %v3957_v8 = vld [vmem:[%s7512_s1 + $0x308] sm:$0xff] }
  0x3a   : > { %4813 = vmatmul.mubr.f32.gmra.mrb[4].mxu0 %v6203_v4  ;;  %4495 = vmatprep.mubr.f32.mxu1 %v6185_v26  ;;  %7648 = vst [vmem:[#allocation25_spill] sm:$0xff] %v6337_v32  ;;  %v419_v45 = vadd.f32 %v5953_v42, %v359_v15  ;;  %v1504_v26 = vrot.slane %v6017_v18, 2  ;;  %v6355_v15 = vsel %vm918_vm0, %v950_v54, %v952_v44  ;;  %v1505_v22 = vrot.slane %v6000_v6, 2  ;;  %v301_v54 = vld [vmem:[%s5910_s15 + $0xe8] sm:$0x3] }
  0x3b   : > { %5345 = vmatpush3.bf16.msra.mxu0 %v6125_v23  ;;  %4815 = vmatprep.mubr.f32.mxu0 %v6206_v38  ;;  %v6340_v51 = vmax.f32 %v418_v12, 0.0  ;;  %v3956_v23 = vld [vmem:[%s7512_s1 + $0x300] sm:$0xff]  ;;  %7650 = vst [vmem:[#allocation27_spill] sm:$0xff] %v6355_v15  ;;  %v957_v12 = vrot.slane %v6324_v31, 1  ;;  %v420_v18 = vadd.f32 %v5953_v42, %v360_v1  ;;  %v361_v44 = vmul.f32 %v5948_v41, %v299_v37 }
  0x3c   : > { %5347 = vmatprep.subr.bf16.mxu0 %v6187_v28  ;;  %5217 = vmatpush3.bf16.msra.mxu1 %v6209_v56  ;;  %v6362_v9 = vmax.f32 %v419_v45, 0.0  ;;  %v5222_v56 = vpack.c.bf16 %v863_v33, %v862_v62  ;;  %v6374_v1 = vsel %vm918_vm0, %v954_v27, %v955_v7  ;;  %v6376_v45 = vpack.c.bf16 %v3955_v13, %v3954_v39 }
  0x3d   : > { %7649 = vst [vmem:[#allocation26_spill] sm:$0xff] %v6340_v51  ;;  %4496 = vmatmul.mubr.f32.gmra.mrb[6].mxu1 %v6203_v4  ;;  %5219 = vmatprep.subr.bf16.mxu1 %v5218_v36  ;;  %v6367_v25 = vsel %vm578_vm1, %v6340_v51, 0.0  ;;  %7651 = vst [vmem:[#allocation28_spill] sm:$0xff] %v6374_v1  ;;  %v474_v4 = vmax.f32 %v420_v18, 0.0  ;;  %v6378_v2 = vpack.c.bf16 %v3957_v8, %v3956_v23  ;;  %v302_v23 = vld [vmem:[%s5910_s15 + $0xf0] sm:$0xff]  ;;  %v1509_v18 = vrot.slane %v6048_v34, 2 }
  0x3e   : > { %4816 = vmatmul.mubr.f32.gmra.mrb[6].mxu0 %v6241_v53  ;;  %4498 = vmatprep.mubr.f32.mxu1 %v6206_v38  ;;  %v959_v62 = vrot.slane %v6367_v25, 1  ;;  %v960_v33 = vrot.slane %v6362_v9, 1  ;;  %v362_v37 = vmul.f32 %v5948_v41, %v300_v10  ;;  %v421_v27 = vadd.f32 %v5953_v42, %v361_v44 }
  0x3f   : > { %5349 = vmatpush3.bf16.msra.mxu0 %v6187_v28  ;;  %4818 = vmatprep.mubr.f32.mxu0 %v6258_v49  ;;  %v6388_v39 = vsel %vm918_vm0, %v955_v7, %v957_v12  ;;  %v6391_v28 = vsel %vm1498_vm3, %v1504_v26, %v1505_v22  ;;  %v363_v13 = vmul.f32 %v5948_v41, %v301_v54  ;;  %v6398_v8 = vsel %vm637_vm2, %v474_v4, 0.0  ;;  %v304_v26 = vld [vmem:[%s5910_s15 + $0x100] sm:$0x3] }
  0x40   : > { %5351 = vmatprep.subr.bf16.mxu0 %v6218_v55  ;;  %7652 = vst [vmem:[#allocation29_spill] sm:$0xff] %v6388_v39  ;;  %5221 = vmatpush3.bf16.msra.mxu1 %v5218_v36  ;;  %7653 = vst [vmem:[#allocation30_spill] sm:$0xff] %v6391_v28  ;;  %v6401_v10 = vsel %vm1498_vm3, %v1505_v22, %v1507_v21  ;;  %v422_v7 = vadd.f32 %v5953_v42, %v362_v37  ;;  %v6404_v12 = vmax.f32 %v421_v27, 0.0  ;;  %v303_v36 = vld [vmem:[%s5910_s15 + $0xf8] sm:$0xff]  ;;  %v864_v21 = vld [vmem:[%s7512_s1 + $0x50] sm:$0xff] }
  0x41   : > { %4499 = vmatmul.mubr.f32.gmra.mrb[8].mxu1 %v6241_v53  ;;  %5223 = vmatprep.subr.bf16.mxu1 %v5222_v56  ;;  %7654 = vst [vmem:[#allocation31_spill] sm:$0xff] %v6401_v10  ;;  %v1510_v44 = vrot.slane %v6040_v30, 2  ;;  %v423_v4 = vadd.f32 %v5953_v42, %v363_v13  ;;  %v1512_v54 = vrot.slane %v6067_v47, 2  ;;  %v865_v22 = vld [vmem:[%s7512_s1 + $0x58] sm:$0xff]  ;;  %v6423_v34 = vsel %vm918_vm0, %v959_v62, %v960_v33 }
  0x42   : > { %7655 = vst [vmem:[#allocation32_spill] sm:$0xff] %v6404_v12  ;;  %4819 = vmatmul.mubr.f32.gmra.mrb[8].mxu0 %v6305_v63  ;;  %4501 = vmatprep.mubr.f32.mxu1 %v6258_v49  ;;  %7656 = vst [vmem:[#allocation33_spill] sm:$0xff] %v6423_v34  ;;  %v6425_v37 = vmax.f32 %v422_v7, 0.0  ;;  %v6430_v47 = vsel %vm578_vm1, %v6404_v12, 0.0  ;;  %v364_v27 = vmul.f32 %v5948_v41, %v302_v23  ;;  %v962_v13 = vrot.slane %v6398_v8, 1  ;;  %v305_v12 = vld [vmem:[%s5910_s15 + $0x108] sm:$0xff] }
  0x43   : > { %5353 = vmatpush3.bf16.msra.mxu0 %v6218_v55  ;;  %4821 = vmatprep.mubr.f32.mxu0 %v6337_v32  ;;  %v477_v55 = vmax.f32 %v423_v4, 0.0  ;;  %v365_v49 = vmul.f32 %v5948_v41, %v303_v36  ;;  %v1514_v62 = vrot.slane %v6116_v16, 2  ;;  %v964_v7 = vrot.slane %v6430_v47, 1 }
  0x44   : > { %7657 = vst [vmem:[#allocation34_spill] sm:$0xff] %v6425_v37  ;;  %5355 = vmatprep.subr.bf16.mxu0 %v6260_v0  ;;  %5225 = vmatpush3.bf16.msra.mxu1 %v5222_v56  ;;  %v424_v53 = vadd.f32 %v5953_v42, %v364_v27  ;;  %v366_v38 = vmul.f32 %v5948_v41, %v304_v26  ;;  %v965_v56 = vrot.slane %v6425_v37, 1  ;;  %v1515_v4 = vrot.slane %v6105_v11, 2  ;;  %v306_v27 = vld [vmem:[%s5910_s15 + $0x110] sm:$0xff] }
  0x45   : > { %4502 = vmatmul.mubr.f32.gmra.mrb[10].mxu1 %v6305_v63  ;;  %v5226_v23 = vpack.c.bf16 %v865_v22, %v864_v21  ;;  %v6447_v36 = vsel %vm637_vm2, %v477_v55, 0.0  ;;  %v425_v16 = vadd.f32 %v5953_v42, %v365_v49  ;;  %v6455_v26 = vsel %vm1498_vm3, %v1509_v18, %v1510_v44  ;;  %v307_v63 = vld [vmem:[%s5910_s15 + $0x118] sm:$0x3] }
  0x46   : > { %4822 = vmatmul.mubr.f32.gmra.mrb[10].mxu0 %v6355_v15  ;;  %4504 = vmatprep.mubr.f32.mxu1 %v6337_v32  ;;  %7658 = vst [vmem:[#allocation35_spill] sm:$0xff] %v6455_v26  ;;  %v6458_v21 = vsel %vm1498_vm3, %v1510_v44, %v1512_v54  ;;  %v6460_v22 = vmax.f32 %v424_v53, 0.0  ;;  %v426_v55 = vadd.f32 %v5953_v42, %v366_v38  ;;  %v967_v53 = vrot.slane %v6447_v36, 1  ;;  %v3958_v44 = vld [vmem:[%s7512_s1 + $0x310] sm:$0xff] }
  0x47   : > { %5357 = vmatpush3.bf16.msra.mxu0 %v6260_v0  ;;  %4824 = vmatprep.mubr.f32.mxu0 %v6374_v1  ;;  %v6465_v49 = vsel %vm918_vm0, %v960_v33, %v962_v13  ;;  %v6467_v32 = vmax.f32 %v425_v16, 0.0  ;;  %v1517_v0 = vrot.slane %v6143_v46, 2  ;;  %v367_v18 = vmul.f32 %v5948_v41, %v305_v12  ;;  %v3959_v46 = vld [vmem:[%s7512_s1 + $0x318] sm:$0xff] }
  0x48   : > { %7659 = vst [vmem:[#allocation36_spill] sm:$0xff] %v6460_v22  ;;  %5359 = vmatprep.subr.bf16.mxu0 %v6311_v14  ;;  %7660 = vst [vmem:[#allocation37_spill] sm:$0xff] %v6465_v49  ;;  %5227 = vmatprep.subr.bf16.mxu1 %v5226_v23  ;;  %v6477_v38 = vsel %vm578_vm1, %v6460_v22, 0.0  ;;  %v480_v33 = vmax.f32 %v426_v55, 0.0  ;;  %v368_v12 = vmul.f32 %v5948_v41, %v306_v27  ;;  %v308_v55 = vld [vmem:[%s5910_s15 + $0x120] sm:$0xff]  ;;  %v309_v22 = vld [vmem:[%s5910_s15 + $0x128] sm:$0xff] }
  0x49   : > { %4505 = vmatmul.mubr.f32.gmra.mrb[12].mxu1 %v6355_v15  ;;  %v6489_v54 = vsel %vm918_vm0, %v964_v7, %v965_v56  ;;  %v6492_v13 = vsel %vm1498_vm3, %v1514_v62, %v1515_v4  ;;  %v427_v16 = vadd.f32 %v5953_v42, %v367_v18  ;;  %v969_v15 = vrot.slane %v6477_v38, 1 }
  0x4a   : > { %4825 = vmatmul.mubr.f32.gmra.mrb[12].mxu0 %v6388_v39  ;;  %4507 = vmatprep.mubr.f32.mxu1 %v6374_v1  ;;  %7661 = vst [vmem:[#allocation38_spill] sm:$0xff] %v6489_v54  ;;  %7662 = vst [vmem:[#allocation39_spill] sm:$0xff] %v6492_v13  ;;  %v970_v27 = vrot.slane %v6467_v32, 1  ;;  %v428_v1 = vadd.f32 %v5953_v42, %v368_v12  ;;  %v369_v7 = vmul.f32 %v5948_v41, %v307_v63 }
  0x4b   : > { %5361 = vmatpush3.bf16.msra.mxu0 %v6311_v14  ;;  %4827 = vmatprep.mubr.f32.mxu0 %v6423_v34  ;;  %v6506_v62 = vsel %vm637_vm2, %v480_v33, 0.0  ;;  %v6509_v14 = vsel %vm1498_vm3, %v1515_v4, %v1517_v0  ;;  %v6511_v18 = vpack.c.bf16 %v3959_v46, %v3958_v44  ;;  %v6513_v51 = vmax.f32 %v427_v16, 0.0  ;;  %v866_v0 = vld [vmem:[%s7512_s1 + $0x60] sm:$0xff] }
  0x4c   : > { %5363 = vmatprep.subr.bf16.mxu0 %v6376_v45  ;;  %7663 = vst [vmem:[#allocation40_spill] sm:$0xff] %v6509_v14  ;;  %5229 = vmatpush3.bf16.msra.mxu1 %v5226_v23  ;;  %v6517_v12 = vsel %vm918_vm0, %v965_v56, %v967_v53  ;;  %v6519_v63 = vmax.f32 %v428_v1, 0.0  ;;  %v429_v59 = vadd.f32 %v5953_v42, %v369_v7  ;;  %v1519_v4 = vrot.slane %v6159_v58, 2  ;;  %v867_v53 = vld [vmem:[%s7512_s1 + $0x68] sm:$0xff] }
  0x4d   : > { %4508 = vmatmul.mubr.f32.gmra.mrb[14].mxu1 %v6388_v39  ;;  %7664 = vst [vmem:[#allocation41_spill] sm:$0xff] %v6517_v12  ;;  %v370_v33 = vmul.f32 %v5948_v41, %v308_v55  ;;  %v6529_v23 = vsel %vm578_vm1, %v6513_v51, 0.0  ;;  %v1520_v1 = vrot.slane %v6145_v48, 2  ;;  %v371_v56 = vmul.f32 %v5948_v41, %v309_v22 }
  0x4e   : > { %4828 = vmatmul.mubr.f32.gmra.mrb[14].mxu0 %v6465_v49  ;;  %4510 = vmatprep.mubr.f32.mxu1 %v6423_v34  ;;  %v6543_v44 = vsel %vm918_vm0, %v969_v15, %v970_v27  ;;  %v972_v58 = vrot.slane %v6506_v62, 1  ;;  %v483_v46 = vmax.f32 %v429_v59, 0.0  ;;  %v974_v16 = vrot.slane %v6529_v23, 1  ;;  %v311_v34 = vld [vmem:[%s5910_s15 + $0x138] sm:$0xff] }
  0x4f   : > { %5365 = vmatpush3.bf16.msra.mxu0 %v6376_v45  ;;  %4886 = vmatprep.mubr.f32.mxu0 %v6391_v28  ;;  %7665 = vst [vmem:[#allocation42_spill] sm:$0xff] %v6543_v44  ;;  %v430_v22 = vadd.f32 %v5953_v42, %v370_v33  ;;  %v1522_v55 = vrot.slane %v6177_v50, 2  ;;  %v431_v7 = vadd.f32 %v5953_v42, %v371_v56  ;;  %v975_v15 = vrot.slane %v6519_v63, 1  ;;  %v3960_v50 = vld [vmem:[%s7512_s1 + $0x320] sm:$0xff] }
  0x50   : > { %5367 = vmatprep.subr.bf16.mxu0 %v6378_v2  ;;  %v372_v45 = vmul.f32 %v5948_v41, %v310_v40  ;;  %v6557_v59 = vsel %vm637_vm2, %v483_v46, 0.0  ;;  %v5230_v39 = vpack.c.bf16 %v867_v53, %v866_v0  ;;  %v3961_v40 = vld [vmem:[%s7512_s1 + $0x328] sm:$0xff]  ;;  %v6570_v56 = vsel %vm1498_vm3, %v1519_v4, %v1520_v1 }
  0x51   : > { %4511 = vmatmul.mubr.f32.gmra.mrb[16].mxu1 %v6465_v49  ;;  %v6559_v33 = vmax.f32 %v430_v22, 0.0  ;;  %7667 = vst [vmem:[#allocation44_spill] sm:$0xff] %v6570_v56  ;;  %v6572_v46 = vmax.f32 %v431_v7, 0.0  ;;  %v1524_v0 = vrot.slane %v6192_v29, 2  ;;  %v312_v22 = vld [vmem:[%s5910_s15 + $0x140] sm:$0xff]  ;;  %v977_v49 = vrot.slane %v6557_v59, 1 }
  0x52   : > { %4887 = vmatmul.mubr.f32.vlgmr.msra.gmra.mrb[0].mxu0 %v6401_v10  ;;  %4513 = vmatprep.mubr.f32.mxu1 %v6489_v54  ;;  %v432_v53 = vadd.f32 %v5953_v42, %v372_v45  ;;  %v1525_v4 = vrot.slane %v6179_v17, 2  ;;  %v373_v7 = vmul.f32 %v5948_v41, %v311_v34  ;;  %v313_v29 = vld [vmem:[%s5910_s15 + $0x148] sm:$0x3]  ;;  %v6589_v45 = vsel %vm918_vm0, %v970_v27, %v972_v58  ;;  %v314_v58 = vld [vmem:[%s5910_s15 + $0x150] sm:$0xff] }
  0x53   : > { %7666 = vst [vmem:[#allocation43_spill] sm:$0xff] %v6559_v33  ;;  %7668 = vst [vmem:[#allocation45_spill] sm:$0xff] %v6572_v46  ;;  %5369 = vmatpush3.bf16.msra.mxu0 %v6378_v2  ;;  %4889 = vmatprep.mubr.f32.mxu0 %v6455_v26  ;;  %v6583_v54 = vsel %vm578_vm1, %v6559_v33, 0.0  ;;  %v1527_v26 = vrot.slane %v6227_v19, 2  ;;  %v5374_v10 = vpack.c.bf16 %v3961_v40, %v3960_v50  ;;  %v980_v50 = vrot.slane %v6572_v46, 1 }
  0x54   : > { %7669 = vst [vmem:[#allocation46_spill] sm:$0xff] %v6589_v45  ;;  %5371 = vmatprep.subr.bf16.mxu0 %v6511_v18  ;;  %v486_v2 = vmax.f32 %v432_v53, 0.0  ;;  %5231 = vmatprep.subr.bf16.mxu1 %v5230_v39  ;;  %v6595_v28 = vsel %vm918_vm0, %v974_v16, %v975_v15  ;;  %v6598_v33 = vsel %vm1498_vm3, %v1520_v1, %v1522_v55  ;;  %v979_v19 = vrot.slane %v6583_v54, 1 }
  0x55   : > { %4514 = vmatmul.mubr.f32.gmra.mrb[18].mxu1 %v6517_v12  ;;  %7670 = vst [vmem:[#allocation47_spill] sm:$0xff] %v6595_v28  ;;  %7671 = vst [vmem:[#allocation48_spill] sm:$0xff] %v6598_v33  ;;  %v374_v34 = vmul.f32 %v5948_v41, %v312_v22  ;;  %v433_v27 = vadd.f32 %v5953_v42, %v373_v7  ;;  %v375_v1 = vmul.f32 %v5948_v41, %v313_v29  ;;  %v315_v7 = vld [vmem:[%s5910_s15 + $0x158] sm:$0xff] }
  0x56   : > { %4890 = vmatmul.mubr.f32.gmra.mrb[2].mxu0 %v6458_v21  ;;  %4516 = vmatprep.mubr.f32.mxu1 %v6543_v44  ;;  %v6609_v16 = vsel %vm637_vm2, %v486_v2, 0.0  ;;  %v6615_v55 = vsel %vm918_vm0, %v975_v15, %v977_v49  ;;  %v6618_v40 = vsel %vm1498_vm3, %v1524_v0, %v1525_v4  ;;  %v6625_v2 = vsel %vm1498_vm3, %v1525_v4, %v1527_v26  ;;  %v316_v15 = vld [vmem:[%s5910_s15 + $0x160] sm:$0x3]  ;;  %v868_v0 = vld [vmem:[%s7512_s1 + $0x70] sm:$0xff] }
  0x57   : > { %4892 = vmatprep.mubr.f32.mxu0 %v6492_v13  ;;  %5373 = vmatpush3.bf16.msra.mxu0 %v6511_v18  ;;  %7672 = vst [vmem:[#allocation49_spill] sm:$0xff] %v6615_v55  ;;  %v434_v53 = vadd.f32 %v5953_v42, %v374_v34  ;;  %v6621_v22 = vmax.f32 %v433_v27, 0.0  ;;  %v1529_v29 = vrot.slane %v6275_v60, 2  ;;  %v435_v18 = vadd.f32 %v5953_v42, %v375_v1  ;;  %v869_v34 = vld [vmem:[%s7512_s1 + $0x78] sm:$0xff] }
  0x58   : > { %5375 = vmatprep.subr.bf16.mxu0 %v5374_v10  ;;  %5233 = vmatpush3.bf16.msra.mxu1 %v5230_v39  ;;  %v376_v49 = vmul.f32 %v5948_v41, %v314_v58  ;;  %v982_v26 = vrot.slane %v6609_v16, 1  ;;  %v1530_v4 = vrot.slane %v6250_v52, 2  ;;  %v6650_v27 = vsel %vm918_vm0, %v979_v19, %v980_v50  ;;  %v3962_v19 = vld [vmem:[%s7512_s1 + $0x330] sm:$0xff] }
  0x59   : > { %7673 = vst [vmem:[#allocation50_spill] sm:$0xff] %v6621_v22  ;;  %4517 = vmatmul.mubr.f32.gmra.mrb[20].mxu1 %v6589_v45  ;;  %v6639_v39 = vmax.f32 %v434_v53, 0.0  ;;  %v6644_v60 = vsel %vm578_vm1, %v6621_v22, 0.0  ;;  %7674 = vst [vmem:[#allocation51_spill] sm:$0xff] %v6650_v27  ;;  %v489_v58 = vmax.f32 %v435_v18, 0.0  ;;  %v377_v1 = vmul.f32 %v5948_v41, %v315_v7  ;;  %v3963_v7 = vld [vmem:[%s7512_s1 + $0x338] sm:$0xff] }
  0x5a   : > { %4893 = vmatmul.mubr.f32.gmra.mrb[4].mxu0 %v6509_v14  ;;  %4519 = vmatprep.mubr.f32.mxu1 %v6595_v28  ;;  %v436_v53 = vadd.f32 %v5953_v42, %v376_v49  ;;  %v984_v45 = vrot.slane %v6644_v60, 1  ;;  %v378_v12 = vmul.f32 %v5948_v41, %v316_v15  ;;  %v5234_v28 = vpack.c.bf16 %v869_v34, %v868_v0  ;;  %v317_v15 = vld [vmem:[%s5910_s15 + $0x168] sm:$0xff] }
  0x5b   : > { %4895 = vmatprep.mubr.f32.mxu0 %v6570_v56  ;;  %5377 = vmatpush3.bf16.msra.mxu0 %v5374_v10  ;;  %v985_v44 = vrot.slane %v6639_v39, 1  ;;  %v6666_v18 = vsel %vm637_vm2, %v489_v58, 0.0  ;;  %v1532_v10 = vrot.slane %v6293_v61, 2  ;;  %v437_v49 = vadd.f32 %v5953_v42, %v377_v1  ;;  %v318_v61 = vld [vmem:[%s5910_s15 + $0x170] sm:$0xff] }
  0x5c   : > { %v6670_v56 = vmax.f32 %v436_v53, 0.0  ;;  %v6675_v0 = vsel %vm918_vm0, %v980_v50, %v982_v26  ;;  %v6678_v34 = vsel %vm1498_vm3, %v1529_v29, %v1530_v4  ;;  %v1534_v14 = vrot.slane %v6298_v43, 2  ;;  %5235 = vmatprep.subr.bf16.mxu1 %v5234_v28  ;;  %v319_v26 = vld [vmem:[%s5910_s15 + $0x178] sm:$0x3] }
  0x5d   : > { %4520 = vmatmul.mubr.f32.gmra.mrb[22].mxu1 %v6615_v55  ;;  %7675 = vst [vmem:[#allocation52_spill] sm:$0xff] %v6675_v0  ;;  %v438_v58 = vadd.f32 %v5953_v42, %v378_v12  ;;  %v987_v1 = vrot.slane %v6666_v18, 1  ;;  %v6686_v53 = vmax.f32 %v437_v49, 0.0  ;;  %v5378_v29 = vpack.c.bf16 %v3963_v7, %v3962_v19 }
  0x5e   : > { %4896 = vmatmul.mubr.f32.gmra.mrb[6].mxu0 %v6598_v33  ;;  %4522 = vmatprep.mubr.f32.mxu1 %v6650_v27  ;;  %v6691_v50 = vsel %vm578_vm1, %v6670_v56, 0.0  ;;  %v6696_v43 = vsel %vm918_vm0, %v984_v45, %v985_v44  ;;  %v379_v27 = vmul.f32 %v5948_v41, %v317_v15  ;;  %v6701_v49 = vsel %vm1498_vm3, %v1530_v4, %v1532_v10  ;;  %v3876_v10 = vld [vmem:[%s7512_s1 + $0x100] sm:$0xff]  ;;  %v3877_v15 = vld [vmem:[%s7512_s1 + $0x108] sm:$0xff] }
  0x5f   : > { %4898 = vmatprep.mubr.f32.mxu0 %v6618_v40  ;;  %7676 = vst [vmem:[#allocation53_spill] sm:$0xff] %v6696_v43  ;;  %v989_v12 = vrot.slane %v6691_v50, 1  ;;  %v492_v55 = vmax.f32 %v438_v58, 0.0  ;;  %5237 = vmatpush3.bf16.msra.mxu1 %v5234_v28  ;;  %v990_v33 = vrot.slane %v6686_v53, 1  ;;  %v1535_v13 = vrot.slane %v6278_v3, 2  ;;  %v3964_v58 = vld [vmem:[%s7512_s1 + $0x340] sm:$0xff] }
  0x60   : > { %5379 = vmatprep.subr.bf16.mxu0 %v5378_v29  ;;  %v380_v19 = vmul.f32 %v5948_v41, %v318_v61  ;;  %v1537_v28 = vrot.slane %v6324_v31, 2  ;;  %v439_v7 = vadd.f32 %v5953_v42, %v379_v27  ;;  %v381_v4 = vmul.f32 %v5948_v41, %v319_v26  ;;  %v3965_v61 = vld [vmem:[%s7512_s1 + $0x348] sm:$0xff] }
  0x61   : > { %4523 = vmatmul.mubr.f32.gmra.mrb[24].mxu1 %v6675_v0  ;;  %v6709_v45 = vsel %vm637_vm2, %v492_v55, 0.0  ;;  %5381 = vmatpush3.bf16.msra.mxu0 %v5378_v29  ;;  %v6723_v55 = vsel %vm918_vm0, %v985_v44, %v987_v1  ;;  %v1539_v41 = vrot.slane %v6367_v25, 2  ;;  %v6736_v29 = vsel %vm918_vm0, %v989_v12, %v990_v33 }
  0x62   : > { %4899 = vmatmul.mubr.f32.gmra.mrb[8].mxu0 %v6625_v2  ;;  %4525 = vmatprep.mubr.f32.mxu1 %v6696_v43  ;;  %7677 = vst [vmem:[#allocation54_spill] sm:$0xff] %v6723_v55  ;;  %v992_v31 = vrot.slane %v6709_v45, 1  ;;  %v440_v27 = vadd.f32 %v5953_v42, %v380_v19  ;;  %7678 = vst [vmem:[#allocation55_spill] sm:$0xff] %v6736_v29  ;;  %v6738_v44 = vmax.f32 %v439_v7, 0.0  ;;  %v1540_v1 = vrot.slane %v6362_v9, 2 }
  0x63   : > { %4901 = vmatprep.mubr.f32.mxu0 %v6678_v34  ;;  %v441_v26 = vadd.f32 %v5953_v42, %v381_v4  ;;  %v6743_v25 = vsel %vm1498_vm3, %v1534_v14, %v1535_v13  ;;  %v5238_v43 = vpack.c.bf16 %v3877_v15, %v3876_v10  ;;  %v5382_v7 = vpack.c.bf16 %v3965_v61, %v3964_v58 }
  0x64   : > { %v6745_v19 = vmax.f32 %v440_v27, 0.0  ;;  %v6751_v0 = vsel %vm578_vm1, %v6738_v44, 0.0  ;;  %v6756_v42 = vsel %vm918_vm0, %v990_v33, %v992_v31  ;;  %v6762_v10 = vsel %vm1498_vm3, %v1535_v13, %v1537_v28  ;;  %v3966_v33 = vld [vmem:[%s7512_s1 + $0x350] sm:$0xff]  ;;  %v3967_v31 = vld [vmem:[%s7512_s1 + $0x358] sm:$0xff] }
  0x65   : > { %4526 = vmatmul.mubr.f32.gmra.mrb[26].mxu1 %v6723_v55  ;;  %v495_v12 = vmax.f32 %v441_v26, 0.0  ;;  %7680 = vst [vmem:[#allocation57_spill] sm:$0xff] %v6756_v42  ;;  %v994_v14 = vrot.slane %v6751_v0, 1  ;;  %v6765_v15 = vsel %vm1498_vm3, %v1539_v41, %v1540_v1  ;;  %v1542_v58 = vrot.slane %v6398_v8, 2  ;;  %5239 = vmatprep.subr.bf16.mxu1 %v5238_v43  ;;  %v3968_v8 = vld [vmem:[%s7512_s1 + $0x360] sm:$0xff]  ;;  %v3969_v26 = vld [vmem:[%s7512_s1 + $0x368] sm:$0xff] }
  0x66   : > { %7679 = vst [vmem:[#allocation56_spill] sm:$0xff] %v6745_v19  ;;  %4902 = vmatmul.mubr.f32.gmra.mrb[10].mxu0 %v6701_v49  ;;  %4528 = vmatprep.mubr.f32.mxu1 %v6736_v29  ;;  %v995_v4 = vrot.slane %v6745_v19, 1  ;;  %v1544_v41 = vrot.slane %v6430_v47, 2  ;;  %v1545_v61 = vrot.slane %v6425_v37, 2  ;;  %v1549_v29 = vrot.slane %v6477_v38, 2  ;;  %v3971_v38 = vld [vmem:[%s7512_s1 + $0x378] sm:$0xff] }
  0x67   : > { %4904 = vmatprep.mubr.f32.mxu0 %v6743_v25  ;;  %v6769_v27 = vsel %vm637_vm2, %v495_v12, 0.0  ;;  %5383 = vmatprep.subr.bf16.mxu0 %v5382_v7  ;;  %v5386_v12 = vpack.c.bf16 %v3967_v31, %v3966_v33  ;;  %v1550_v55 = vrot.slane %v6467_v32, 2  ;;  %v5390_v33 = vpack.c.bf16 %v3969_v26, %v3968_v8 }
  0x68   : > { %v6779_v13 = vsel %vm918_vm0, %v994_v14, %v995_v4  ;;  %v997_v28 = vrot.slane %v6769_v27, 1  ;;  %5385 = vmatpush3.bf16.msra.mxu0 %v5382_v7  ;;  %v6798_v7 = vsel %vm1498_vm3, %v1540_v1, %v1542_v58  ;;  %v1547_v14 = vrot.slane %v6447_v36, 2  ;;  %v3879_v1 = vld [vmem:[%s7512_s1 + $0x118] sm:$0xff]  ;;  %v3970_v36 = vld [vmem:[%s7512_s1 + $0x370] sm:$0xff] }
  0x69   : > { %7681 = vst [vmem:[#allocation58_spill] sm:$0xff] %v6779_v13  ;;  %4529 = vmatmul.mubr.f32.gmra.mrb[28].mxu1 %v6756_v42  ;;  %v6802_v42 = vsel %vm1498_vm3, %v1544_v41, %v1545_v61  ;;  %5387 = vmatprep.subr.bf16.mxu0 %v5386_v12  ;;  %v7683_v58 = vmov 0.0   ;;  %v1554_v41 = vrot.slane %v6529_v23, 2  ;;  %v6828_v8 = vsel %vm1498_vm3, %v1549_v29, %v1550_v55  ;;  %v3987_v23 = vld [vmem:[%s7512_s1 + $0x380] sm:$0xff]  ;;  %v3988_v29 = vld [vmem:[%s7512_s1 + $0x388] sm:$0xff] }
  0x6a   : > { %4905 = vmatmul.mubr.f32.gmra.mrb[12].mxu0 %v6762_v10  ;;  %4531 = vmatprep.mubr.f32.mxu1 %v6779_v13  ;;  %v6794_v47 = vsel %vm918_vm0, %v995_v4, %v997_v28  ;;  %v3878_v4 = vld [vmem:[%s7512_s1 + $0x110] sm:$0xff]  ;;  %v6823_v31 = vsel %vm1498_vm3, %v1545_v61, %v1547_v14  ;;  %v1552_v28 = vrot.slane %v6506_v62, 2  ;;  %v1555_v26 = vrot.slane %v6519_v63, 2  ;;  %v3881_v62 = vld [vmem:[%s7512_s1 + $0x128] sm:$0xff]  ;;  %v320_v61 = vld [vmem:[%s5910_s15 + $0x180] sm:$0xff] }
  0x6b   : > { %7682 = vst [vmem:[#allocation59_spill] sm:$0xff] %v6794_v47  ;;  %4907 = vmatprep.mubr.f32.mxu0 %v6765_v15  ;;  %7684 = vst [vmem:[#allocation60_spill] sm:$0xff] %v6823_v31  ;;  %v5394_v13 = vpack.c.bf16 %v3971_v38, %v3970_v36  ;;  %v3882_v38 = vld [vmem:[%s7512_s1 + $0x130] sm:$0xff] }
  0x6c   : > { %5389 = vmatpush3.bf16.msra.mxu0 %v5386_v12  ;;  %v5242_v12 = vpack.c.bf16 %v3879_v1, %v3878_v4  ;;  %v6851_v14 = vsel %vm1498_vm3, %v1550_v55, %v1552_v28  ;;  %v1557_v4 = vrot.slane %v6557_v59, 2  ;;  %v1560_v1 = vrot.slane %v6572_v46, 2  ;;  %v321_v59 = vld [vmem:[%s5910_s15 + $0x188] sm:$0xff]  ;;  %v5760_v55 = vld [vmem:[%s7513_s2] ss:$0 sm:$0xff] }
  0x6d   : > { %4532 = vmatmul.mubr.f32.gmra.mrb[30].mxu1 %v6794_v47  ;;  %5391 = vmatprep.subr.bf16.mxu0 %v5390_v33  ;;  %v3880_v47 = vld [vmem:[%s7512_s1 + $0x120] sm:$0xff]  ;;  %7685 = vst [vmem:[#allocation61_spill] sm:$0xff] %v6851_v14  ;;  %v322_v28 = vld [vmem:[%s5910_s15 + $0x190] sm:$0x3] }
  0x6e   : > { %4908 = vmatmul.mubr.f32.gmra.mrb[14].mxu0 %v6798_v7  ;;  %4566 = vmatprep.mubr.f32.mxu1 %v7683_v58  ;;  %v5246_v36 = vpack.c.bf16 %v3881_v62, %v3880_v47  ;;  %v382_v47 = vmul.f32 %v5760_v55, %v320_v61  ;;  %v1562_v62 = vrot.slane %v6609_v16, 2  ;;  %v3884_v16 = vld [vmem:[%s7512_s1 + $0x140] sm:$0xff] }
  0x6f   : > { %4910 = vmatprep.mubr.f32.mxu0 %v6802_v42 }
  0x70   : > { %5393 = vmatpush3.bf16.msra.mxu0 %v5390_v33  ;;  %v1559_v33 = vrot.slane %v6583_v54, 2  ;;  %v3883_v54 = vld [vmem:[%s7512_s1 + $0x138] sm:$0xff] }
  0x71   : > { %4567 = vmatmul.mubr.f32.vlgmr.msra.gmra.mrb[0].mxu1 %v7683_v58  ;;  %5395 = vmatprep.subr.bf16.mxu0 %v5394_v13  ;;  %v5250_v61 = vpack.c.bf16 %v3883_v54, %v3882_v38  ;;  %v1569_v38 = vrot.slane %v6691_v50, 2  ;;  %v1570_v54 = vrot.slane %v6686_v53, 2  ;;  %v3887_v50 = vld [vmem:[%s7512_s1 + $0x158] sm:$0xff] }
  0x72   : > { %4911 = vmatmul.mubr.f32.gmra.mrb[16].mxu0 %v6823_v31  ;;  %5241 = vmatpush3.bf16.msra.mxu1 %v5238_v43  ;;  %v6857_v43 = vsel %vm1498_vm3, %v1554_v41, %v1555_v26  ;;  %v6879_v41 = vsel %vm1498_vm3, %v1555_v26, %v1557_v4  ;;  %v5761_v26 = vld [vmem:[%s7514_s3] ss:$0 sm:$0xff]  ;;  %v6904_v4 = vsel %vm1498_vm3, %v1560_v1, %v1562_v62  ;;  %v1575_v62 = vrot.slane %v6745_v19, 2 }
  0x73   : > { %4569 = vmatprep.mubr.msk.f32.mxu1 %vm578_vm1, %v5998_v5  ;;  %4913 = vmatprep.mubr.f32.mxu0 %v6828_v8  ;;  %7686 = vst [vmem:[#allocation62_spill] sm:$0xff] %v6857_v43  ;;  %v6862_v5 = vpack.c.bf16 %v3988_v29, %v3987_v23  ;;  %v1564_v23 = vrot.slane %v6644_v60, 2  ;;  %v1565_v29 = vrot.slane %v6639_v39, 2  ;;  %v3885_v60 = vld [vmem:[%s7512_s1 + $0x148] sm:$0xff] }
  0x74   : > { %5243 = vmatprep.subr.bf16.mxu1 %v5242_v12  ;;  %5397 = vmatpush3.bf16.msra.mxu0 %v5394_v13  ;;  %v6882_v13 = vsel %vm1498_vm3, %v1559_v33, %v1560_v1  ;;  %v1567_v33 = vrot.slane %v6666_v18, 2  ;;  %v3886_v18 = vld [vmem:[%s7512_s1 + $0x150] sm:$0xff]  ;;  %v7689_v1 = vld [vmem:[#allocation15_spill] sm:$0xff] }
  0x75   : > { %4570 = vmatmul.mubr.f32.gmra.mrb[2].mxu1 %v6000_v6  ;;  %7687 = vst [vmem:[#allocation63_spill] sm:$0xff] %v6882_v13  ;;  %v383_v6 = vmul.f32 %v5760_v55, %v321_v59  ;;  %5399 = vmatprep.subr.bf16.mxu0 %v6862_v5  ;;  %v6910_v59 = vsel %vm1498_vm3, %v1564_v23, %v1565_v29 }
  0x76   : > { %4914 = vmatmul.mubr.f32.gmra.mrb[18].mxu0 %v6851_v14  ;;  %4572 = vmatprep.mubr.msk.f32.mxu1 %vm578_vm1, %v6026_v24  ;;  %v384_v14 = vmul.f32 %v5760_v55, %v322_v28  ;;  %v5254_v28 = vpack.c.bf16 %v3885_v60, %v3884_v16  ;;  %v6933_v23 = vsel %vm1498_vm3, %v1569_v38, %v1570_v54  ;;  %v1577_v38 = vrot.slane %v6769_v27, 2  ;;  %v3891_v27 = vld [vmem:[%s7512_s1 + $0x178] sm:$0xff] }
  0x77   : > { %4916 = vmatprep.mubr.f32.mxu0 %v6857_v43  ;;  %5245 = vmatpush3.bf16.msra.mxu1 %v5242_v12  ;;  %v442_v12 = vadd.f32 %v5761_v26, %v382_v47  ;;  %v443_v55 = vadd.f32 %v5761_v26, %v383_v6  ;;  %v6927_v6 = vsel %vm1498_vm3, %v1565_v29, %v1567_v33 }
  0x78   : > { %5247 = vmatprep.subr.bf16.mxu1 %v5246_v36  ;;  %v444_v47 = vadd.f32 %v5761_v26, %v384_v14  ;;  %v1572_v14 = vrot.slane %v6709_v45, 2  ;;  %v5258_v16 = vpack.c.bf16 %v3887_v50, %v3886_v18  ;;  %v3889_v45 = vld [vmem:[%s7512_s1 + $0x168] sm:$0xff]  ;;  %v6980_v35 = vsel %vm1498_vm3, %v1575_v62, %v1577_v38 }
  0x79   : > { %4573 = vmatmul.mubr.f32.gmra.mrb[4].mxu1 %v6040_v30  ;;  %v6935_v26 = vmax.f32 %v443_v55, 0.0 }
  0x7a   : > { %4917 = vmatmul.mubr.f32.gmra.mrb[20].mxu0 %v6879_v41  ;;  %4575 = vmatprep.mubr.msk.f32.mxu1 %vm578_vm1, %v6082_v57  ;;  %v6955_v60 = vsel %vm1498_vm3, %v1570_v54, %v1572_v14  ;;  %v3890_v54 = vld [vmem:[%s7512_s1 + $0x170] sm:$0xff] }
  0x7b   : > { %4919 = vmatprep.mubr.f32.mxu0 %v6882_v13  ;;  %5249 = vmatpush3.bf16.msra.mxu1 %v5246_v36  ;;  %v6913_v13 = vmax.f32 %v442_v12, 0.0  ;;  %v1574_v36 = vrot.slane %v6751_v0, 2  ;;  %v498_v12 = vmax.f32 %v444_v47, 0.0  ;;  %v3888_v0 = vld [vmem:[%s7512_s1 + $0x160] sm:$0xff]  ;;  %v2444_v47 = vrot.slane %v6935_v26, 2 }
  0x7c   : > { %5251 = vmatprep.subr.bf16.mxu1 %v5250_v61  ;;  %v5262_v50 = vpack.c.bf16 %v3889_v45, %v3888_v0  ;;  %v3892_v0 = vld [vmem:[%s7512_s1 + $0x180] sm:$0xff]  ;;  %v3893_v45 = vld [vmem:[%s7512_s1 + $0x188] sm:$0xff] }
  0x7d   : > { %4576 = vmatmul.mubr.f32.gmra.mrb[6].mxu1 %v6105_v11  ;;  %7688 = vst [vmem:[#allocation64_spill] sm:$0xff] %v6913_v13  ;;  %v6941_v29 = vsel %vm578_vm1, %v6913_v13, 0.0  ;;  %v6958_v33 = vsel %vm1498_vm3, %v1574_v36, %v1575_v62  ;;  %v6965_v18 = vsel %vm637_vm2, %v498_v12, 0.0  ;;  %v5266_v12 = vpack.c.bf16 %v3891_v27, %v3890_v54  ;;  %v7693_v62 = vld [vmem:[#allocation23_spill] sm:$0xff]  ;;  %v3990_v54 = vld [vmem:[%s7512_s1 + $0x398] sm:$0xff]  ;;  %v7695_v27 = vld [vmem:[#allocation26_spill] sm:$0xff] }
  0x7e   : > { %4920 = vmatmul.mubr.f32.gmra.mrb[22].mxu0 %v6904_v4  ;;  %4578 = vmatprep.mubr.msk.f32.mxu1 %vm578_vm1, %v7689_v1  ;;  %v2443_v55 = vrot.slane %v6941_v29, 2  ;;  %v2446_v14 = vrot.slane %v6965_v18, 2  ;;  %v7001_v38 = vpack.c.bf16 %v3893_v45, %v3892_v0  ;;  %v7696_v0 = vld [vmem:[#allocation32_spill] sm:$0xff] }
  0x7f   : > { %4922 = vmatprep.mubr.f32.mxu0 %v6910_v59  ;;  %5253 = vmatpush3.bf16.msra.mxu1 %v5250_v61  ;;  %v7690_v61 = vld [vmem:[#allocation16_spill] sm:$0xff] }
  0x80   : > { %5255 = vmatprep.subr.bf16.mxu1 %v5254_v28  ;;  %v6984_v36 = vsel %vm1498_vm3, %v2443_v55, %v2444_v47  ;;  %v3989_v55 = vld [vmem:[%s7512_s1 + $0x390] sm:$0xff] }
  0x81   : > { %4579 = vmatmul.mubr.f32.gmra.mrb[8].mxu1 %v6145_v48  ;;  %7692 = vst [vmem:[#allocation15_spill] sm:$0xff] %v6984_v36  ;;  %v3993_v45 = vld [vmem:[%s7512_s1 + $0x3b0] sm:$0xff] }
  0x82   : > { %4923 = vmatmul.mubr.f32.gmra.mrb[24].mxu0 %v6927_v6  ;;  %4581 = vmatprep.mubr.msk.f32.mxu1 %vm578_vm1, %v7690_v61 }
  0x83   : > { %4925 = vmatprep.mubr.f32.mxu0 %v6933_v23  ;;  %5257 = vmatpush3.bf16.msra.mxu1 %v5254_v28  ;;  %v7691_v28 = vld [vmem:[#allocation21_spill] sm:$0xff] }
  0x84   : > { %5259 = vmatprep.subr.bf16.mxu1 %v5258_v16 }
  0x85   : > { %4582 = vmatmul.mubr.f32.gmra.mrb[10].mxu1 %v6179_v17 }
  0x86   : > { %4926 = vmatmul.mubr.f32.gmra.mrb[26].mxu0 %v6955_v60  ;;  %4584 = vmatprep.mubr.msk.f32.mxu1 %vm578_vm1, %v7691_v28 }
  0x87   : > { %4928 = vmatprep.mubr.f32.mxu0 %v6958_v33  ;;  %5261 = vmatpush3.bf16.msra.mxu1 %v5258_v16  ;;  %v6999_v16 = vsel %vm1498_vm3, %v2444_v47, %v2446_v14  ;;  %v5402_v47 = vpack.c.bf16 %v3990_v54, %v3989_v55  ;;  %v3992_v14 = vld [vmem:[%s7512_s1 + $0x3a8] sm:$0xff]  ;;  %v3994_v55 = vld [vmem:[%s7512_s1 + $0x3b8] sm:$0xff]  ;;  %v7697_v54 = vld [vmem:[#allocation36_spill] sm:$0xff] }
  0x88   : > { %5263 = vmatprep.subr.bf16.mxu1 %v5262_v50  ;;  %7694 = vst [vmem:[#allocation16_spill] sm:$0xff] %v6999_v16  ;;  %v7756_v20 = vld [vmem:[#allocation15_spill] sm:$0xff] }
  0x89   : > { %4585 = vmatmul.mubr.f32.gmra.mrb[12].mxu1 %v6250_v52 }
  0x8a   : > { %4929 = vmatmul.mubr.f32.gmra.mrb[28].mxu0 %v6980_v35  ;;  %4587 = vmatprep.mubr.msk.f32.mxu1 %vm578_vm1, %v7693_v62 }
  0x8b   : > { %4931 = vmatprep.mubr.f32.mxu0 %v6984_v36  ;;  %5265 = vmatpush3.bf16.msra.mxu1 %v5262_v50  ;;  %v3991_v50 = vld [vmem:[%s7512_s1 + $0x3a0] sm:$0xff]  ;;  %v3895_v36 = vld [vmem:[%s7512_s1 + $0x198] sm:$0xff] }
  0x8c   : > { %5267 = vmatprep.subr.bf16.mxu1 %v5266_v12 }
  0x8d   : > { %4588 = vmatmul.mubr.f32.gmra.mrb[14].mxu1 %v6278_v3 }
  0x8e   : > { %4932 = vmatmul.mubr.f32.gmra.mrb[30].mxu0 %v6999_v16  ;;  %4590 = vmatprep.mubr.msk.f32.mxu1 %vm578_vm1, %v7695_v27  ;;  %v7698_v16 = vld [vmem:[#allocation43_spill] sm:$0xff] }
  0x8f   : > { %4966 = vmatprep.mubr.msk.f32.mxu0 %vm578_vm1, %v6026_v24  ;;  %5269 = vmatpush3.bf16.msra.mxu1 %v5266_v12  ;;  %v5406_v12 = vpack.c.bf16 %v3992_v14, %v3991_v50  ;;  %v3995_v50 = vld [vmem:[%s7512_s1 + $0x3c0] sm:$0xff]  ;;  %v3996_v14 = vld [vmem:[%s7512_s1 + $0x3c8] sm:$0xff] }
  0x90   : > { %5271 = vmatprep.subr.bf16.mxu1 %v7001_v38 }
  0x91   : > { %4591 = vmatmul.mubr.f32.gmra.mrb[16].mxu1 %v6362_v9 }
  0x92   : > { %4967 = vmatmul.mubr.f32.vlgmr.msra.gmra.mrb[0].mxu0 %v6040_v30  ;;  %4593 = vmatprep.mubr.msk.f32.mxu1 %vm578_vm1, %v7696_v0 }
  0x93   : > { %5401 = vmatpush3.bf16.msra.mxu0 %v6862_v5  ;;  %4969 = vmatprep.mubr.msk.f32.mxu0 %vm578_vm1, %v6082_v57  ;;  %v5410_v5 = vpack.c.bf16 %v3994_v55, %v3993_v45  ;;  %v3997_v45 = vld [vmem:[%s7512_s1 + $0x3d0] sm:$0xff]  ;;  %v3998_v55 = vld [vmem:[%s7512_s1 + $0x3d8] sm:$0xff] }
  0x94   : > { %5403 = vmatprep.subr.bf16.mxu0 %v5402_v47 }
  0x95   : > { %4594 = vmatmul.mubr.f32.gmra.mrb[18].mxu1 %v6425_v37 }
  0x96   : > { %4970 = vmatmul.mubr.f32.gmra.mrb[2].mxu0 %v6105_v11  ;;  %4596 = vmatprep.mubr.msk.f32.mxu1 %vm578_vm1, %v7697_v54 }
  0x97   : > { %4972 = vmatprep.mubr.msk.f32.mxu0 %vm578_vm1, %v7689_v1  ;;  %5405 = vmatpush3.bf16.msra.mxu0 %v5402_v47  ;;  %v5414_v47 = vpack.c.bf16 %v3996_v14, %v3995_v50  ;;  %v3999_v50 = vld [vmem:[%s7512_s1 + $0x3e0] sm:$0xff]  ;;  %v4000_v14 = vld [vmem:[%s7512_s1 + $0x3e8] sm:$0xff] }
  0x98   : > { %5407 = vmatprep.subr.bf16.mxu0 %v5406_v12 }
  0x99   : > { %4597 = vmatmul.mubr.f32.gmra.mrb[20].mxu1 %v6467_v32 }
  0x9a   : > { %4973 = vmatmul.mubr.f32.gmra.mrb[4].mxu0 %v6145_v48  ;;  %4599 = vmatprep.mubr.msk.f32.mxu1 %vm578_vm1, %v6513_v51 }
  0x9b   : > { %4975 = vmatprep.mubr.msk.f32.mxu0 %vm578_vm1, %v7690_v61  ;;  %5409 = vmatpush3.bf16.msra.mxu0 %v5406_v12  ;;  %v5418_v12 = vpack.c.bf16 %v3998_v55, %v3997_v45  ;;  %v4001_v45 = vld [vmem:[%s7512_s1 + $0x3f0] sm:$0xff]  ;;  %v4002_v55 = vld [vmem:[%s7512_s1 + $0x3f8] sm:$0xff] }
  0x9c   : > { %5411 = vmatprep.subr.bf16.mxu0 %v5410_v5 }
  0x9d   : > { %4600 = vmatmul.mubr.f32.gmra.mrb[22].mxu1 %v6519_v63 }
  0x9e   : > { %4976 = vmatmul.mubr.f32.gmra.mrb[6].mxu0 %v6179_v17  ;;  %4602 = vmatprep.mubr.msk.f32.mxu1 %vm578_vm1, %v7698_v16 }
  0x9f   : > { %4978 = vmatprep.mubr.msk.f32.mxu0 %vm578_vm1, %v7691_v28  ;;  %5413 = vmatpush3.bf16.msra.mxu0 %v5410_v5  ;;  %v5422_v5 = vpack.c.bf16 %v4000_v14, %v3999_v50  ;;  %v4003_v50 = vld [vmem:[%s7512_s1 + $0x400] sm:$0xff]  ;;  %v4004_v14 = vld [vmem:[%s7512_s1 + $0x408] sm:$0xff] }
  0xa0   : > { %5415 = vmatprep.subr.bf16.mxu0 %v5414_v47 }
  0xa1   : > { %4603 = vmatmul.mubr.f32.gmra.mrb[24].mxu1 %v6572_v46 }
  0xa2   : > { %4979 = vmatmul.mubr.f32.gmra.mrb[8].mxu0 %v6250_v52  ;;  %4605 = vmatprep.mubr.msk.f32.mxu1 %vm578_vm1, %v6621_v22 }
  0xa3   : > { %4981 = vmatprep.mubr.msk.f32.mxu0 %vm578_vm1, %v7693_v62  ;;  %5417 = vmatpush3.bf16.msra.mxu0 %v5414_v47  ;;  %v5426_v47 = vpack.c.bf16 %v4002_v55, %v4001_v45  ;;  %v7120_v45 = vpack.c.bf16 %v4004_v14, %v4003_v50  ;;  %v3894_v55 = vld [vmem:[%s7512_s1 + $0x190] sm:$0xff]  ;;  %v3896_v50 = vld [vmem:[%s7512_s1 + $0x1a0] sm:$0xff]  ;;  %v3897_v14 = vld [vmem:[%s7512_s1 + $0x1a8] sm:$0xff] }
  0xa4   : > { %5419 = vmatprep.subr.bf16.mxu0 %v5418_v12 }
  0xa5   : > { %4606 = vmatmul.mubr.f32.gmra.mrb[26].mxu1 %v6639_v39 }
  0xa6   : > { %4982 = vmatmul.mubr.f32.gmra.mrb[10].mxu0 %v6278_v3  ;;  %4608 = vmatprep.mubr.msk.f32.mxu1 %vm578_vm1, %v6670_v56 }
  0xa7   : > { %4984 = vmatprep.mubr.msk.f32.mxu0 %vm578_vm1, %v7695_v27  ;;  %5421 = vmatpush3.bf16.msra.mxu0 %v5418_v12  ;;  %v7115_v12 = vrot.slane %v7683_v58, 2 }
  0xa8   : > { %5423 = vmatprep.subr.bf16.mxu0 %v5422_v5 }
  0xa9   : > { %4609 = vmatmul.mubr.f32.gmra.mrb[28].mxu1 %v6686_v53  ;;  %7699 = vst [vmem:[#allocation21_spill] sm:$0xff] %v7115_v12 }
  0xaa   : > { %4985 = vmatmul.mubr.f32.gmra.mrb[12].mxu0 %v6362_v9  ;;  %4611 = vmatprep.mubr.msk.f32.mxu1 %vm578_vm1, %v6738_v44 }
  0xab   : > { %4987 = vmatprep.mubr.msk.f32.mxu0 %vm578_vm1, %v7696_v0  ;;  %5425 = vmatpush3.bf16.msra.mxu0 %v5422_v5  ;;  %v5274_v5 = vpack.c.bf16 %v3895_v36, %v3894_v55  ;;  %v5278_v36 = vpack.c.bf16 %v3897_v14, %v3896_v50  ;;  %v3898_v55 = vld [vmem:[%s7512_s1 + $0x1b0] sm:$0xff]  ;;  %v3900_v50 = vld [vmem:[%s7512_s1 + $0x1c0] sm:$0xff]  ;;  %v3901_v14 = vld [vmem:[%s7512_s1 + $0x1c8] sm:$0xff] }
  0xac   : > { %5427 = vmatprep.subr.bf16.mxu0 %v5426_v47 }
  0xad   : > { %4612 = vmatmul.mubr.f32.gmra.mrb[30].mxu1 %v6745_v19 }
  0xae   : > { %4988 = vmatmul.mubr.f32.gmra.mrb[14].mxu0 %v6425_v37  ;;  %4646 = vmatprep.mubr.f32.mxu1 %v7115_v12  ;;  %v7700_v37 = vld [vmem:[#allocation30_spill] sm:$0xff] }
  0xaf   : > { %4990 = vmatprep.mubr.msk.f32.mxu0 %vm578_vm1, %v7697_v54  ;;  %5429 = vmatpush3.bf16.msra.mxu0 %v5426_v47  ;;  %v7701_v47 = vld [vmem:[#allocation31_spill] sm:$0xff] }
  0xb0   : > { %5431 = vmatprep.subr.bf16.mxu0 %v7120_v45 }
  0xb1   : > { %4647 = vmatmul.mubr.f32.vlgmr.msra.gmra.mrb[0].mxu1 %v7115_v12  ;;  %v3899_v12 = vld [vmem:[%s7512_s1 + $0x1b8] sm:$0xff] }
  0xb2   : > { %4991 = vmatmul.mubr.f32.gmra.mrb[16].mxu0 %v6467_v32  ;;  %5273 = vmatpush3.bf16.msra.mxu1 %v7001_v38  ;;  %v7702_v38 = vld [vmem:[#allocation35_spill] sm:$0xff] }
  0xb3   : > { %4649 = vmatprep.mubr.f32.mxu1 %v7700_v37  ;;  %4993 = vmatprep.mubr.msk.f32.mxu0 %vm578_vm1, %v6513_v51  ;;  %v5282_v37 = vpack.c.bf16 %v3899_v12, %v3898_v55  ;;  %v5286_v12 = vpack.c.bf16 %v3901_v14, %v3900_v50  ;;  %v3902_v55 = vld [vmem:[%s7512_s1 + $0x1d0] sm:$0xff]  ;;  %v3904_v14 = vld [vmem:[%s7512_s1 + $0x1e0] sm:$0xff] }
  0xb4   : > { %5275 = vmatprep.subr.bf16.mxu1 %v5274_v5  ;;  %v7706_v50 = vld [vmem:[#allocation48_spill] sm:$0xff] }
  0xb5   : > { %4650 = vmatmul.mubr.f32.gmra.mrb[2].mxu1 %v7701_v47  ;;  %v7703_v47 = vld [vmem:[#allocation39_spill] sm:$0xff] }
  0xb6   : > { %4994 = vmatmul.mubr.f32.gmra.mrb[18].mxu0 %v6519_v63  ;;  %4652 = vmatprep.mubr.f32.mxu1 %v7702_v38 }
  0xb7   : > { %4996 = vmatprep.mubr.msk.f32.mxu0 %vm578_vm1, %v7698_v16  ;;  %5277 = vmatpush3.bf16.msra.mxu1 %v5274_v5  ;;  %v7704_v5 = vld [vmem:[#allocation40_spill] sm:$0xff]  ;;  %v3903_v16 = vld [vmem:[%s7512_s1 + $0x1d8] sm:$0xff] }
  0xb8   : > { %5279 = vmatprep.subr.bf16.mxu1 %v5278_v36 }
  0xb9   : > { %4653 = vmatmul.mubr.f32.gmra.mrb[4].mxu1 %v6458_v21 }
  0xba   : > { %4997 = vmatmul.mubr.f32.gmra.mrb[20].mxu0 %v6572_v46  ;;  %4655 = vmatprep.mubr.f32.mxu1 %v7703_v47  ;;  %v7705_v46 = vld [vmem:[#allocation44_spill] sm:$0xff] }
  0xbb   : > { %4999 = vmatprep.mubr.msk.f32.mxu0 %vm578_vm1, %v6621_v22  ;;  %5281 = vmatpush3.bf16.msra.mxu1 %v5278_v36  ;;  %v5290_v36 = vpack.c.bf16 %v3903_v16, %v3902_v55  ;;  %v3905_v22 = vld [vmem:[%s7512_s1 + $0x1e8] sm:$0xff]  ;;  %v3907_v55 = vld [vmem:[%s7512_s1 + $0x1f8] sm:$0xff] }
  0xbc   : > { %5283 = vmatprep.subr.bf16.mxu1 %v5282_v37  ;;  %v5294_v16 = vpack.c.bf16 %v3905_v22, %v3904_v14  ;;  %v7707_v14 = vld [vmem:[#allocation13_spill] sm:$0xff] }
  0xbd   : > { %4656 = vmatmul.mubr.f32.gmra.mrb[6].mxu1 %v7704_v5 }
  0xbe   : > { %5000 = vmatmul.mubr.f32.gmra.mrb[22].mxu0 %v6639_v39  ;;  %4658 = vmatprep.mubr.f32.mxu1 %v7705_v46 }
  0xbf   : > { %5002 = vmatprep.mubr.msk.f32.mxu0 %vm578_vm1, %v6670_v56  ;;  %5285 = vmatpush3.bf16.msra.mxu1 %v5282_v37  ;;  %v3906_v37 = vld [vmem:[%s7512_s1 + $0x1f0] sm:$0xff] }
  0xc0   : > { %5287 = vmatprep.subr.bf16.mxu1 %v5286_v12  ;;  %v5298_v22 = vpack.c.bf16 %v3907_v55, %v3906_v37  ;;  %v4007_v55 = vld [vmem:[%s7512_s1 + $0x420] sm:$0xff] }
  0xc1   : > { %4659 = vmatmul.mubr.f32.gmra.mrb[8].mxu1 %v7706_v50 }
  0xc2   : > { %5003 = vmatmul.mubr.f32.gmra.mrb[24].mxu0 %v6686_v53  ;;  %4661 = vmatprep.mubr.f32.mxu1 %v6618_v40 }
  0xc3   : > { %5005 = vmatprep.mubr.msk.f32.mxu0 %vm578_vm1, %v6738_v44  ;;  %5289 = vmatpush3.bf16.msra.mxu1 %v5286_v12  ;;  %v4005_v12 = vld [vmem:[%s7512_s1 + $0x410] sm:$0xff] }
  0xc4   : > { %5291 = vmatprep.subr.bf16.mxu1 %v5290_v36 }
  0xc5   : > { %4662 = vmatmul.mubr.f32.gmra.mrb[10].mxu1 %v6625_v2 }
  0xc6   : > { %5006 = vmatmul.mubr.f32.gmra.mrb[26].mxu0 %v6745_v19  ;;  %4664 = vmatprep.mubr.f32.mxu1 %v6678_v34  ;;  %v7709_v19 = vld [vmem:[#allocation14_spill] sm:$0xff] }
  0xc7   : > { %5008 = vmatprep.mubr.msk.f32.mxu0 %vm578_vm1, %v6913_v13  ;;  %5293 = vmatpush3.bf16.msra.mxu1 %v5290_v36  ;;  %v4006_v36 = vld [vmem:[%s7512_s1 + $0x418] sm:$0xff]  ;;  %v4008_v13 = vld [vmem:[%s7512_s1 + $0x428] sm:$0xff] }
  0xc8   : > { %5295 = vmatprep.subr.bf16.mxu1 %v5294_v16  ;;  %v5434_v37 = vpack.c.bf16 %v4006_v36, %v4005_v12  ;;  %v4009_v12 = vld [vmem:[%s7512_s1 + $0x430] sm:$0xff]  ;;  %v4010_v36 = vld [vmem:[%s7512_s1 + $0x438] sm:$0xff] }
  0xc9   : > { %4665 = vmatmul.mubr.f32.gmra.mrb[12].mxu1 %v6701_v49 }
  0xca   : > { %5009 = vmatmul.mubr.f32.gmra.mrb[28].mxu0 %v6935_v26  ;;  %4667 = vmatprep.mubr.f32.mxu1 %v6743_v25 }
  0xcb   : > { %5011 = vmatprep.mubr.f32.mxu0 %v7683_v58  ;;  %5297 = vmatpush3.bf16.msra.mxu1 %v5294_v16  ;;  %v7708_v16 = vld [vmem:[#allocation3_spill] sm:$0xff] }
  0xcc   : > { %5299 = vmatprep.subr.bf16.mxu1 %v5298_v22 }
  0xcd   : > { %4668 = vmatmul.mubr.f32.gmra.mrb[14].mxu1 %v6762_v10 }
  0xce   : > { %5012 = vmatmul.mubr.f32.gmra.mrb[30].mxu0 %v7683_v58  ;;  %4670 = vmatprep.mubr.f32.mxu1 %v6765_v15  ;;  %v7710_v58 = vld [vmem:[#allocation17_spill] sm:$0xff] }
  0xcf   : > { %5046 = vmatprep.mubr.f32.mxu0 %v7707_v14  ;;  %5301 = vmatpush3.bf16.msra.mxu1 %v5298_v22  ;;  %v5438_v22 = vpack.c.bf16 %v4008_v13, %v4007_v55  ;;  %v7711_v14 = vld [vmem:[#allocation18_spill] sm:$0xff]  ;;  %v7713_v13 = vld [vmem:[#allocation61_spill] sm:$0xff] }
  0xd0   : > { %5462 = vmatprep.subr.bf16.mxu1 %v7708_v16  ;;  %v4011_v55 = vld [vmem:[%s7512_s1 + $0x440] sm:$0xff] }
  0xd1   : > { %4671 = vmatmul.mubr.f32.gmra.mrb[16].mxu1 %v6798_v7 }
  0xd2   : > { %5047 = vmatmul.mubr.f32.vlgmr.msra.gmra.mrb[0].mxu0 %v7709_v19  ;;  %4673 = vmatprep.mubr.f32.mxu1 %v6802_v42  ;;  %v7712_v19 = vld [vmem:[#allocation19_spill] sm:$0xff] }
  0xd3   : > { %5433 = vmatpush3.bf16.msra.mxu0 %v7120_v45  ;;  %5049 = vmatprep.mubr.f32.mxu0 %v7710_v58  ;;  %v5442_v45 = vpack.c.bf16 %v4010_v36, %v4009_v12  ;;  %v4012_v58 = vld [vmem:[%s7512_s1 + $0x448] sm:$0xff]  ;;  %v4013_v12 = vld [vmem:[%s7512_s1 + $0x450] sm:$0xff]  ;;  %v4014_v36 = vld [vmem:[%s7512_s1 + $0x458] sm:$0xff] }
  0xd4   : > { %5435 = vmatprep.subr.bf16.mxu0 %v5434_v37 }
  0xd5   : > { %4674 = vmatmul.mubr.f32.gmra.mrb[18].mxu1 %v6823_v31  ;;  %v7714_v31 = vld [vmem:[#allocation20_spill] sm:$0xff] }
  0xd6   : > { %5050 = vmatmul.mubr.f32.gmra.mrb[2].mxu0 %v7711_v14  ;;  %4676 = vmatprep.mubr.f32.mxu1 %v6828_v8  ;;  %v7715_v14 = vld [vmem:[#allocation22_spill] sm:$0xff] }
  0xd7   : > { %5052 = vmatprep.mubr.f32.mxu0 %v7712_v19  ;;  %5437 = vmatpush3.bf16.msra.mxu0 %v5434_v37  ;;  %v5446_v37 = vpack.c.bf16 %v4012_v58, %v4011_v55  ;;  %v7716_v19 = vld [vmem:[#allocation24_spill] sm:$0xff]  ;;  %v4015_v55 = vld [vmem:[%s7512_s1 + $0x460] sm:$0xff]  ;;  %v4016_v58 = vld [vmem:[%s7512_s1 + $0x468] sm:$0xff] }
  0xd8   : > { %5439 = vmatprep.subr.bf16.mxu0 %v5438_v22 }
  0xd9   : > { %4677 = vmatmul.mubr.f32.gmra.mrb[20].mxu1 %v7713_v13 }
  0xda   : > { %5053 = vmatmul.mubr.f32.gmra.mrb[4].mxu0 %v7714_v31  ;;  %4679 = vmatprep.mubr.f32.mxu1 %v6857_v43  ;;  %v7717_v31 = vld [vmem:[#allocation63_spill] sm:$0xff]  ;;  %v7718_v43 = vld [vmem:[#allocation25_spill] sm:$0xff] }
  0xdb   : > { %5055 = vmatprep.mubr.f32.mxu0 %v7715_v14  ;;  %5441 = vmatpush3.bf16.msra.mxu0 %v5438_v22  ;;  %v5450_v22 = vpack.c.bf16 %v4014_v36, %v4013_v12  ;;  %v7719_v14 = vld [vmem:[#allocation27_spill] sm:$0xff]  ;;  %v4018_v12 = vld [vmem:[%s7512_s1 + $0x478] sm:$0xff] }
  0xdc   : > { %5443 = vmatprep.subr.bf16.mxu0 %v5442_v45  ;;  %v7721_v36 = vld [vmem:[#allocation29_spill] sm:$0xff] }
  0xdd   : > { %4680 = vmatmul.mubr.f32.gmra.mrb[22].mxu1 %v6879_v41 }
  0xde   : > { %5056 = vmatmul.mubr.f32.gmra.mrb[6].mxu0 %v7716_v19  ;;  %4682 = vmatprep.mubr.f32.mxu1 %v7717_v31  ;;  %v7720_v19 = vld [vmem:[#allocation28_spill] sm:$0xff] }
  0xdf   : > { %5058 = vmatprep.mubr.f32.mxu0 %v7718_v43  ;;  %5445 = vmatpush3.bf16.msra.mxu0 %v5442_v45  ;;  %v5454_v43 = vpack.c.bf16 %v4016_v58, %v4015_v55  ;;  %v4017_v45 = vld [vmem:[%s7512_s1 + $0x470] sm:$0xff]  ;;  %v7723_v55 = vld [vmem:[#allocation37_spill] sm:$0xff]  ;;  %v7724_v58 = vld [vmem:[#allocation38_spill] sm:$0xff] }
  0xe0   : > { %5447 = vmatprep.subr.bf16.mxu0 %v5446_v37 }
  0xe1   : > { %4683 = vmatmul.mubr.f32.gmra.mrb[24].mxu1 %v6904_v4 }
  0xe2   : > { %5059 = vmatmul.mubr.f32.gmra.mrb[8].mxu0 %v7719_v14  ;;  %4685 = vmatprep.mubr.f32.mxu1 %v6910_v59  ;;  %v7722_v14 = vld [vmem:[#allocation33_spill] sm:$0xff] }
  0xe3   : > { %5061 = vmatprep.mubr.f32.mxu0 %v7720_v19  ;;  %5449 = vmatpush3.bf16.msra.mxu0 %v5446_v37  ;;  %v5458_v37 = vpack.c.bf16 %v4018_v12, %v4017_v45  ;;  %v7725_v19 = vld [vmem:[#allocation41_spill] sm:$0xff]  ;;  %v7728_v45 = vld [vmem:[#allocation11_spill] sm:$0xff]  ;;  %v7729_v12 = vld [vmem:[#allocation46_spill] sm:$0xff] }
  0xe4   : > { %5451 = vmatprep.subr.bf16.mxu0 %v5450_v22 }
  0xe5   : > { %4686 = vmatmul.mubr.f32.gmra.mrb[26].mxu1 %v6927_v6 }
  0xe6   : > { %5062 = vmatmul.mubr.f32.gmra.mrb[10].mxu0 %v7721_v36  ;;  %4688 = vmatprep.mubr.f32.mxu1 %v6933_v23  ;;  %v7726_v36 = vld [vmem:[#allocation10_spill] sm:$0xff] }
  0xe7   : > { %5064 = vmatprep.mubr.f32.mxu0 %v7722_v14  ;;  %5453 = vmatpush3.bf16.msra.mxu0 %v5450_v22  ;;  %v7727_v22 = vld [vmem:[#allocation42_spill] sm:$0xff]  ;;  %v7731_v14 = vld [vmem:[#allocation4_spill] sm:$0xff] }
  0xe8   : > { %5455 = vmatprep.subr.bf16.mxu0 %v5454_v43 }
  0xe9   : > { %4689 = vmatmul.mubr.f32.gmra.mrb[28].mxu1 %v6955_v60 }
  0xea   : > { %5065 = vmatmul.mubr.f32.gmra.mrb[12].mxu0 %v7723_v55  ;;  %4691 = vmatprep.mubr.f32.mxu1 %v6958_v33  ;;  %v7732_v55 = vld [vmem:[#allocation49_spill] sm:$0xff] }
  0xeb   : > { %5067 = vmatprep.mubr.f32.mxu0 %v7724_v58  ;;  %5457 = vmatpush3.bf16.msra.mxu0 %v5454_v43  ;;  %v7730_v43 = vld [vmem:[#allocation47_spill] sm:$0xff] }
  0xec   : > { %5459 = vmatprep.subr.bf16.mxu0 %v5458_v37 }
  0xed   : > { %4692 = vmatmul.mubr.f32.gmra.mrb[30].mxu1 %v6980_v35 }
  0xee   : > { %5068 = vmatmul.mubr.f32.gmra.mrb[14].mxu0 %v7725_v19  ;;  %4726 = vmatprep.mubr.msk.f32.mxu1 %vm578_vm1, %v7726_v36  ;;  %v7737_v36 = vld [vmem:[#allocation6_spill] sm:$0xff] }
  0xef   : > { %5070 = vmatprep.mubr.f32.mxu0 %v7727_v22  ;;  %5461 = vmatpush3.bf16.msra.mxu0 %v5458_v37  ;;  %v7733_v37 = vld [vmem:[#allocation51_spill] sm:$0xff] }
  0xf1   : > { %4727 = vmatmul.mubr.f32.vlgmr.msra.gmra.mrb[0].mxu1 %v7728_v45  ;;  %v2163_v45 = vrot.slane %v6935_v26, 1 }
  0xf2   : > { %5071 = vmatmul.mubr.f32.gmra.mrb[16].mxu0 %v7729_v12  ;;  %5470 = vmatpush3.bf16.msra.mxu1 %v7708_v16  ;;  %v7734_v16 = vld [vmem:[#allocation5_spill] sm:$0xff] }
  0xf3   : > { %4729 = vmatprep.mubr.msk.f32.mxu1 %vm578_vm1, %v6026_v24  ;;  %5073 = vmatprep.mubr.f32.mxu0 %v7730_v43  ;;  %v7735_v24 = vld [vmem:[#allocation52_spill] sm:$0xff] }
  0xf4   : > { %5463 = vmatprep.subr.bf16.mxu1 %v7731_v14 }
  0xf5   : > { %4730 = vmatmul.mubr.f32.gmra.mrb[2].mxu1 %v6040_v30  ;;  %v7736_v30 = vld [vmem:[#allocation53_spill] sm:$0xff] }
  0xf6   : > { %5074 = vmatmul.mubr.f32.gmra.mrb[18].mxu0 %v7732_v55  ;;  %4732 = vmatprep.mubr.msk.f32.mxu1 %vm578_vm1, %v6082_v57  ;;  %v7738_v57 = vld [vmem:[#allocation54_spill] sm:$0xff] }
  0xf7   : > { %5076 = vmatprep.mubr.f32.mxu0 %v7733_v37  ;;  %5471 = vmatpush3.bf16.msra.mxu1 %v7731_v14  ;;  %v7740_v14 = vld [vmem:[#allocation7_spill] sm:$0xff] }
  0xf8   : > { %5464 = vmatprep.subr.bf16.mxu1 %v7734_v16 }
  0xf9   : > { %4733 = vmatmul.mubr.f32.gmra.mrb[4].mxu1 %v6105_v11  ;;  %v7739_v11 = vld [vmem:[#allocation55_spill] sm:$0xff] }
  0xfa   : > { %5077 = vmatmul.mubr.f32.gmra.mrb[20].mxu0 %v7735_v24  ;;  %4735 = vmatprep.mubr.msk.f32.mxu1 %vm578_vm1, %v7689_v1  ;;  %v2162_v1 = vrot.slane %v6941_v29, 1 }
  0xfb   : > { %5079 = vmatprep.mubr.f32.mxu0 %v7736_v30  ;;  %5472 = vmatpush3.bf16.msra.mxu1 %v7734_v16  ;;  %v7741_v16 = vld [vmem:[#allocation57_spill] sm:$0xff] }
  0xfc   : > { %5465 = vmatprep.subr.bf16.mxu1 %v7737_v36  ;;  %v7337_v29 = vsel %vm918_vm0, %v2162_v1, %v2163_v45 }
  0xfd   : > { %4736 = vmatmul.mubr.f32.gmra.mrb[6].mxu1 %v6145_v48  ;;  %v7742_v48 = vld [vmem:[#allocation58_spill] sm:$0xff] }
  0xfe   : > { %5080 = vmatmul.mubr.f32.gmra.mrb[22].mxu0 %v7738_v57  ;;  %4738 = vmatprep.mubr.msk.f32.mxu1 %vm578_vm1, %v7690_v61  ;;  %v2165_v61 = vrot.slane %v6965_v18, 1  ;;  %v7745_v18 = vld [vmem:[#allocation9_spill] sm:$0xff] }
  0xff   : > { %5082 = vmatprep.mubr.f32.mxu0 %v7739_v11  ;;  %5473 = vmatpush3.bf16.msra.mxu1 %v7737_v36  ;;  %v7743_v36 = vld [vmem:[#allocation8_spill] sm:$0xff] }
 0x100   : > { %5466 = vmatprep.subr.bf16.mxu1 %v7740_v14 }
 0x101   : > { %4739 = vmatmul.mubr.f32.gmra.mrb[8].mxu1 %v6179_v17  ;;  %v7744_v17 = vld [vmem:[#allocation59_spill] sm:$0xff] }
 0x102   : > { %5083 = vmatmul.mubr.f32.gmra.mrb[24].mxu0 %v7741_v16  ;;  %4741 = vmatprep.mubr.msk.f32.mxu1 %vm578_vm1, %v7691_v28  ;;  %v7347_v28 = vsel %vm918_vm0, %v2163_v45, %v2165_v61 }
 0x103   : > { %5085 = vmatprep.mubr.f32.mxu0 %v7742_v48  ;;  %5474 = vmatpush3.bf16.msra.mxu1 %v7740_v14 }
 0x104   : > { %5467 = vmatprep.subr.bf16.mxu1 %v7743_v36 }
 0x105   : > { %4742 = vmatmul.mubr.f32.gmra.mrb[10].mxu1 %v6250_v52  ;;  %v7746_v52 = vld [vmem:[#allocation2_spill] sm:$0xff] }
 0x106   : > { %5086 = vmatmul.mubr.f32.gmra.mrb[26].mxu0 %v7744_v17  ;;  %4744 = vmatprep.mubr.msk.f32.mxu1 %vm578_vm1, %v7693_v62  ;;  %v7747_v62 = vld [vmem:[#allocation12_spill] sm:$0xff] }
 0x107   : > { %5088 = vmatprep.mubr.f32.mxu0 %v7337_v29  ;;  %5475 = vmatpush3.bf16.msra.mxu1 %v7743_v36 }
 0x108   : > { %5468 = vmatprep.subr.bf16.mxu1 %v7745_v18 }
 0x109   : > { %4745 = vmatmul.mubr.f32.gmra.mrb[12].mxu1 %v6278_v3  ;;  %v7748_v3 = vld [vmem:[#allocation34_spill] sm:$0xff] }
 0x10a   : > { %5089 = vmatmul.mubr.f32.gmra.mrb[28].mxu0 %v7347_v28  ;;  %4747 = vmatprep.mubr.msk.f32.mxu1 %vm578_vm1, %v7695_v27 }
 0x10b   : > { %5091 = vmatprep.mubr.f32.mxu0 %v7746_v52  ;;  %5476 = vmatpush3.bf16.msra.mxu1 %v7745_v18 }
 0x10c   : > { %5469 = vmatprep.subr.bf16.mxu1 %v7747_v62 }
 0x10d   : > { %4748 = vmatmul.mubr.f32.gmra.mrb[14].mxu1 %v6362_v9  ;;  %v7749_v9 = vld [vmem:[#allocation43_spill] sm:$0xff] }
 0x10e   : > { %5092 = vmatmul.mubr.f32.gmra.mrb[30].mxu0 %v7746_v52  ;;  %4750 = vmatprep.mubr.msk.f32.mxu1 %vm578_vm1, %v7696_v0 }
 0x10f   : > { %5126 = vmatprep.mubr.f32.mxu0 %v7702_v38  ;;  %5477 = vmatpush3.bf16.msra.mxu1 %v7747_v62 }
 0x111   : > { %4751 = vmatmul.mubr.f32.gmra.mrb[16].mxu1 %v7748_v3 }
 0x112   : > { %5127 = vmatmul.mubr.f32.vlgmr.msra.gmra.mrb[0].mxu0 %v6458_v21  ;;  %4753 = vmatprep.mubr.msk.f32.mxu1 %vm578_vm1, %v7697_v54  ;;  %v7750_v21 = vld [vmem:[#allocation45_spill] sm:$0xff] }
 0x113   : > { %5129 = vmatprep.mubr.f32.mxu0 %v7703_v47 }
 0x115   : > { %4754 = vmatmul.mubr.f32.gmra.mrb[18].mxu1 %v6467_v32  ;;  %v7751_v32 = vld [vmem:[#allocation50_spill] sm:$0xff] }
 0x116   : > { %5130 = vmatmul.mubr.f32.gmra.mrb[2].mxu0 %v7704_v5  ;;  %4756 = vmatprep.mubr.msk.f32.mxu1 %vm578_vm1, %v6513_v51  ;;  %v7752_v51 = vld [vmem:[#allocation56_spill] sm:$0xff] }
 0x117   : > { %5132 = vmatprep.mubr.f32.mxu0 %v7705_v46  ;;  %v7755_v46 = vld [vmem:[#allocation62_spill] sm:$0xff] }
 0x119   : > { %4757 = vmatmul.mubr.f32.gmra.mrb[20].mxu1 %v6519_v63  ;;  %v7753_v63 = vld [vmem:[#allocation64_spill] sm:$0xff] }
 0x11a   : > { %5133 = vmatmul.mubr.f32.gmra.mrb[4].mxu0 %v7706_v50  ;;  %4759 = vmatprep.mubr.msk.f32.mxu1 %vm578_vm1, %v7749_v9 }
 0x11b   : > { %5135 = vmatprep.mubr.f32.mxu0 %v6618_v40  ;;  %v7757_v40 = vld [vmem:[#allocation16_spill] sm:$0xff] }
 0x11d   : > { %4760 = vmatmul.mubr.f32.gmra.mrb[22].mxu1 %v7750_v21 }
 0x11e   : > { %5136 = vmatmul.mubr.f32.gmra.mrb[6].mxu0 %v6625_v2  ;;  %4762 = vmatprep.mubr.msk.f32.mxu1 %vm578_vm1, %v7751_v32  ;;  %v7758_v2 = vld [vmem:[#allocation21_spill] sm:$0xff] }
 0x11f   : > { %5138 = vmatprep.mubr.f32.mxu0 %v6678_v34 }
 0x121   : > { %4763 = vmatmul.mubr.f32.gmra.mrb[24].mxu1 %v6639_v39 }
 0x122   : > { %5139 = vmatmul.mubr.f32.gmra.mrb[8].mxu0 %v6701_v49  ;;  %4765 = vmatprep.mubr.msk.f32.mxu1 %vm578_vm1, %v6670_v56  ;;  %v7754_v56 = vld [vmem:[#allocation60_spill] sm:$0xff] }
 0x123   : > { %5141 = vmatprep.mubr.f32.mxu0 %v6743_v25 }
 0x125   : > { %4766 = vmatmul.mubr.f32.gmra.mrb[26].mxu1 %v6686_v53 }
 0x126   : > { %5142 = vmatmul.mubr.f32.gmra.mrb[10].mxu0 %v6762_v10  ;;  %4768 = vmatprep.mubr.msk.f32.mxu1 %vm578_vm1, %v6738_v44 }
 0x127   : > { %5144 = vmatprep.mubr.f32.mxu0 %v6765_v15 }
 0x129   : > { %4769 = vmatmul.mubr.f32.gmra.mrb[28].mxu1 %v7752_v51 }
 0x12a   : > { %5145 = vmatmul.mubr.f32.gmra.mrb[12].mxu0 %v6798_v7  ;;  %4771 = vmatprep.mubr.msk.f32.mxu1 %vm578_vm1, %v7753_v63 }
 0x12b   : > { %5147 = vmatprep.mubr.f32.mxu0 %v6802_v42 }
 0x12d   : > { %4772 = vmatmul.mubr.f32.gmra.mrb[30].mxu1 %v6935_v26 }
 0x12e   : > { %5148 = vmatmul.mubr.f32.gmra.mrb[14].mxu0 %v7754_v56  ;;  %4830 = vmatprep.mubr.f32.mxu1 %v7724_v58 }
 0x12f   : > { %5150 = vmatprep.mubr.f32.mxu0 %v6828_v8 }
 0x131   : > { %4831 = vmatmul.mubr.f32.vlgmr.msra.gmra.mrb[16].mxu1 %v7725_v19 }
 0x132   : > { %5151 = vmatmul.mubr.f32.gmra.mrb[16].mxu0 %v7713_v13  ;;  %4833 = vmatprep.mubr.f32.mxu1 %v7727_v22 }
 0x133   : > { %5153 = vmatprep.mubr.f32.mxu0 %v7755_v46 }
 0x135   : > { %4834 = vmatmul.mubr.f32.gmra.mrb[18].mxu1 %v7729_v12 }
 0x136   : > { %5154 = vmatmul.mubr.f32.gmra.mrb[18].mxu0 %v6879_v41  ;;  %4836 = vmatprep.mubr.f32.mxu1 %v7730_v43 }
 0x137   : > { %5156 = vmatprep.mubr.f32.mxu0 %v7717_v31 }
 0x139   : > { %4837 = vmatmul.mubr.f32.gmra.mrb[20].mxu1 %v7732_v55 }
 0x13a   : > { %5157 = vmatmul.mubr.f32.gmra.mrb[20].mxu0 %v6904_v4  ;;  %4839 = vmatprep.mubr.f32.mxu1 %v7733_v37 }
 0x13b   : > { %5159 = vmatprep.mubr.f32.mxu0 %v6910_v59 }
 0x13d   : > { %4840 = vmatmul.mubr.f32.gmra.mrb[22].mxu1 %v7735_v24 }
 0x13e   : > { %5160 = vmatmul.mubr.f32.gmra.mrb[22].mxu0 %v6927_v6  ;;  %4842 = vmatprep.mubr.f32.mxu1 %v7736_v30 }
 0x13f   : > { %5162 = vmatprep.mubr.f32.mxu0 %v6933_v23 }
 0x141   : > { %4843 = vmatmul.mubr.f32.gmra.mrb[24].mxu1 %v7738_v57 }
 0x142   : > { %5163 = vmatmul.mubr.f32.gmra.mrb[24].mxu0 %v6955_v60  ;;  %4845 = vmatprep.mubr.f32.mxu1 %v7739_v11 }
 0x143   : > { %5165 = vmatprep.mubr.f32.mxu0 %v6958_v33 }
 0x145   : > { %4846 = vmatmul.mubr.f32.gmra.mrb[26].mxu1 %v7741_v16 }
 0x146   : > { %5166 = vmatmul.mubr.f32.gmra.mrb[26].mxu0 %v6980_v35  ;;  %4848 = vmatprep.mubr.f32.mxu1 %v7742_v48 }
 0x147   : > { %5168 = vmatprep.mubr.f32.mxu0 %v7756_v20 }
 0x149   : > { %4849 = vmatmul.mubr.f32.gmra.mrb[28].mxu1 %v7744_v17 }
 0x14a   : > { %5169 = vmatmul.mubr.f32.gmra.mrb[28].mxu0 %v7757_v40  ;;  %4851 = vmatprep.mubr.f32.mxu1 %v7337_v29 }
 0x14b   : > { %5171 = vmatprep.mubr.f32.mxu0 %v7758_v2 }
 0x14d   : > { %4852 = vmatmul.mubr.f32.gmra.mrb[30].mxu1 %v7347_v28 }
 0x14e   : > { %5172 = vmatmul.mubr.f32.gmra.mrb[30].mxu0 %v7758_v2 }
 0x1c4   : > { %v4728_v39 = vpop.f32.mrb[0].mxu1 }
 0x1c5   : > { %v1968_v34 = vpop.f32.mrb[1].mxu1 }
 0x1c8   : > { %v4731_v53 = vpop.f32.mrb[2].mxu1 }
 0x1c9   : > { %v1978_v49 = vpop.f32.mrb[3].mxu1 }
 0x1cc   : > { %v4734_v44 = vpop.f32.mrb[4].mxu1 }
 0x1cd   : > { %v1988_v25 = vpop.f32.mrb[5].mxu1 }
 0x1d0   : > { %v4737_v42 = vpop.f32.mrb[6].mxu1 }
 0x1d1   : > { %v1998_v10 = vpop.f32.mrb[7].mxu1 }
 0x1d4   : > { %v4740_v15 = vpop.f32.mrb[8].mxu1 }
 0x1d5   : > { %v2008_v7 = vpop.f32.mrb[9].mxu1 }
 0x1d8   : > { %v7442_v8 = vpop.f32.mrb[10].mxu1 }
 0x1d9   : > { %v7444_v41 = vpop.f32.mrb[11].mxu1 }
 0x1dc   : > { %v7446_v4 = vpop.f32.mrb[12].mxu1 }
 0x1dd   : > { %v7448_v59 = vpop.f32.mrb[13].mxu1 }
 0x1e0   : > { %v7450_v6 = vpop.f32.mrb[14].mxu1 }
 0x1e1   : > { %v7452_v23 = vpop.f32.mrb[15].mxu1 }
 0x1e5   : > { %v5128_v26 = vpop.f32.mrb[0].mxu0 }
 0x1e6   : > { %v5478_v60 = vadd.f32 %v5128_v26, %v4728_v39  ;;  %v3372_v33 = vpop.f32.mrb[1].mxu0 }
 0x1e7   : > { %v5479_v35 = vadd.f32 %v3372_v33, %v1968_v34 }
 0x1e8   : > { %v3601_v27 = vmul.f32 %v5478_v60, %v5478_v60  ;;  %3673 = vst [vmem:[%s7458_s12 + $0x8] sm:$0xff] %v5478_v60 }
 0x1e9   : > { %v3563_v0 = vadd.f32 %v5479_v35, %v5478_v60  ;;  %v3600_v54 = vmul.f32 %v5479_v35, %v5479_v35  ;;  %3672 = vst [vmem:[%s7458_s12] sm:$0xff] %v5479_v35  ;;  %v5131_v38 = vpop.f32.mrb[2].mxu0 }
 0x1ea   : > { %v5480_v47 = vadd.f32 %v5131_v38, %v4731_v53  ;;  %v3382_v5 = vpop.f32.mrb[3].mxu0 }
 0x1eb   : > { %v3632_v50 = vadd.f32 %v3601_v27, %v3600_v54  ;;  %v5481_v13 = vadd.f32 %v3382_v5, %v1978_v49 }
 0x1ec   : > { %3675 = vst [vmem:[%s7458_s12 + $0x18] sm:$0xff] %v5480_v47  ;;  %v3603_v43 = vmul.f32 %v5480_v47, %v5480_v47 }
 0x1ed   : > { %v3564_v31 = vadd.f32 %v5481_v13, %v3563_v0  ;;  %v3602_v58 = vmul.f32 %v5481_v13, %v5481_v13  ;;  %3674 = vst [vmem:[%s7458_s12 + $0x10] sm:$0xff] %v5481_v13  ;;  %v5134_v19 = vpop.f32.mrb[4].mxu0 }
 0x1ee   : > { %v5482_v22 = vadd.f32 %v5134_v19, %v4734_v44  ;;  %v3392_v12 = vpop.f32.mrb[5].mxu0 }
 0x1ef   : > { %v3633_v55 = vadd.f32 %v3632_v50, %v3602_v58  ;;  %v5483_v37 = vadd.f32 %v3392_v12, %v1988_v25  ;;  %v3565_v24 = vadd.f32 %v5480_v47, %v3564_v31 }
 0x1f0   : > { %3677 = vst [vmem:[%s7458_s12 + $0x28] sm:$0xff] %v5482_v22  ;;  %v3605_v16 = vmul.f32 %v5482_v22, %v5482_v22 }
 0x1f1   : > { %v3566_v30 = vadd.f32 %v5483_v37, %v3565_v24  ;;  %v3604_v57 = vmul.f32 %v5483_v37, %v5483_v37  ;;  %v3634_v11 = vadd.f32 %v3633_v55, %v3603_v43  ;;  %3676 = vst [vmem:[%s7458_s12 + $0x20] sm:$0xff] %v5483_v37  ;;  %v5137_v1 = vpop.f32.mrb[6].mxu0 }
 0x1f2   : > { %v5484_v45 = vadd.f32 %v5137_v1, %v4737_v42  ;;  %v3402_v14 = vpop.f32.mrb[7].mxu0 }
 0x1f3   : > { %v3635_v48 = vadd.f32 %v3634_v11, %v3604_v57  ;;  %v5485_v61 = vadd.f32 %v3402_v14, %v1998_v10  ;;  %v3567_v29 = vadd.f32 %v5482_v22, %v3566_v30 }
 0x1f4   : > { %3679 = vst [vmem:[%s7458_s12 + $0x38] sm:$0xff] %v5484_v45  ;;  %v3607_v3 = vmul.f32 %v5484_v45, %v5484_v45 }
 0x1f5   : > { %v3568_v36 = vadd.f32 %v5485_v61, %v3567_v29  ;;  %v3606_v17 = vmul.f32 %v5485_v61, %v5485_v61  ;;  %v3636_v28 = vadd.f32 %v3635_v48, %v3605_v16  ;;  %3678 = vst [vmem:[%s7458_s12 + $0x30] sm:$0xff] %v5485_v61  ;;  %v5140_v18 = vpop.f32.mrb[8].mxu0 }
 0x1f6   : > { %v5486_v52 = vadd.f32 %v5140_v18, %v4740_v15  ;;  %v3412_v62 = vpop.f32.mrb[9].mxu0 }
 0x1f7   : > { %v3637_v9 = vadd.f32 %v3636_v28, %v3606_v17  ;;  %v5487_v21 = vadd.f32 %v3412_v62, %v2008_v7  ;;  %v3569_v32 = vadd.f32 %v5484_v45, %v3568_v36 }
 0x1f8   : > { %3681 = vst [vmem:[%s7458_s12 + $0x48] sm:$0xff] %v5486_v52  ;;  %v3609_v2 = vmul.f32 %v5486_v52, %v5486_v52 }
 0x1f9   : > { %v3570_v51 = vadd.f32 %v5487_v21, %v3569_v32  ;;  %v3608_v63 = vmul.f32 %v5487_v21, %v5487_v21  ;;  %v3638_v56 = vadd.f32 %v3637_v9, %v3607_v3  ;;  %3680 = vst [vmem:[%s7458_s12 + $0x40] sm:$0xff] %v5487_v21  ;;  %v5143_v46 = vpop.f32.mrb[10].mxu0 }
 0x1fa   : > { %v5488_v20 = vadd.f32 %v5143_v46, %v7442_v8  ;;  %v3422_v40 = vpop.f32.mrb[11].mxu0 }
 0x1fb   : > { %v3639_v39 = vadd.f32 %v3638_v56, %v3608_v63  ;;  %v5489_v34 = vadd.f32 %v3422_v40, %v7444_v41  ;;  %v3571_v53 = vadd.f32 %v5486_v52, %v3570_v51 }
 0x1fc   : > { %3683 = vst [vmem:[%s7458_s12 + $0x58] sm:$0xff] %v5488_v20  ;;  %v3611_v7 = vmul.f32 %v5488_v20, %v5488_v20 }
 0x1fd   : > { %v3572_v49 = vadd.f32 %v5489_v34, %v3571_v53  ;;  %v3610_v44 = vmul.f32 %v5489_v34, %v5489_v34  ;;  %v3640_v25 = vadd.f32 %v3639_v39, %v3609_v2  ;;  %3682 = vst [vmem:[%s7458_s12 + $0x50] sm:$0xff] %v5489_v34  ;;  %v5146_v42 = vpop.f32.mrb[12].mxu0 }
 0x1fe   : > { %v5490_v10 = vadd.f32 %v5146_v42, %v7446_v4  ;;  %v3432_v15 = vpop.f32.mrb[13].mxu0 }
 0x1ff   : > { %v3641_v8 = vadd.f32 %v3640_v25, %v3610_v44  ;;  %v5491_v26 = vadd.f32 %v3432_v15, %v7448_v59  ;;  %v3573_v60 = vadd.f32 %v5488_v20, %v3572_v49 }
 0x200   : > { %3685 = vst [vmem:[%s7458_s12 + $0x68] sm:$0xff] %v5490_v10  ;;  %v3613_v38 = vmul.f32 %v5490_v10, %v5490_v10 }
 0x201   : > { %v3574_v33 = vadd.f32 %v5491_v26, %v3573_v60  ;;  %v3612_v41 = vmul.f32 %v5491_v26, %v5491_v26  ;;  %v3642_v35 = vadd.f32 %v3641_v8, %v3611_v7  ;;  %3684 = vst [vmem:[%s7458_s12 + $0x60] sm:$0xff] %v5491_v26  ;;  %v5149_v27 = vpop.f32.mrb[14].mxu0 }
 0x202   : > { %v5492_v0 = vadd.f32 %v5149_v27, %v7450_v6  ;;  %v3442_v54 = vpop.f32.mrb[15].mxu0 }
 0x203   : > { %v3643_v47 = vadd.f32 %v3642_v35, %v3612_v41  ;;  %v5493_v4 = vadd.f32 %v3442_v54, %v7452_v23  ;;  %v3575_v5 = vadd.f32 %v5490_v10, %v3574_v33 }
 0x204   : > { %3687 = vst [vmem:[%s7458_s12 + $0x78] sm:$0xff] %v5492_v0  ;;  %v4832_v50 = vpop.f32.mrb[16].mxu1  ;;  %v3615_v43 = vmul.f32 %v5492_v0, %v5492_v0 }
 0x205   : > { %v3576_v59 = vadd.f32 %v5493_v4, %v3575_v5  ;;  %v3614_v13 = vmul.f32 %v5493_v4, %v5493_v4  ;;  %v3644_v31 = vadd.f32 %v3643_v47, %v3613_v38  ;;  %3686 = vst [vmem:[%s7458_s12 + $0x70] sm:$0xff] %v5493_v4  ;;  %v5152_v58 = vpop.f32.mrb[16].mxu0  ;;  %v2332_v19 = vpop.f32.mrb[17].mxu1 }
 0x206   : > { %v5494_v22 = vadd.f32 %v5152_v58, %v4832_v50  ;;  %v3452_v12 = vpop.f32.mrb[17].mxu0 }
 0x207   : > { %v3645_v6 = vadd.f32 %v3644_v31, %v3614_v13  ;;  %v5495_v55 = vadd.f32 %v3452_v12, %v2332_v19  ;;  %v3577_v37 = vadd.f32 %v5492_v0, %v3576_v59 }
 0x208   : > { %3689 = vst [vmem:[%s7458_s12 + $0x88] sm:$0xff] %v5494_v22  ;;  %v4835_v23 = vpop.f32.mrb[18].mxu1  ;;  %v3617_v16 = vmul.f32 %v5494_v22, %v5494_v22 }
 0x209   : > { %v3578_v24 = vadd.f32 %v5495_v55, %v3577_v37  ;;  %v3616_v30 = vmul.f32 %v5495_v55, %v5495_v55  ;;  %v3646_v57 = vadd.f32 %v3645_v6, %v3615_v43  ;;  %3688 = vst [vmem:[%s7458_s12 + $0x80] sm:$0xff] %v5495_v55  ;;  %v5155_v11 = vpop.f32.mrb[18].mxu0  ;;  %v2342_v1 = vpop.f32.mrb[19].mxu1 }
 0x20a   : > { %v5496_v45 = vadd.f32 %v5155_v11, %v4835_v23  ;;  %v3462_v14 = vpop.f32.mrb[19].mxu0 }
 0x20b   : > { %v3647_v48 = vadd.f32 %v3646_v57, %v3616_v30  ;;  %v5497_v61 = vadd.f32 %v3462_v14, %v2342_v1  ;;  %v3579_v29 = vadd.f32 %v5494_v22, %v3578_v24 }
 0x20c   : > { %3691 = vst [vmem:[%s7458_s12 + $0x98] sm:$0xff] %v5496_v45  ;;  %v4838_v36 = vpop.f32.mrb[20].mxu1  ;;  %v3619_v21 = vmul.f32 %v5496_v45, %v5496_v45 }
 0x20d   : > { %v3580_v17 = vadd.f32 %v5497_v61, %v3579_v29  ;;  %v3618_v28 = vmul.f32 %v5497_v61, %v5497_v61  ;;  %v3648_v18 = vadd.f32 %v3647_v48, %v3617_v16  ;;  %3690 = vst [vmem:[%s7458_s12 + $0x90] sm:$0xff] %v5497_v61  ;;  %v5158_v52 = vpop.f32.mrb[20].mxu0  ;;  %v2352_v62 = vpop.f32.mrb[21].mxu1 }
 0x20e   : > { %v5498_v3 = vadd.f32 %v5158_v52, %v4838_v36  ;;  %v3472_v9 = vpop.f32.mrb[21].mxu0 }
 0x20f   : > { %v3649_v32 = vadd.f32 %v3648_v18, %v3618_v28  ;;  %v5499_v51 = vadd.f32 %v3472_v9, %v2352_v62  ;;  %v3581_v63 = vadd.f32 %v5496_v45, %v3580_v17 }
 0x210   : > { %3693 = vst [vmem:[%s7458_s12 + $0xa8] sm:$0xff] %v5498_v3  ;;  %v4841_v56 = vpop.f32.mrb[22].mxu1  ;;  %v3621_v49 = vmul.f32 %v5498_v3, %v5498_v3 }
 0x211   : > { %v3582_v46 = vadd.f32 %v5499_v51, %v3581_v63  ;;  %v3620_v20 = vmul.f32 %v5499_v51, %v5499_v51  ;;  %v3650_v40 = vadd.f32 %v3649_v32, %v3619_v21  ;;  %3692 = vst [vmem:[%s7458_s12 + $0xa0] sm:$0xff] %v5499_v51  ;;  %v5161_v2 = vpop.f32.mrb[22].mxu0  ;;  %v2362_v39 = vpop.f32.mrb[23].mxu1 }
 0x212   : > { %v5500_v34 = vadd.f32 %v5161_v2, %v4841_v56  ;;  %v3482_v53 = vpop.f32.mrb[23].mxu0 }
 0x213   : > { %v3651_v44 = vadd.f32 %v3650_v40, %v3620_v20  ;;  %v5501_v25 = vadd.f32 %v3482_v53, %v2362_v39  ;;  %v3583_v42 = vadd.f32 %v5498_v3, %v3582_v46 }
 0x214   : > { %3695 = vst [vmem:[%s7458_s12 + $0xb8] sm:$0xff] %v5500_v34  ;;  %v4844_v10 = vpop.f32.mrb[24].mxu1  ;;  %v3623_v35 = vmul.f32 %v5500_v34, %v5500_v34 }
 0x215   : > { %v3584_v15 = vadd.f32 %v5501_v25, %v3583_v42  ;;  %v3622_v7 = vmul.f32 %v5501_v25, %v5501_v25  ;;  %v3652_v8 = vadd.f32 %v3651_v44, %v3621_v49  ;;  %3694 = vst [vmem:[%s7458_s12 + $0xb0] sm:$0xff] %v5501_v25  ;;  %v5164_v26 = vpop.f32.mrb[24].mxu0  ;;  %v2372_v60 = vpop.f32.mrb[25].mxu1 }
 0x216   : > { %v5502_v33 = vadd.f32 %v5164_v26, %v4844_v10  ;;  %v3492_v41 = vpop.f32.mrb[25].mxu0 }
 0x217   : > { %v3653_v27 = vadd.f32 %v3652_v8, %v3622_v7  ;;  %v5503_v0 = vadd.f32 %v3492_v41, %v2372_v60  ;;  %v3585_v54 = vadd.f32 %v5500_v34, %v3584_v15 }
 0x218   : > { %3697 = vst [vmem:[%s7458_s12 + $0xc8] sm:$0xff] %v5502_v33  ;;  %v4847_v38 = vpop.f32.mrb[26].mxu1  ;;  %v3625_v58 = vmul.f32 %v5502_v33, %v5502_v33 }
 0x219   : > { %v3586_v47 = vadd.f32 %v5503_v0, %v3585_v54  ;;  %v3624_v4 = vmul.f32 %v5503_v0, %v5503_v0  ;;  %v3654_v5 = vadd.f32 %v3653_v27, %v3623_v35  ;;  %3696 = vst [vmem:[%s7458_s12 + $0xc0] sm:$0xff] %v5503_v0  ;;  %v5167_v50 = vpop.f32.mrb[26].mxu0  ;;  %v2382_v59 = vpop.f32.mrb[27].mxu1 }
 0x21a   : > { %v5504_v13 = vadd.f32 %v5167_v50, %v4847_v38  ;;  %v3502_v31 = vpop.f32.mrb[27].mxu0 }
 0x21b   : > { %v3655_v19 = vadd.f32 %v3654_v5, %v3624_v4  ;;  %v5505_v22 = vadd.f32 %v3502_v31, %v2382_v59  ;;  %v3587_v12 = vadd.f32 %v5502_v33, %v3586_v47 }
 0x21c   : > { %3699 = vst [vmem:[%s7458_s12 + $0xd8] sm:$0xff] %v5504_v13  ;;  %v4850_v43 = vpop.f32.mrb[28].mxu1  ;;  %v3627_v11 = vmul.f32 %v5504_v13, %v5504_v13 }
 0x21d   : > { %v3588_v6 = vadd.f32 %v5505_v22, %v3587_v12  ;;  %v3626_v55 = vmul.f32 %v5505_v22, %v5505_v22  ;;  %v3656_v37 = vadd.f32 %v3655_v19, %v3625_v58  ;;  %3698 = vst [vmem:[%s7458_s12 + $0xd0] sm:$0xff] %v5505_v22  ;;  %v5170_v23 = vpop.f32.mrb[28].mxu0  ;;  %v2392_v24 = vpop.f32.mrb[29].mxu1 }
 0x21e   : > { %v5506_v30 = vadd.f32 %v5170_v23, %v4850_v43  ;;  %v3512_v57 = vpop.f32.mrb[29].mxu0 }
 0x21f   : > { %v3657_v1 = vadd.f32 %v3656_v37, %v3626_v55  ;;  %v5507_v45 = vadd.f32 %v3512_v57, %v2392_v24  ;;  %v3589_v14 = vadd.f32 %v5504_v13, %v3588_v6 }
 0x220   : > { %3701 = vst [vmem:[%s7458_s12 + $0xe8] sm:$0xff] %v5506_v30  ;;  %v4853_v16 = vpop.f32.mrb[30].mxu1  ;;  %v3629_v52 = vmul.f32 %v5506_v30, %v5506_v30 }
 0x221   : > { %v3590_v48 = vadd.f32 %v5507_v45, %v3589_v14  ;;  %v3628_v61 = vmul.f32 %v5507_v45, %v5507_v45  ;;  %v3658_v29 = vadd.f32 %v3657_v1, %v3627_v11  ;;  %3700 = vst [vmem:[%s7458_s12 + $0xe0] sm:$0xff] %v5507_v45  ;;  %v5173_v36 = vpop.f32.mrb[30].mxu0  ;;  %v2402_v17 = vpop.f32.mrb[31].mxu1 }
 0x222   : > { %v5508_v28 = vadd.f32 %v5173_v36, %v4853_v16  ;;  %v3522_v18 = vpop.f32.mrb[31].mxu0 }
 0x223   : > { %v3659_v62 = vadd.f32 %v3658_v29, %v3628_v61  ;;  %v5509_v3 = vadd.f32 %v3522_v18, %v2402_v17  ;;  %v3591_v9 = vadd.f32 %v5506_v30, %v3590_v48 }
 0x224   : > { %3703 = vst [vmem:[%s7458_s12 + $0xf8] sm:$0xff] %v5508_v28  ;;  %v3631_v63 = vmul.f32 %v5508_v28, %v5508_v28 }
 0x225   : > { %v3592_v21 = vadd.f32 %v5509_v3, %v3591_v9  ;;  %v3630_v32 = vmul.f32 %v5509_v3, %v5509_v3  ;;  %v3660_v51 = vadd.f32 %v3659_v62, %v3629_v52  ;;  %3702 = vst [vmem:[%s7458_s12 + $0xf0] sm:$0xff] %v5509_v3 }
 0x227   : > { %v3593_v56 = vadd.f32 %v5508_v28, %v3592_v21  ;;  %v3661_v46 = vadd.f32 %v3660_v51, %v3630_v32 }
 0x229   : > { %v3594_v20 = vrot.slane %v3593_v56, 4  ;;  %v3662_v40 = vadd.f32 %v3661_v46, %v3631_v63 }
 0x22b   : > { %v3595_v2 = vadd.f32 %v3594_v20, %v3593_v56  ;;  %v3663_v39 = vrot.slane %v3662_v40, 4 }
 0x22d   : > { %v3596_v34 = vrot.slane %v3595_v2, 2  ;;  %v3664_v53 = vadd.f32 %v3663_v39, %v3662_v40 }
 0x22f   : > { %v3597_v49 = vadd.f32 %v3596_v34, %v3595_v2  ;;  %v3665_v44 = vrot.slane %v3664_v53, 2 }
 0x231   : > { %v3598_v25 = vrot.slane %v3597_v49, 1  ;;  %v3666_v42 = vadd.f32 %v3665_v44, %v3664_v53 }
 0x233   : > { %v3667_v10 = vrot.slane %v3666_v42, 1  ;;  %v3599_v15 = vadd.f32 %v3598_v25, %v3597_v49 }
 0x235   : > { %v3668_v7 = vadd.f32 %v3667_v10, %v3666_v42 }
 0x237   : > { %v3670_v8 = vsel %vm3669_vm4, %v3599_v15, %v3668_v7 }
 0x238   : > { %3671 = vst [vmem:[%s268_s17] sm:$0x3] %v3670_v8 }
 0x239 PF: > { %s16_s20 = sadd.s32 1, %s5784_s20   ;;  %s7759_s18 = smov %s5780_s19 }
 0x23a   : > { %p13_p5 = scmp.ge.s32.totalorder %s16_s20, 4   ;;  %s7760_s19 = smov %s7762_s21 }
 0x23c   :  { %15 = sbr.rel (!%p13_p5) target bundleno = 2 (0x2), region = 87 }

</bundles_post_ra>
